<compile_context>
chip_gen: v6e
topology: v6e:2x2x1
jax: 0.10.0
libtpu: 0.0.40
codegen_flags: <defaults>
</compile_context>

<pallas_src>
import jax
import jax.numpy as jnp
from jax import lax
from jax.experimental import pallas as pl
from jax.experimental.pallas import tpu as pltpu

LANE = 128


def decoder_kernel(tok_ref,              # (T, B) int32   SMEM (scalar prefetch)
                   h0_ref, c0_ref,       # (B, Hp) f32    resident
                   emb_ref,              # (Vp, Hp) f32   resident
                   w_ih_ref, w_hh_ref,   # (Hp, 4Hp) bf16 resident
                   b_ref,                # (1, 4Hp) f32   resident (b_ih + b_hh)
                   w_out_ref,            # (Hp, Vp) bf16  resident
                   b_out_ref,            # (1, Vp) f32    resident (-1e30 pad cols)
                   logp_ref,             # (Tc, B, Vp) f32 out (indexed by chunk)
                   h_ref, c_ref):        # (B, Hp) f32 outs (carried across chunks)
    chunk = pl.program_id(0)
    Tc, B, Vp = logp_ref.shape
    Hp = h_ref.shape[-1]

    # Recurrent state lives in the constant-index (VMEM-resident) output blocks.
    @pl.when(chunk == 0)
    def _():
        h_ref[...] = h0_ref[...]
        c_ref[...] = c0_ref[...]

    def step(s, carry):
        h_prev, c_prev = carry                                  # (B, Hp) f32
        t = chunk * Tc + s

        # Embedding gather: B dynamic row slices from the resident f32 table,
        # token ids read as scalars from SMEM.
        rows = [emb_ref[pl.ds(tok_ref[t, bb], 1), :] for bb in range(B)]
        emb = jnp.concatenate(rows, axis=0)                     # (B, Hp) f32

        # dropout (eval mode) -> identity; relu.
        # TODO(synk): training-mode dropout would use pltpu.prng_seed/prng_random_bits.
        x = jnp.maximum(emb, 0.0)

        # LSTM gates: x @ W_ih + h @ W_hh + (b_ih + b_hh); f32 accumulation.
        gates = (jnp.dot(x.astype(jnp.bfloat16), w_ih_ref[...],
                         preferred_element_type=jnp.float32)
                 + jnp.dot(h_prev.astype(jnp.bfloat16), w_hh_ref[...],
                           preferred_element_type=jnp.float32)
                 + b_ref[...])                                  # (B, 4Hp) f32

        # PyTorch gate order (i, f, g, o); each gate has its own 128-lane slab.
        i_g = jax.nn.sigmoid(gates[:, 0 * Hp:1 * Hp])
        f_g = jax.nn.sigmoid(gates[:, 1 * Hp:2 * Hp])
        g_g = jnp.tanh(gates[:, 2 * Hp:3 * Hp])
        o_g = jax.nn.sigmoid(gates[:, 3 * Hp:4 * Hp])

        c_new = f_g * c_prev + i_g * g_g                        # (B, Hp)
        h_new = o_g * jnp.tanh(c_new)                           # (B, Hp)

        # Output projection + LogSoftmax over the (padded, lane-dense) vocab dim.
        logits = (jnp.dot(h_new.astype(jnp.bfloat16), w_out_ref[...],
                          preferred_element_type=jnp.float32)
                  + b_out_ref[...])                             # (B, Vp); pad cols ~ -1e30
        m = jnp.max(logits, axis=-1, keepdims=True)
        lse = jnp.log(jnp.sum(jnp.exp(logits - m), axis=-1, keepdims=True)) + m
        logp_ref[s] = logits - lse                              # dynamic store, step s

        return (h_new, c_new)

    h_fin, c_fin = lax.fori_loop(0, Tc, step, (h_ref[...], c_ref[...]),
                                 unroll=True)
    h_ref[...] = h_fin
    c_ref[...] = c_fin


def make_params(key, hidden_size, output_size):
    """Deterministic parameter init (uniform, PyTorch-like scale)."""
    ks = jax.random.split(key, 7)
    H, V = hidden_size, output_size
    s = 1.0 / jnp.sqrt(H)
    return {
        "embedding": jax.random.normal(ks[0], (V, H), jnp.float32),
        # stored transposed from PyTorch: [in_features, out_features]
        "w_ih": jax.random.uniform(ks[1], (H, 4 * H), jnp.float32, -s, s),
        "w_hh": jax.random.uniform(ks[2], (H, 4 * H), jnp.float32, -s, s),
        "b_ih": jax.random.uniform(ks[3], (4 * H,), jnp.float32, -s, s),
        "b_hh": jax.random.uniform(ks[4], (4 * H,), jnp.float32, -s, s),
        "w_out": jax.random.uniform(ks[5], (H, V), jnp.float32, -s, s),
        "b_out": jax.random.uniform(ks[6], (V,), jnp.float32, -s, s),
    }


def prepare_decoder_params(params, hidden_size, output_size):
    """One-time prep: pad to lane multiples, fuse gate biases, cast weights bf16.

    Invariant: padded hidden lanes of x / h / c stay exactly zero through the
    recurrence (zero weight columns, zero biases, c0 padded lanes zeroed).
    """
    H, V = hidden_size, output_size
    Hp = ((H + LANE - 1) // LANE) * LANE
    Vp = ((V + LANE - 1) // LANE) * LANE

    emb = jnp.zeros((Vp, Hp), jnp.float32).at[:V, :H].set(params["embedding"])

    w_ih = jnp.zeros((Hp, 4 * Hp), jnp.float32)
    w_hh = jnp.zeros((Hp, 4 * Hp), jnp.float32)
    b = jnp.zeros((1, 4 * Hp), jnp.float32)
    b_gate = params["b_ih"] + params["b_hh"]
    for k in range(4):
        w_ih = w_ih.at[:H, k * Hp:k * Hp + H].set(params["w_ih"][:, k * H:(k + 1) * H])
        w_hh = w_hh.at[:H, k * Hp:k * Hp + H].set(params["w_hh"][:, k * H:(k + 1) * H])
        b = b.at[0, k * Hp:k * Hp + H].set(b_gate[k * H:(k + 1) * H])

    w_out = jnp.zeros((Hp, Vp), jnp.float32).at[:H, :V].set(params["w_out"])
    # Padded vocab columns get -1e30 bias so they vanish from the softmax (f32 only).
    b_out = jnp.full((1, Vp), -1e30, jnp.float32).at[0, :V].set(params["b_out"])

    return {
        "emb": emb,                                  # f32 (dynamic row gather path)
        "w_ih": w_ih.astype(jnp.bfloat16),
        "w_hh": w_hh.astype(jnp.bfloat16),
        "b": b,
        "w_out": w_out.astype(jnp.bfloat16),
        "b_out": b_out,
        "H": H, "V": V, "Hp": Hp, "Vp": Vp,
    }


def _pad_state(state, Hp):
    # Plain helper (the previous jit'd version leaked a tracer into the shape).
    B, H = state.shape
    return jnp.zeros((B, Hp), jnp.float32).at[:, :H].set(state.astype(jnp.float32))


def decoder_decode(tokens, hidden, prep, t_chunk=4):
    """Run T decode steps for B streams: grid over T-chunks, in-kernel step loop.

    tokens: int32 (T, B) token ids.
    hidden: (h0, c0), each (B, H) f32 (initHidden() == zeros).
    Returns: (log_probs (T, B, V), (h_T (B, H), c_T (B, H))).
    """
    h0, c0 = hidden
    T, B = tokens.shape
    H, V, Hp, Vp = prep["H"], prep["V"], prep["Hp"], prep["Vp"]
    assert T % t_chunk == 0, "T must be a multiple of the chunk size"
    num_chunks = T // t_chunk

    tok = tokens.astype(jnp.int32)
    h0p = _pad_state(h0, Hp)
    c0p = _pad_state(c0, Hp)

    grid_spec = pltpu.PrefetchScalarGridSpec(
        num_scalar_prefetch=1,                       # tokens -> SMEM
        grid=(num_chunks,),
        in_specs=[
            pl.BlockSpec((B, Hp), lambda i, tok: (0, 0)),           # h0 (resident)
            pl.BlockSpec((B, Hp), lambda i, tok: (0, 0)),           # c0 (resident)
            pl.BlockSpec((Vp, Hp), lambda i, tok: (0, 0)),          # embedding (resident)
            pl.BlockSpec((Hp, 4 * Hp), lambda i, tok: (0, 0)),      # W_ih (resident, bf16)
            pl.BlockSpec((Hp, 4 * Hp), lambda i, tok: (0, 0)),      # W_hh (resident, bf16)
            pl.BlockSpec((1, 4 * Hp), lambda i, tok: (0, 0)),       # fused gate bias
            pl.BlockSpec((Hp, Vp), lambda i, tok: (0, 0)),          # W_out (resident, bf16)
            pl.BlockSpec((1, Vp), lambda i, tok: (0, 0)),           # output bias
        ],
        out_specs=(
            pl.BlockSpec((t_chunk, B, Vp), lambda i, tok: (i, 0, 0)),  # per-chunk log-probs
            pl.BlockSpec((B, Hp), lambda i, tok: (0, 0)),              # h state (carried)
            pl.BlockSpec((B, Hp), lambda i, tok: (0, 0)),              # c state (carried)
        ),
    )

    logp_pad, h_pad, c_pad = pl.pallas_call(
        decoder_kernel,
        out_shape=(
            jax.ShapeDtypeStruct((T, B, Vp), jnp.float32),
            jax.ShapeDtypeStruct((B, Hp), jnp.float32),
            jax.ShapeDtypeStruct((B, Hp), jnp.float32),
        ),
        grid_spec=grid_spec,
        compiler_params=pltpu.CompilerParams(
            dimension_semantics=("arbitrary",)),     # recurrent over chunks -> sequential
    )(tok, h0p, c0p, prep["emb"], prep["w_ih"], prep["w_hh"], prep["b"],
      prep["w_out"], prep["b_out"])

    return logp_pad[:, :, :V], (h_pad[:, :H], c_pad[:, :H])


def decoder_decode_ref(tokens, hidden, params):
    """Pure-JAX reference (same bf16 weight casts, f32 accumulation)."""
    h, c = hidden
    h = h.astype(jnp.float32)
    c = c.astype(jnp.float32)
    H = h.shape[-1]
    w_ih = params["w_ih"].astype(jnp.bfloat16)
    w_hh = params["w_hh"].astype(jnp.bfloat16)
    w_out = params["w_out"].astype(jnp.bfloat16)
    b_gate = (params["b_ih"] + params["b_hh"])[None, :]
    b_out = params["b_out"][None, :]

    outs = []
    for t in range(tokens.shape[0]):
        x = jnp.maximum(params["embedding"][tokens[t]].astype(jnp.float32), 0.0)
        gates = (jnp.dot(x.astype(jnp.bfloat16), w_ih, preferred_element_type=jnp.float32)
                 + jnp.dot(h.astype(jnp.bfloat16), w_hh, preferred_element_type=jnp.float32)
                 + b_gate)
        i_g = jax.nn.sigmoid(gates[:, 0 * H:1 * H])
        f_g = jax.nn.sigmoid(gates[:, 1 * H:2 * H])
        g_g = jnp.tanh(gates[:, 2 * H:3 * H])
        o_g = jax.nn.sigmoid(gates[:, 3 * H:4 * H])
        c = f_g * c + i_g * g_g
        h = o_g * jnp.tanh(c)
        logits = (jnp.dot(h.astype(jnp.bfloat16), w_out,
                          preferred_element_type=jnp.float32) + b_out)
        outs.append(jax.nn.log_softmax(logits, axis=1))
    return jnp.stack(outs, axis=0), (h, c)


if __name__ == "__main__":
    hidden_size = 32    # small stand-in for the module's 256
    output_size = 48    # small stand-in for len(index_to_char)
    B = 16              # batched decode streams (fills packed sublanes)
    T = 8               # decode steps
    T_CHUNK = 4         # steps per grid invocation (in-kernel fori_loop)

    key = jax.random.PRNGKey(0)
    pkey, tkey = jax.random.split(key)
    params = make_params(pkey, hidden_size, output_size)
    prep = prepare_decoder_params(params, hidden_size, output_size)

    tokens = jax.random.randint(tkey, (T, B), 0, output_size, dtype=jnp.int32)
    # initHidden() equivalent (zeros); recurrence over T steps makes states nonzero.
    h0 = jnp.zeros((B, hidden_size), jnp.float32)
    c0 = jnp.zeros((B, hidden_size), jnp.float32)

    logp, (h_T, c_T) = decoder_decode(tokens, (h0, c0), prep, t_chunk=T_CHUNK)
    jax.block_until_ready((logp, h_T, c_T))

    logp_r, (h_r, c_r) = decoder_decode_ref(tokens, (h0, c0), params)

    assert logp.shape == (T, B, output_size)
    assert h_T.shape == (B, hidden_size) and c_T.shape == (B, hidden_size)
    assert jnp.allclose(logp, logp_r, atol=2e-3, rtol=2e-3)
    assert jnp.allclose(h_T, h_r, atol=2e-3, rtol=2e-3)
    assert jnp.allclose(c_T, c_r, atol=2e-3, rtol=2e-3)
    # log-probs must normalize per row
    assert jnp.allclose(jnp.sum(jnp.exp(logp), axis=-1), 1.0, atol=1e-3)

    print("KERNEL_OK")
</pallas_src>

<mosaic_0001>
module attributes {stable_mosaic.version = 11 : i64} {
  func.func @decoder_kernel(%arg0: i32, %arg1: memref<8x16xi32, #tpu.memory_space<smem>>, %arg2: memref<16x128xf32, #tpu.memory_space<vmem>>, %arg3: memref<16x128xf32, #tpu.memory_space<vmem>>, %arg4: memref<128x128xf32, #tpu.memory_space<vmem>>, %arg5: memref<128x512xbf16, #tpu.memory_space<vmem>>, %arg6: memref<128x512xbf16, #tpu.memory_space<vmem>>, %arg7: memref<1x512xf32, #tpu.memory_space<vmem>>, %arg8: memref<128x128xbf16, #tpu.memory_space<vmem>>, %arg9: memref<1x128xf32, #tpu.memory_space<vmem>>, %arg10: memref<4x16x128xf32, #tpu.memory_space<vmem>>, %arg11: memref<16x128xf32, #tpu.memory_space<vmem>>, %arg12: memref<16x128xf32, #tpu.memory_space<vmem>>) attributes {dimension_semantics = [#tpu.dimension_semantics<arbitrary>], iteration_bounds = array<i64: 2>, scalar_prefetch = 1 : i64, scratch_operands = 0 : i64, tpu.core_type = #tpu.core_type<tc>, window_params = [{pipeline_mode = #tpu.pipeline_mode<synchronous>, transform_indices = @transform_0, window_bounds = array<i64: 16, 128>}, {pipeline_mode = #tpu.pipeline_mode<synchronous>, transform_indices = @transform_1, window_bounds = array<i64: 16, 128>}, {pipeline_mode = #tpu.pipeline_mode<synchronous>, transform_indices = @transform_2, window_bounds = array<i64: 128, 128>}, {pipeline_mode = #tpu.pipeline_mode<synchronous>, transform_indices = @transform_3, window_bounds = array<i64: 128, 512>}, {pipeline_mode = #tpu.pipeline_mode<synchronous>, transform_indices = @transform_4, window_bounds = array<i64: 128, 512>}, {pipeline_mode = #tpu.pipeline_mode<synchronous>, transform_indices = @transform_5, window_bounds = array<i64: 1, 512>}, {pipeline_mode = #tpu.pipeline_mode<synchronous>, transform_indices = @transform_6, window_bounds = array<i64: 128, 128>}, {pipeline_mode = #tpu.pipeline_mode<synchronous>, transform_indices = @transform_7, window_bounds = array<i64: 1, 128>}, {transform_indices = @transform_8, window_bounds = array<i64: 4, 16, 128>}, {pipeline_mode = #tpu.pipeline_mode<synchronous>, transform_indices = @transform_9, window_bounds = array<i64: 16, 128>}, {pipeline_mode = #tpu.pipeline_mode<synchronous>, transform_indices = @transform_10, window_bounds = array<i64: 16, 128>}]} {
    %c0_i32 = arith.constant 0 : i32
    %0 = arith.cmpi eq, %arg0, %c0_i32 : i32
    %1 = arith.extui %0 : i1 to i32
    %c0_i32_0 = arith.constant 0 : i32
    %2 = arith.cmpi ne, %1, %c0_i32_0 : i32
    scf.if %2 {
      %c0_209 = arith.constant 0 : index
      %c0_210 = arith.constant 0 : index
      %507 = vector.load %arg2[%c0_209, %c0_210] : memref<16x128xf32, #tpu.memory_space<vmem>>, vector<16x128xf32>
      %c0_211 = arith.constant 0 : index
      %c0_212 = arith.constant 0 : index
      %508 = vector.load %arg11[%c0_211, %c0_212] : memref<16x128xf32, #tpu.memory_space<vmem>>, vector<16x128xf32>
      tpu.vector_store %arg11[%c0_211, %c0_212], %507 {strides = array<i32>} : memref<16x128xf32, #tpu.memory_space<vmem>>, vector<16x128xf32>,
      %c0_213 = arith.constant 0 : index
      %c0_214 = arith.constant 0 : index
      %509 = vector.load %arg3[%c0_213, %c0_214] : memref<16x128xf32, #tpu.memory_space<vmem>>, vector<16x128xf32>
      %c0_215 = arith.constant 0 : index
      %c0_216 = arith.constant 0 : index
      %510 = vector.load %arg12[%c0_215, %c0_216] : memref<16x128xf32, #tpu.memory_space<vmem>>, vector<16x128xf32>
      tpu.vector_store %arg12[%c0_215, %c0_216], %509 {strides = array<i32>} : memref<16x128xf32, #tpu.memory_space<vmem>>, vector<16x128xf32>,
    } else {
    }
    %c0 = arith.constant 0 : index
    %c0_1 = arith.constant 0 : index
    %3 = vector.load %arg11[%c0, %c0_1] : memref<16x128xf32, #tpu.memory_space<vmem>>, vector<16x128xf32>
    %c0_2 = arith.constant 0 : index
    %c0_3 = arith.constant 0 : index
    %4 = vector.load %arg12[%c0_2, %c0_3] : memref<16x128xf32, #tpu.memory_space<vmem>>, vector<16x128xf32>
    %c0_i32_4 = arith.constant 0 : i32
    %c4_i32 = arith.constant 4 : i32
    %5 = arith.muli %arg0, %c4_i32 : i32
    %6 = arith.addi %5, %c0_i32_4 : i32
    %7 = arith.index_cast %6 : i32 to index
    %c0_5 = arith.constant 0 : index
    %8 = memref.load %arg1[%7, %c0_5] : memref<8x16xi32, #tpu.memory_space<smem>>
    %9 = arith.index_cast %8 : i32 to index
    %c0_6 = arith.constant 0 : index
    %10 = vector.load %arg4[%9, %c0_6] : memref<128x128xf32, #tpu.memory_space<vmem>>, vector<1x128xf32>
    %11 = arith.index_cast %6 : i32 to index
    %c1 = arith.constant 1 : index
    %12 = memref.load %arg1[%11, %c1] : memref<8x16xi32, #tpu.memory_space<smem>>
    %13 = arith.index_cast %12 : i32 to index
    %c0_7 = arith.constant 0 : index
    %14 = vector.load %arg4[%13, %c0_7] : memref<128x128xf32, #tpu.memory_space<vmem>>, vector<1x128xf32>
    %15 = arith.index_cast %6 : i32 to index
    %c2 = arith.constant 2 : index
    %16 = memref.load %arg1[%15, %c2] : memref<8x16xi32, #tpu.memory_space<smem>>
    %17 = arith.index_cast %16 : i32 to index
    %c0_8 = arith.constant 0 : index
    %18 = vector.load %arg4[%17, %c0_8] : memref<128x128xf32, #tpu.memory_space<vmem>>, vector<1x128xf32>
    %19 = arith.index_cast %6 : i32 to index
    %c3 = arith.constant 3 : index
    %20 = memref.load %arg1[%19, %c3] : memref<8x16xi32, #tpu.memory_space<smem>>
    %21 = arith.index_cast %20 : i32 to index
    %c0_9 = arith.constant 0 : index
    %22 = vector.load %arg4[%21, %c0_9] : memref<128x128xf32, #tpu.memory_space<vmem>>, vector<1x128xf32>
    %23 = arith.index_cast %6 : i32 to index
    %c4 = arith.constant 4 : index
    %24 = memref.load %arg1[%23, %c4] : memref<8x16xi32, #tpu.memory_space<smem>>
    %25 = arith.index_cast %24 : i32 to index
    %c0_10 = arith.constant 0 : index
    %26 = vector.load %arg4[%25, %c0_10] : memref<128x128xf32, #tpu.memory_space<vmem>>, vector<1x128xf32>
    %27 = arith.index_cast %6 : i32 to index
    %c5 = arith.constant 5 : index
    %28 = memref.load %arg1[%27, %c5] : memref<8x16xi32, #tpu.memory_space<smem>>
    %29 = arith.index_cast %28 : i32 to index
    %c0_11 = arith.constant 0 : index
    %30 = vector.load %arg4[%29, %c0_11] : memref<128x128xf32, #tpu.memory_space<vmem>>, vector<1x128xf32>
    %31 = arith.index_cast %6 : i32 to index
    %c6 = arith.constant 6 : index
    %32 = memref.load %arg1[%31, %c6] : memref<8x16xi32, #tpu.memory_space<smem>>
    %33 = arith.index_cast %32 : i32 to index
    %c0_12 = arith.constant 0 : index
    %34 = vector.load %arg4[%33, %c0_12] : memref<128x128xf32, #tpu.memory_space<vmem>>, vector<1x128xf32>
    %35 = arith.index_cast %6 : i32 to index
    %c7 = arith.constant 7 : index
    %36 = memref.load %arg1[%35, %c7] : memref<8x16xi32, #tpu.memory_space<smem>>
    %37 = arith.index_cast %36 : i32 to index
    %c0_13 = arith.constant 0 : index
    %38 = vector.load %arg4[%37, %c0_13] : memref<128x128xf32, #tpu.memory_space<vmem>>, vector<1x128xf32>
    %39 = arith.index_cast %6 : i32 to index
    %c8 = arith.constant 8 : index
    %40 = memref.load %arg1[%39, %c8] : memref<8x16xi32, #tpu.memory_space<smem>>
    %41 = arith.index_cast %40 : i32 to index
    %c0_14 = arith.constant 0 : index
    %42 = vector.load %arg4[%41, %c0_14] : memref<128x128xf32, #tpu.memory_space<vmem>>, vector<1x128xf32>
    %43 = arith.index_cast %6 : i32 to index
    %c9 = arith.constant 9 : index
    %44 = memref.load %arg1[%43, %c9] : memref<8x16xi32, #tpu.memory_space<smem>>
    %45 = arith.index_cast %44 : i32 to index
    %c0_15 = arith.constant 0 : index
    %46 = vector.load %arg4[%45, %c0_15] : memref<128x128xf32, #tpu.memory_space<vmem>>, vector<1x128xf32>
    %47 = arith.index_cast %6 : i32 to index
    %c10 = arith.constant 10 : index
    %48 = memref.load %arg1[%47, %c10] : memref<8x16xi32, #tpu.memory_space<smem>>
    %49 = arith.index_cast %48 : i32 to index
    %c0_16 = arith.constant 0 : index
    %50 = vector.load %arg4[%49, %c0_16] : memref<128x128xf32, #tpu.memory_space<vmem>>, vector<1x128xf32>
    %51 = arith.index_cast %6 : i32 to index
    %c11 = arith.constant 11 : index
    %52 = memref.load %arg1[%51, %c11] : memref<8x16xi32, #tpu.memory_space<smem>>
    %53 = arith.index_cast %52 : i32 to index
    %c0_17 = arith.constant 0 : index
    %54 = vector.load %arg4[%53, %c0_17] : memref<128x128xf32, #tpu.memory_space<vmem>>, vector<1x128xf32>
    %55 = arith.index_cast %6 : i32 to index
    %c12 = arith.constant 12 : index
    %56 = memref.load %arg1[%55, %c12] : memref<8x16xi32, #tpu.memory_space<smem>>
    %57 = arith.index_cast %56 : i32 to index
    %c0_18 = arith.constant 0 : index
    %58 = vector.load %arg4[%57, %c0_18] : memref<128x128xf32, #tpu.memory_space<vmem>>, vector<1x128xf32>
    %59 = arith.index_cast %6 : i32 to index
    %c13 = arith.constant 13 : index
    %60 = memref.load %arg1[%59, %c13] : memref<8x16xi32, #tpu.memory_space<smem>>
    %61 = arith.index_cast %60 : i32 to index
    %c0_19 = arith.constant 0 : index
    %62 = vector.load %arg4[%61, %c0_19] : memref<128x128xf32, #tpu.memory_space<vmem>>, vector<1x128xf32>
    %63 = arith.index_cast %6 : i32 to index
    %c14 = arith.constant 14 : index
    %64 = memref.load %arg1[%63, %c14] : memref<8x16xi32, #tpu.memory_space<smem>>
    %65 = arith.index_cast %64 : i32 to index
    %c0_20 = arith.constant 0 : index
    %66 = vector.load %arg4[%65, %c0_20] : memref<128x128xf32, #tpu.memory_space<vmem>>, vector<1x128xf32>
    %67 = arith.index_cast %6 : i32 to index
    %c15 = arith.constant 15 : index
    %68 = memref.load %arg1[%67, %c15] : memref<8x16xi32, #tpu.memory_space<smem>>
    %69 = arith.index_cast %68 : i32 to index
    %c0_21 = arith.constant 0 : index
    %70 = vector.load %arg4[%69, %c0_21] : memref<128x128xf32, #tpu.memory_space<vmem>>, vector<1x128xf32>
    %71 = tpu.concatenate %10, %14, %18, %22, %26, %30, %34, %38, %42, %46, %50, %54, %58, %62, %66, %70 in 0 : vector<1x128xf32>, vector<1x128xf32>, vector<1x128xf32>, vector<1x128xf32>, vector<1x128xf32>, vector<1x128xf32>, vector<1x128xf32>, vector<1x128xf32>, vector<1x128xf32>, vector<1x128xf32>, vector<1x128xf32>, vector<1x128xf32>, vector<1x128xf32>, vector<1x128xf32>, vector<1x128xf32>, vector<1x128xf32> -> vector<16x128xf32>
    %cst = arith.constant 0.000000e+00 : f32
    %72 = vector.broadcast %cst : f32 to vector<16x128xf32>
    %73 = arith.maximumf %71, %72 : vector<16x128xf32>
    %74 = arith.truncf %73 : vector<16x128xf32> to vector<16x128xbf16>
    %c0_22 = arith.constant 0 : index
    %c0_23 = arith.constant 0 : index
    %75 = vector.load %arg5[%c0_22, %c0_23] : memref<128x512xbf16, #tpu.memory_space<vmem>>, vector<128x512xbf16>
    %cst_24 = arith.constant dense<0.000000e+00> : vector<16x512xf32>
    %76 = tpu.matmul %74, %75, %cst_24 {dimension_numbers = #tpu.dot_dimension_numbers<[1], [0], [0], [1], [0, 0, 1, 1], [], []>} : vector<16x128xbf16>, vector<128x512xbf16>, vector<16x512xf32> -> vector<16x512xf32>
    %77 = arith.truncf %3 : vector<16x128xf32> to vector<16x128xbf16>
    %c0_25 = arith.constant 0 : index
    %c0_26 = arith.constant 0 : index
    %78 = vector.load %arg6[%c0_25, %c0_26] : memref<128x512xbf16, #tpu.memory_space<vmem>>, vector<128x512xbf16>
    %cst_27 = arith.constant dense<0.000000e+00> : vector<16x512xf32>
    %79 = tpu.matmul %77, %78, %cst_27 {dimension_numbers = #tpu.dot_dimension_numbers<[1], [0], [0], [1], [0, 0, 1, 1], [], []>} : vector<16x128xbf16>, vector<128x512xbf16>, vector<16x512xf32> -> vector<16x512xf32>
    %80 = arith.addf %76, %79 : vector<16x512xf32>
    %c0_28 = arith.constant 0 : index
    %c0_29 = arith.constant 0 : index
    %81 = vector.load %arg7[%c0_28, %c0_29] : memref<1x512xf32, #tpu.memory_space<vmem>>, vector<1x512xf32>
    %82 = vector.broadcast %81 : vector<1x512xf32> to vector<16x512xf32>
    %83 = arith.addf %80, %82 : vector<16x512xf32>
    %84 = vector.extract_strided_slice %83 {offsets = [0, 0], sizes = [16, 128], strides = [1, 1]} : vector<16x512xf32> to vector<16x128xf32>
    %85 = arith.negf %84 : vector<16x128xf32>
    %86 = math.exp %85 : vector<16x128xf32>
    %cst_30 = arith.constant 1.000000e+00 : f32
    %87 = vector.broadcast %cst_30 : f32 to vector<16x128xf32>
    %88 = arith.addf %87, %86 : vector<16x128xf32>
    %89 = arith.divf %87, %88 : vector<16x128xf32>
    %90 = vector.extract_strided_slice %83 {offsets = [0, 128], sizes = [16, 128], strides = [1, 1]} : vector<16x512xf32> to vector<16x128xf32>
    %91 = arith.negf %90 : vector<16x128xf32>
    %92 = math.exp %91 : vector<16x128xf32>
    %cst_31 = arith.constant 1.000000e+00 : f32
    %93 = vector.broadcast %cst_31 : f32 to vector<16x128xf32>
    %94 = arith.addf %93, %92 : vector<16x128xf32>
    %95 = arith.divf %93, %94 : vector<16x128xf32>
    %96 = vector.extract_strided_slice %83 {offsets = [0, 256], sizes = [16, 128], strides = [1, 1]} : vector<16x512xf32> to vector<16x128xf32>
    %97 = math.tanh %96 : vector<16x128xf32>
    %98 = vector.extract_strided_slice %83 {offsets = [0, 384], sizes = [16, 128], strides = [1, 1]} : vector<16x512xf32> to vector<16x128xf32>
    %99 = arith.negf %98 : vector<16x128xf32>
    %100 = math.exp %99 : vector<16x128xf32>
    %cst_32 = arith.constant 1.000000e+00 : f32
    %101 = vector.broadcast %cst_32 : f32 to vector<16x128xf32>
    %102 = arith.addf %101, %100 : vector<16x128xf32>
    %103 = arith.divf %101, %102 : vector<16x128xf32>
    %104 = arith.mulf %95, %4 : vector<16x128xf32>
    %105 = arith.mulf %89, %97 : vector<16x128xf32>
    %106 = arith.addf %104, %105 : vector<16x128xf32>
    %107 = math.tanh %106 : vector<16x128xf32>
    %108 = arith.mulf %103, %107 : vector<16x128xf32>
    %109 = arith.truncf %108 : vector<16x128xf32> to vector<16x128xbf16>
    %c0_33 = arith.constant 0 : index
    %c0_34 = arith.constant 0 : index
    %110 = vector.load %arg8[%c0_33, %c0_34] : memref<128x128xbf16, #tpu.memory_space<vmem>>, vector<128x128xbf16>
    %cst_35 = arith.constant dense<0.000000e+00> : vector<16x128xf32>
    %111 = tpu.matmul %109, %110, %cst_35 {dimension_numbers = #tpu.dot_dimension_numbers<[1], [0], [0], [1], [0, 0, 1, 1], [], []>} : vector<16x128xbf16>, vector<128x128xbf16>, vector<16x128xf32> -> vector<16x128xf32>
    %c0_36 = arith.constant 0 : index
    %c0_37 = arith.constant 0 : index
    %112 = vector.load %arg9[%c0_36, %c0_37] : memref<1x128xf32, #tpu.memory_space<vmem>>, vector<1x128xf32>
    %113 = vector.broadcast %112 : vector<1x128xf32> to vector<16x128xf32>
    %114 = arith.addf %111, %113 : vector<16x128xf32>
    %cst_38 = arith.constant dense<0xFF800000> : vector<16xf32>
    %115 = vector.multi_reduction <maximumf>, %114, %cst_38 [1] : vector<16x128xf32> to vector<16xf32>
    %116 = vector.shape_cast %115 : vector<16xf32> to vector<16x1xf32>
    %117 = vector.broadcast %116 : vector<16x1xf32> to vector<16x128xf32>
    %118 = arith.subf %114, %117 : vector<16x128xf32>
    %119 = math.exp %118 : vector<16x128xf32>
    %cst_39 = arith.constant dense<0.000000e+00> : vector<16xf32>
    %120 = vector.multi_reduction <add>, %119, %cst_39 [1] : vector<16x128xf32> to vector<16xf32>
    %121 = vector.shape_cast %120 : vector<16xf32> to vector<16x1xf32>
    %122 = math.log %121 : vector<16x1xf32>
    %123 = arith.addf %122, %116 : vector<16x1xf32>
    %124 = vector.broadcast %123 : vector<16x1xf32> to vector<16x128xf32>
    %125 = arith.subf %114, %124 : vector<16x128xf32>
    %126 = arith.index_cast %c0_i32_4 : i32 to index
    %c0_40 = arith.constant 0 : index
    %c0_41 = arith.constant 0 : index
    %127 = vector.load %arg10[%126, %c0_40, %c0_41] : memref<4x16x128xf32, #tpu.memory_space<vmem>>, vector<1x16x128xf32>
    %128 = vector.shape_cast %127 : vector<1x16x128xf32> to vector<16x128xf32>
    %129 = vector.shape_cast %125 : vector<16x128xf32> to vector<1x16x128xf32>
    tpu.vector_store %arg10[%126, %c0_40, %c0_41], %129 {strides = array<i32>} : memref<4x16x128xf32, #tpu.memory_space<vmem>>, vector<1x16x128xf32>,
    %c1_i32 = arith.constant 1 : i32
    %c4_i32_42 = arith.constant 4 : i32
    %130 = arith.muli %arg0, %c4_i32_42 : i32
    %131 = arith.addi %130, %c1_i32 : i32
    %132 = arith.index_cast %131 : i32 to index
    %c0_43 = arith.constant 0 : index
    %133 = memref.load %arg1[%132, %c0_43] : memref<8x16xi32, #tpu.memory_space<smem>>
    %134 = arith.index_cast %133 : i32 to index
    %c0_44 = arith.constant 0 : index
    %135 = vector.load %arg4[%134, %c0_44] : memref<128x128xf32, #tpu.memory_space<vmem>>, vector<1x128xf32>
    %136 = arith.index_cast %131 : i32 to index
    %c1_45 = arith.constant 1 : index
    %137 = memref.load %arg1[%136, %c1_45] : memref<8x16xi32, #tpu.memory_space<smem>>
    %138 = arith.index_cast %137 : i32 to index
    %c0_46 = arith.constant 0 : index
    %139 = vector.load %arg4[%138, %c0_46] : memref<128x128xf32, #tpu.memory_space<vmem>>, vector<1x128xf32>
    %140 = arith.index_cast %131 : i32 to index
    %c2_47 = arith.constant 2 : index
    %141 = memref.load %arg1[%140, %c2_47] : memref<8x16xi32, #tpu.memory_space<smem>>
    %142 = arith.index_cast %141 : i32 to index
    %c0_48 = arith.constant 0 : index
    %143 = vector.load %arg4[%142, %c0_48] : memref<128x128xf32, #tpu.memory_space<vmem>>, vector<1x128xf32>
    %144 = arith.index_cast %131 : i32 to index
    %c3_49 = arith.constant 3 : index
    %145 = memref.load %arg1[%144, %c3_49] : memref<8x16xi32, #tpu.memory_space<smem>>
    %146 = arith.index_cast %145 : i32 to index
    %c0_50 = arith.constant 0 : index
    %147 = vector.load %arg4[%146, %c0_50] : memref<128x128xf32, #tpu.memory_space<vmem>>, vector<1x128xf32>
    %148 = arith.index_cast %131 : i32 to index
    %c4_51 = arith.constant 4 : index
    %149 = memref.load %arg1[%148, %c4_51] : memref<8x16xi32, #tpu.memory_space<smem>>
    %150 = arith.index_cast %149 : i32 to index
    %c0_52 = arith.constant 0 : index
    %151 = vector.load %arg4[%150, %c0_52] : memref<128x128xf32, #tpu.memory_space<vmem>>, vector<1x128xf32>
    %152 = arith.index_cast %131 : i32 to index
    %c5_53 = arith.constant 5 : index
    %153 = memref.load %arg1[%152, %c5_53] : memref<8x16xi32, #tpu.memory_space<smem>>
    %154 = arith.index_cast %153 : i32 to index
    %c0_54 = arith.constant 0 : index
    %155 = vector.load %arg4[%154, %c0_54] : memref<128x128xf32, #tpu.memory_space<vmem>>, vector<1x128xf32>
    %156 = arith.index_cast %131 : i32 to index
    %c6_55 = arith.constant 6 : index
    %157 = memref.load %arg1[%156, %c6_55] : memref<8x16xi32, #tpu.memory_space<smem>>
    %158 = arith.index_cast %157 : i32 to index
    %c0_56 = arith.constant 0 : index
    %159 = vector.load %arg4[%158, %c0_56] : memref<128x128xf32, #tpu.memory_space<vmem>>, vector<1x128xf32>
    %160 = arith.index_cast %131 : i32 to index
    %c7_57 = arith.constant 7 : index
    %161 = memref.load %arg1[%160, %c7_57] : memref<8x16xi32, #tpu.memory_space<smem>>
    %162 = arith.index_cast %161 : i32 to index
    %c0_58 = arith.constant 0 : index
    %163 = vector.load %arg4[%162, %c0_58] : memref<128x128xf32, #tpu.memory_space<vmem>>, vector<1x128xf32>
    %164 = arith.index_cast %131 : i32 to index
    %c8_59 = arith.constant 8 : index
    %165 = memref.load %arg1[%164, %c8_59] : memref<8x16xi32, #tpu.memory_space<smem>>
    %166 = arith.index_cast %165 : i32 to index
    %c0_60 = arith.constant 0 : index
    %167 = vector.load %arg4[%166, %c0_60] : memref<128x128xf32, #tpu.memory_space<vmem>>, vector<1x128xf32>
    %168 = arith.index_cast %131 : i32 to index
    %c9_61 = arith.constant 9 : index
    %169 = memref.load %arg1[%168, %c9_61] : memref<8x16xi32, #tpu.memory_space<smem>>
    %170 = arith.index_cast %169 : i32 to index
    %c0_62 = arith.constant 0 : index
    %171 = vector.load %arg4[%170, %c0_62] : memref<128x128xf32, #tpu.memory_space<vmem>>, vector<1x128xf32>
    %172 = arith.index_cast %131 : i32 to index
    %c10_63 = arith.constant 10 : index
    %173 = memref.load %arg1[%172, %c10_63] : memref<8x16xi32, #tpu.memory_space<smem>>
    %174 = arith.index_cast %173 : i32 to index
    %c0_64 = arith.constant 0 : index
    %175 = vector.load %arg4[%174, %c0_64] : memref<128x128xf32, #tpu.memory_space<vmem>>, vector<1x128xf32>
    %176 = arith.index_cast %131 : i32 to index
    %c11_65 = arith.constant 11 : index
    %177 = memref.load %arg1[%176, %c11_65] : memref<8x16xi32, #tpu.memory_space<smem>>
    %178 = arith.index_cast %177 : i32 to index
    %c0_66 = arith.constant 0 : index
    %179 = vector.load %arg4[%178, %c0_66] : memref<128x128xf32, #tpu.memory_space<vmem>>, vector<1x128xf32>
    %180 = arith.index_cast %131 : i32 to index
    %c12_67 = arith.constant 12 : index
    %181 = memref.load %arg1[%180, %c12_67] : memref<8x16xi32, #tpu.memory_space<smem>>
    %182 = arith.index_cast %181 : i32 to index
    %c0_68 = arith.constant 0 : index
    %183 = vector.load %arg4[%182, %c0_68] : memref<128x128xf32, #tpu.memory_space<vmem>>, vector<1x128xf32>
    %184 = arith.index_cast %131 : i32 to index
    %c13_69 = arith.constant 13 : index
    %185 = memref.load %arg1[%184, %c13_69] : memref<8x16xi32, #tpu.memory_space<smem>>
    %186 = arith.index_cast %185 : i32 to index
    %c0_70 = arith.constant 0 : index
    %187 = vector.load %arg4[%186, %c0_70] : memref<128x128xf32, #tpu.memory_space<vmem>>, vector<1x128xf32>
    %188 = arith.index_cast %131 : i32 to index
    %c14_71 = arith.constant 14 : index
    %189 = memref.load %arg1[%188, %c14_71] : memref<8x16xi32, #tpu.memory_space<smem>>
    %190 = arith.index_cast %189 : i32 to index
    %c0_72 = arith.constant 0 : index
    %191 = vector.load %arg4[%190, %c0_72] : memref<128x128xf32, #tpu.memory_space<vmem>>, vector<1x128xf32>
    %192 = arith.index_cast %131 : i32 to index
    %c15_73 = arith.constant 15 : index
    %193 = memref.load %arg1[%192, %c15_73] : memref<8x16xi32, #tpu.memory_space<smem>>
    %194 = arith.index_cast %193 : i32 to index
    %c0_74 = arith.constant 0 : index
    %195 = vector.load %arg4[%194, %c0_74] : memref<128x128xf32, #tpu.memory_space<vmem>>, vector<1x128xf32>
    %196 = tpu.concatenate %135, %139, %143, %147, %151, %155, %159, %163, %167, %171, %175, %179, %183, %187, %191, %195 in 0 : vector<1x128xf32>, vector<1x128xf32>, vector<1x128xf32>, vector<1x128xf32>, vector<1x128xf32>, vector<1x128xf32>, vector<1x128xf32>, vector<1x128xf32>, vector<1x128xf32>, vector<1x128xf32>, vector<1x128xf32>, vector<1x128xf32>, vector<1x128xf32>, vector<1x128xf32>, vector<1x128xf32>, vector<1x128xf32> -> vector<16x128xf32>
    %cst_75 = arith.constant 0.000000e+00 : f32
    %197 = vector.broadcast %cst_75 : f32 to vector<16x128xf32>
    %198 = arith.maximumf %196, %197 : vector<16x128xf32>
    %199 = arith.truncf %198 : vector<16x128xf32> to vector<16x128xbf16>
    %c0_76 = arith.constant 0 : index
    %c0_77 = arith.constant 0 : index
    %200 = vector.load %arg5[%c0_76, %c0_77] : memref<128x512xbf16, #tpu.memory_space<vmem>>, vector<128x512xbf16>
    %cst_78 = arith.constant dense<0.000000e+00> : vector<16x512xf32>
    %201 = tpu.matmul %199, %200, %cst_78 {dimension_numbers = #tpu.dot_dimension_numbers<[1], [0], [0], [1], [0, 0, 1, 1], [], []>} : vector<16x128xbf16>, vector<128x512xbf16>, vector<16x512xf32> -> vector<16x512xf32>
    %202 = arith.truncf %108 : vector<16x128xf32> to vector<16x128xbf16>
    %c0_79 = arith.constant 0 : index
    %c0_80 = arith.constant 0 : index
    %203 = vector.load %arg6[%c0_79, %c0_80] : memref<128x512xbf16, #tpu.memory_space<vmem>>, vector<128x512xbf16>
    %cst_81 = arith.constant dense<0.000000e+00> : vector<16x512xf32>
    %204 = tpu.matmul %202, %203, %cst_81 {dimension_numbers = #tpu.dot_dimension_numbers<[1], [0], [0], [1], [0, 0, 1, 1], [], []>} : vector<16x128xbf16>, vector<128x512xbf16>, vector<16x512xf32> -> vector<16x512xf32>
    %205 = arith.addf %201, %204 : vector<16x512xf32>
    %c0_82 = arith.constant 0 : index
    %c0_83 = arith.constant 0 : index
    %206 = vector.load %arg7[%c0_82, %c0_83] : memref<1x512xf32, #tpu.memory_space<vmem>>, vector<1x512xf32>
    %207 = vector.broadcast %206 : vector<1x512xf32> to vector<16x512xf32>
    %208 = arith.addf %205, %207 : vector<16x512xf32>
    %209 = vector.extract_strided_slice %208 {offsets = [0, 0], sizes = [16, 128], strides = [1, 1]} : vector<16x512xf32> to vector<16x128xf32>
    %210 = arith.negf %209 : vector<16x128xf32>
    %211 = math.exp %210 : vector<16x128xf32>
    %cst_84 = arith.constant 1.000000e+00 : f32
    %212 = vector.broadcast %cst_84 : f32 to vector<16x128xf32>
    %213 = arith.addf %212, %211 : vector<16x128xf32>
    %214 = arith.divf %212, %213 : vector<16x128xf32>
    %215 = vector.extract_strided_slice %208 {offsets = [0, 128], sizes = [16, 128], strides = [1, 1]} : vector<16x512xf32> to vector<16x128xf32>
    %216 = arith.negf %215 : vector<16x128xf32>
    %217 = math.exp %216 : vector<16x128xf32>
    %cst_85 = arith.constant 1.000000e+00 : f32
    %218 = vector.broadcast %cst_85 : f32 to vector<16x128xf32>
    %219 = arith.addf %218, %217 : vector<16x128xf32>
    %220 = arith.divf %218, %219 : vector<16x128xf32>
    %221 = vector.extract_strided_slice %208 {offsets = [0, 256], sizes = [16, 128], strides = [1, 1]} : vector<16x512xf32> to vector<16x128xf32>
    %222 = math.tanh %221 : vector<16x128xf32>
    %223 = vector.extract_strided_slice %208 {offsets = [0, 384], sizes = [16, 128], strides = [1, 1]} : vector<16x512xf32> to vector<16x128xf32>
    %224 = arith.negf %223 : vector<16x128xf32>
    %225 = math.exp %224 : vector<16x128xf32>
    %cst_86 = arith.constant 1.000000e+00 : f32
    %226 = vector.broadcast %cst_86 : f32 to vector<16x128xf32>
    %227 = arith.addf %226, %225 : vector<16x128xf32>
    %228 = arith.divf %226, %227 : vector<16x128xf32>
    %229 = arith.mulf %220, %106 : vector<16x128xf32>
    %230 = arith.mulf %214, %222 : vector<16x128xf32>
    %231 = arith.addf %229, %230 : vector<16x128xf32>
    %232 = math.tanh %231 : vector<16x128xf32>
    %233 = arith.mulf %228, %232 : vector<16x128xf32>
    %234 = arith.truncf %233 : vector<16x128xf32> to vector<16x128xbf16>
    %c0_87 = arith.constant 0 : index
    %c0_88 = arith.constant 0 : index
    %235 = vector.load %arg8[%c0_87, %c0_88] : memref<128x128xbf16, #tpu.memory_space<vmem>>, vector<128x128xbf16>
    %cst_89 = arith.constant dense<0.000000e+00> : vector<16x128xf32>
    %236 = tpu.matmul %234, %235, %cst_89 {dimension_numbers = #tpu.dot_dimension_numbers<[1], [0], [0], [1], [0, 0, 1, 1], [], []>} : vector<16x128xbf16>, vector<128x128xbf16>, vector<16x128xf32> -> vector<16x128xf32>
    %c0_90 = arith.constant 0 : index
    %c0_91 = arith.constant 0 : index
    %237 = vector.load %arg9[%c0_90, %c0_91] : memref<1x128xf32, #tpu.memory_space<vmem>>, vector<1x128xf32>
    %238 = vector.broadcast %237 : vector<1x128xf32> to vector<16x128xf32>
    %239 = arith.addf %236, %238 : vector<16x128xf32>
    %cst_92 = arith.constant dense<0xFF800000> : vector<16xf32>
    %240 = vector.multi_reduction <maximumf>, %239, %cst_92 [1] : vector<16x128xf32> to vector<16xf32>
    %241 = vector.shape_cast %240 : vector<16xf32> to vector<16x1xf32>
    %242 = vector.broadcast %241 : vector<16x1xf32> to vector<16x128xf32>
    %243 = arith.subf %239, %242 : vector<16x128xf32>
    %244 = math.exp %243 : vector<16x128xf32>
    %cst_93 = arith.constant dense<0.000000e+00> : vector<16xf32>
    %245 = vector.multi_reduction <add>, %244, %cst_93 [1] : vector<16x128xf32> to vector<16xf32>
    %246 = vector.shape_cast %245 : vector<16xf32> to vector<16x1xf32>
    %247 = math.log %246 : vector<16x1xf32>
    %248 = arith.addf %247, %241 : vector<16x1xf32>
    %249 = vector.broadcast %248 : vector<16x1xf32> to vector<16x128xf32>
    %250 = arith.subf %239, %249 : vector<16x128xf32>
    %251 = arith.index_cast %c1_i32 : i32 to index
    %c0_94 = arith.constant 0 : index
    %c0_95 = arith.constant 0 : index
    %252 = vector.load %arg10[%251, %c0_94, %c0_95] : memref<4x16x128xf32, #tpu.memory_space<vmem>>, vector<1x16x128xf32>
    %253 = vector.shape_cast %252 : vector<1x16x128xf32> to vector<16x128xf32>
    %254 = vector.shape_cast %250 : vector<16x128xf32> to vector<1x16x128xf32>
    tpu.vector_store %arg10[%251, %c0_94, %c0_95], %254 {strides = array<i32>} : memref<4x16x128xf32, #tpu.memory_space<vmem>>, vector<1x16x128xf32>,
    %c2_i32 = arith.constant 2 : i32
    %c4_i32_96 = arith.constant 4 : i32
    %255 = arith.muli %arg0, %c4_i32_96 : i32
    %256 = arith.addi %255, %c2_i32 : i32
    %257 = arith.index_cast %256 : i32 to index
    %c0_97 = arith.constant 0 : index
    %258 = memref.load %arg1[%257, %c0_97] : memref<8x16xi32, #tpu.memory_space<smem>>
    %259 = arith.index_cast %258 : i32 to index
    %c0_98 = arith.constant 0 : index
    %260 = vector.load %arg4[%259, %c0_98] : memref<128x128xf32, #tpu.memory_space<vmem>>, vector<1x128xf32>
    %261 = arith.index_cast %256 : i32 to index
    %c1_99 = arith.constant 1 : index
    %262 = memref.load %arg1[%261, %c1_99] : memref<8x16xi32, #tpu.memory_space<smem>>
    %263 = arith.index_cast %262 : i32 to index
    %c0_100 = arith.constant 0 : index
    %264 = vector.load %arg4[%263, %c0_100] : memref<128x128xf32, #tpu.memory_space<vmem>>, vector<1x128xf32>
    %265 = arith.index_cast %256 : i32 to index
    %c2_101 = arith.constant 2 : index
    %266 = memref.load %arg1[%265, %c2_101] : memref<8x16xi32, #tpu.memory_space<smem>>
    %267 = arith.index_cast %266 : i32 to index
    %c0_102 = arith.constant 0 : index
    %268 = vector.load %arg4[%267, %c0_102] : memref<128x128xf32, #tpu.memory_space<vmem>>, vector<1x128xf32>
    %269 = arith.index_cast %256 : i32 to index
    %c3_103 = arith.constant 3 : index
    %270 = memref.load %arg1[%269, %c3_103] : memref<8x16xi32, #tpu.memory_space<smem>>
    %271 = arith.index_cast %270 : i32 to index
    %c0_104 = arith.constant 0 : index
    %272 = vector.load %arg4[%271, %c0_104] : memref<128x128xf32, #tpu.memory_space<vmem>>, vector<1x128xf32>
    %273 = arith.index_cast %256 : i32 to index
    %c4_105 = arith.constant 4 : index
    %274 = memref.load %arg1[%273, %c4_105] : memref<8x16xi32, #tpu.memory_space<smem>>
    %275 = arith.index_cast %274 : i32 to index
    %c0_106 = arith.constant 0 : index
    %276 = vector.load %arg4[%275, %c0_106] : memref<128x128xf32, #tpu.memory_space<vmem>>, vector<1x128xf32>
    %277 = arith.index_cast %256 : i32 to index
    %c5_107 = arith.constant 5 : index
    %278 = memref.load %arg1[%277, %c5_107] : memref<8x16xi32, #tpu.memory_space<smem>>
    %279 = arith.index_cast %278 : i32 to index
    %c0_108 = arith.constant 0 : index
    %280 = vector.load %arg4[%279, %c0_108] : memref<128x128xf32, #tpu.memory_space<vmem>>, vector<1x128xf32>
    %281 = arith.index_cast %256 : i32 to index
    %c6_109 = arith.constant 6 : index
    %282 = memref.load %arg1[%281, %c6_109] : memref<8x16xi32, #tpu.memory_space<smem>>
    %283 = arith.index_cast %282 : i32 to index
    %c0_110 = arith.constant 0 : index
    %284 = vector.load %arg4[%283, %c0_110] : memref<128x128xf32, #tpu.memory_space<vmem>>, vector<1x128xf32>
    %285 = arith.index_cast %256 : i32 to index
    %c7_111 = arith.constant 7 : index
    %286 = memref.load %arg1[%285, %c7_111] : memref<8x16xi32, #tpu.memory_space<smem>>
    %287 = arith.index_cast %286 : i32 to index
    %c0_112 = arith.constant 0 : index
    %288 = vector.load %arg4[%287, %c0_112] : memref<128x128xf32, #tpu.memory_space<vmem>>, vector<1x128xf32>
    %289 = arith.index_cast %256 : i32 to index
    %c8_113 = arith.constant 8 : index
    %290 = memref.load %arg1[%289, %c8_113] : memref<8x16xi32, #tpu.memory_space<smem>>
    %291 = arith.index_cast %290 : i32 to index
    %c0_114 = arith.constant 0 : index
    %292 = vector.load %arg4[%291, %c0_114] : memref<128x128xf32, #tpu.memory_space<vmem>>, vector<1x128xf32>
    %293 = arith.index_cast %256 : i32 to index
    %c9_115 = arith.constant 9 : index
    %294 = memref.load %arg1[%293, %c9_115] : memref<8x16xi32, #tpu.memory_space<smem>>
    %295 = arith.index_cast %294 : i32 to index
    %c0_116 = arith.constant 0 : index
    %296 = vector.load %arg4[%295, %c0_116] : memref<128x128xf32, #tpu.memory_space<vmem>>, vector<1x128xf32>
    %297 = arith.index_cast %256 : i32 to index
    %c10_117 = arith.constant 10 : index
    %298 = memref.load %arg1[%297, %c10_117] : memref<8x16xi32, #tpu.memory_space<smem>>
    %299 = arith.index_cast %298 : i32 to index
    %c0_118 = arith.constant 0 : index
    %300 = vector.load %arg4[%299, %c0_118] : memref<128x128xf32, #tpu.memory_space<vmem>>, vector<1x128xf32>
    %301 = arith.index_cast %256 : i32 to index
    %c11_119 = arith.constant 11 : index
    %302 = memref.load %arg1[%301, %c11_119] : memref<8x16xi32, #tpu.memory_space<smem>>
    %303 = arith.index_cast %302 : i32 to index
    %c0_120 = arith.constant 0 : index
    %304 = vector.load %arg4[%303, %c0_120] : memref<128x128xf32, #tpu.memory_space<vmem>>, vector<1x128xf32>
    %305 = arith.index_cast %256 : i32 to index
    %c12_121 = arith.constant 12 : index
    %306 = memref.load %arg1[%305, %c12_121] : memref<8x16xi32, #tpu.memory_space<smem>>
    %307 = arith.index_cast %306 : i32 to index
    %c0_122 = arith.constant 0 : index
    %308 = vector.load %arg4[%307, %c0_122] : memref<128x128xf32, #tpu.memory_space<vmem>>, vector<1x128xf32>
    %309 = arith.index_cast %256 : i32 to index
    %c13_123 = arith.constant 13 : index
    %310 = memref.load %arg1[%309, %c13_123] : memref<8x16xi32, #tpu.memory_space<smem>>
    %311 = arith.index_cast %310 : i32 to index
    %c0_124 = arith.constant 0 : index
    %312 = vector.load %arg4[%311, %c0_124] : memref<128x128xf32, #tpu.memory_space<vmem>>, vector<1x128xf32>
    %313 = arith.index_cast %256 : i32 to index
    %c14_125 = arith.constant 14 : index
    %314 = memref.load %arg1[%313, %c14_125] : memref<8x16xi32, #tpu.memory_space<smem>>
    %315 = arith.index_cast %314 : i32 to index
    %c0_126 = arith.constant 0 : index
    %316 = vector.load %arg4[%315, %c0_126] : memref<128x128xf32, #tpu.memory_space<vmem>>, vector<1x128xf32>
    %317 = arith.index_cast %256 : i32 to index
    %c15_127 = arith.constant 15 : index
    %318 = memref.load %arg1[%317, %c15_127] : memref<8x16xi32, #tpu.memory_space<smem>>
    %319 = arith.index_cast %318 : i32 to index
    %c0_128 = arith.constant 0 : index
    %320 = vector.load %arg4[%319, %c0_128] : memref<128x128xf32, #tpu.memory_space<vmem>>, vector<1x128xf32>
    %321 = tpu.concatenate %260, %264, %268, %272, %276, %280, %284, %288, %292, %296, %300, %304, %308, %312, %316, %320 in 0 : vector<1x128xf32>, vector<1x128xf32>, vector<1x128xf32>, vector<1x128xf32>, vector<1x128xf32>, vector<1x128xf32>, vector<1x128xf32>, vector<1x128xf32>, vector<1x128xf32>, vector<1x128xf32>, vector<1x128xf32>, vector<1x128xf32>, vector<1x128xf32>, vector<1x128xf32>, vector<1x128xf32>, vector<1x128xf32> -> vector<16x128xf32>
    %cst_129 = arith.constant 0.000000e+00 : f32
    %322 = vector.broadcast %cst_129 : f32 to vector<16x128xf32>
    %323 = arith.maximumf %321, %322 : vector<16x128xf32>
    %324 = arith.truncf %323 : vector<16x128xf32> to vector<16x128xbf16>
    %c0_130 = arith.constant 0 : index
    %c0_131 = arith.constant 0 : index
    %325 = vector.load %arg5[%c0_130, %c0_131] : memref<128x512xbf16, #tpu.memory_space<vmem>>, vector<128x512xbf16>
    %cst_132 = arith.constant dense<0.000000e+00> : vector<16x512xf32>
    %326 = tpu.matmul %324, %325, %cst_132 {dimension_numbers = #tpu.dot_dimension_numbers<[1], [0], [0], [1], [0, 0, 1, 1], [], []>} : vector<16x128xbf16>, vector<128x512xbf16>, vector<16x512xf32> -> vector<16x512xf32>
    %327 = arith.truncf %233 : vector<16x128xf32> to vector<16x128xbf16>
    %c0_133 = arith.constant 0 : index
    %c0_134 = arith.constant 0 : index
    %328 = vector.load %arg6[%c0_133, %c0_134] : memref<128x512xbf16, #tpu.memory_space<vmem>>, vector<128x512xbf16>
    %cst_135 = arith.constant dense<0.000000e+00> : vector<16x512xf32>
    %329 = tpu.matmul %327, %328, %cst_135 {dimension_numbers = #tpu.dot_dimension_numbers<[1], [0], [0], [1], [0, 0, 1, 1], [], []>} : vector<16x128xbf16>, vector<128x512xbf16>, vector<16x512xf32> -> vector<16x512xf32>
    %330 = arith.addf %326, %329 : vector<16x512xf32>
    %c0_136 = arith.constant 0 : index
    %c0_137 = arith.constant 0 : index
    %331 = vector.load %arg7[%c0_136, %c0_137] : memref<1x512xf32, #tpu.memory_space<vmem>>, vector<1x512xf32>
    %332 = vector.broadcast %331 : vector<1x512xf32> to vector<16x512xf32>
    %333 = arith.addf %330, %332 : vector<16x512xf32>
    %334 = vector.extract_strided_slice %333 {offsets = [0, 0], sizes = [16, 128], strides = [1, 1]} : vector<16x512xf32> to vector<16x128xf32>
    %335 = arith.negf %334 : vector<16x128xf32>
    %336 = math.exp %335 : vector<16x128xf32>
    %cst_138 = arith.constant 1.000000e+00 : f32
    %337 = vector.broadcast %cst_138 : f32 to vector<16x128xf32>
    %338 = arith.addf %337, %336 : vector<16x128xf32>
    %339 = arith.divf %337, %338 : vector<16x128xf32>
    %340 = vector.extract_strided_slice %333 {offsets = [0, 128], sizes = [16, 128], strides = [1, 1]} : vector<16x512xf32> to vector<16x128xf32>
    %341 = arith.negf %340 : vector<16x128xf32>
    %342 = math.exp %341 : vector<16x128xf32>
    %cst_139 = arith.constant 1.000000e+00 : f32
    %343 = vector.broadcast %cst_139 : f32 to vector<16x128xf32>
    %344 = arith.addf %343, %342 : vector<16x128xf32>
    %345 = arith.divf %343, %344 : vector<16x128xf32>
    %346 = vector.extract_strided_slice %333 {offsets = [0, 256], sizes = [16, 128], strides = [1, 1]} : vector<16x512xf32> to vector<16x128xf32>
    %347 = math.tanh %346 : vector<16x128xf32>
    %348 = vector.extract_strided_slice %333 {offsets = [0, 384], sizes = [16, 128], strides = [1, 1]} : vector<16x512xf32> to vector<16x128xf32>
    %349 = arith.negf %348 : vector<16x128xf32>
    %350 = math.exp %349 : vector<16x128xf32>
    %cst_140 = arith.constant 1.000000e+00 : f32
    %351 = vector.broadcast %cst_140 : f32 to vector<16x128xf32>
    %352 = arith.addf %351, %350 : vector<16x128xf32>
    %353 = arith.divf %351, %352 : vector<16x128xf32>
    %354 = arith.mulf %345, %231 : vector<16x128xf32>
    %355 = arith.mulf %339, %347 : vector<16x128xf32>
    %356 = arith.addf %354, %355 : vector<16x128xf32>
    %357 = math.tanh %356 : vector<16x128xf32>
    %358 = arith.mulf %353, %357 : vector<16x128xf32>
    %359 = arith.truncf %358 : vector<16x128xf32> to vector<16x128xbf16>
    %c0_141 = arith.constant 0 : index
    %c0_142 = arith.constant 0 : index
    %360 = vector.load %arg8[%c0_141, %c0_142] : memref<128x128xbf16, #tpu.memory_space<vmem>>, vector<128x128xbf16>
    %cst_143 = arith.constant dense<0.000000e+00> : vector<16x128xf32>
    %361 = tpu.matmul %359, %360, %cst_143 {dimension_numbers = #tpu.dot_dimension_numbers<[1], [0], [0], [1], [0, 0, 1, 1], [], []>} : vector<16x128xbf16>, vector<128x128xbf16>, vector<16x128xf32> -> vector<16x128xf32>
    %c0_144 = arith.constant 0 : index
    %c0_145 = arith.constant 0 : index
    %362 = vector.load %arg9[%c0_144, %c0_145] : memref<1x128xf32, #tpu.memory_space<vmem>>, vector<1x128xf32>
    %363 = vector.broadcast %362 : vector<1x128xf32> to vector<16x128xf32>
    %364 = arith.addf %361, %363 : vector<16x128xf32>
    %cst_146 = arith.constant dense<0xFF800000> : vector<16xf32>
    %365 = vector.multi_reduction <maximumf>, %364, %cst_146 [1] : vector<16x128xf32> to vector<16xf32>
    %366 = vector.shape_cast %365 : vector<16xf32> to vector<16x1xf32>
    %367 = vector.broadcast %366 : vector<16x1xf32> to vector<16x128xf32>
    %368 = arith.subf %364, %367 : vector<16x128xf32>
    %369 = math.exp %368 : vector<16x128xf32>
    %cst_147 = arith.constant dense<0.000000e+00> : vector<16xf32>
    %370 = vector.multi_reduction <add>, %369, %cst_147 [1] : vector<16x128xf32> to vector<16xf32>
    %371 = vector.shape_cast %370 : vector<16xf32> to vector<16x1xf32>
    %372 = math.log %371 : vector<16x1xf32>
    %373 = arith.addf %372, %366 : vector<16x1xf32>
    %374 = vector.broadcast %373 : vector<16x1xf32> to vector<16x128xf32>
    %375 = arith.subf %364, %374 : vector<16x128xf32>
    %376 = arith.index_cast %c2_i32 : i32 to index
    %c0_148 = arith.constant 0 : index
    %c0_149 = arith.constant 0 : index
    %377 = vector.load %arg10[%376, %c0_148, %c0_149] : memref<4x16x128xf32, #tpu.memory_space<vmem>>, vector<1x16x128xf32>
    %378 = vector.shape_cast %377 : vector<1x16x128xf32> to vector<16x128xf32>
    %379 = vector.shape_cast %375 : vector<16x128xf32> to vector<1x16x128xf32>
    tpu.vector_store %arg10[%376, %c0_148, %c0_149], %379 {strides = array<i32>} : memref<4x16x128xf32, #tpu.memory_space<vmem>>, vector<1x16x128xf32>,
    %c3_i32 = arith.constant 3 : i32
    %c4_i32_150 = arith.constant 4 : i32
    %380 = arith.muli %arg0, %c4_i32_150 : i32
    %381 = arith.addi %380, %c3_i32 : i32
    %382 = arith.index_cast %381 : i32 to index
    %c0_151 = arith.constant 0 : index
    %383 = memref.load %arg1[%382, %c0_151] : memref<8x16xi32, #tpu.memory_space<smem>>
    %384 = arith.index_cast %383 : i32 to index
    %c0_152 = arith.constant 0 : index
    %385 = vector.load %arg4[%384, %c0_152] : memref<128x128xf32, #tpu.memory_space<vmem>>, vector<1x128xf32>
    %386 = arith.index_cast %381 : i32 to index
    %c1_153 = arith.constant 1 : index
    %387 = memref.load %arg1[%386, %c1_153] : memref<8x16xi32, #tpu.memory_space<smem>>
    %388 = arith.index_cast %387 : i32 to index
    %c0_154 = arith.constant 0 : index
    %389 = vector.load %arg4[%388, %c0_154] : memref<128x128xf32, #tpu.memory_space<vmem>>, vector<1x128xf32>
    %390 = arith.index_cast %381 : i32 to index
    %c2_155 = arith.constant 2 : index
    %391 = memref.load %arg1[%390, %c2_155] : memref<8x16xi32, #tpu.memory_space<smem>>
    %392 = arith.index_cast %391 : i32 to index
    %c0_156 = arith.constant 0 : index
    %393 = vector.load %arg4[%392, %c0_156] : memref<128x128xf32, #tpu.memory_space<vmem>>, vector<1x128xf32>
    %394 = arith.index_cast %381 : i32 to index
    %c3_157 = arith.constant 3 : index
    %395 = memref.load %arg1[%394, %c3_157] : memref<8x16xi32, #tpu.memory_space<smem>>
    %396 = arith.index_cast %395 : i32 to index
    %c0_158 = arith.constant 0 : index
    %397 = vector.load %arg4[%396, %c0_158] : memref<128x128xf32, #tpu.memory_space<vmem>>, vector<1x128xf32>
    %398 = arith.index_cast %381 : i32 to index
    %c4_159 = arith.constant 4 : index
    %399 = memref.load %arg1[%398, %c4_159] : memref<8x16xi32, #tpu.memory_space<smem>>
    %400 = arith.index_cast %399 : i32 to index
    %c0_160 = arith.constant 0 : index
    %401 = vector.load %arg4[%400, %c0_160] : memref<128x128xf32, #tpu.memory_space<vmem>>, vector<1x128xf32>
    %402 = arith.index_cast %381 : i32 to index
    %c5_161 = arith.constant 5 : index
    %403 = memref.load %arg1[%402, %c5_161] : memref<8x16xi32, #tpu.memory_space<smem>>
    %404 = arith.index_cast %403 : i32 to index
    %c0_162 = arith.constant 0 : index
    %405 = vector.load %arg4[%404, %c0_162] : memref<128x128xf32, #tpu.memory_space<vmem>>, vector<1x128xf32>
    %406 = arith.index_cast %381 : i32 to index
    %c6_163 = arith.constant 6 : index
    %407 = memref.load %arg1[%406, %c6_163] : memref<8x16xi32, #tpu.memory_space<smem>>
    %408 = arith.index_cast %407 : i32 to index
    %c0_164 = arith.constant 0 : index
    %409 = vector.load %arg4[%408, %c0_164] : memref<128x128xf32, #tpu.memory_space<vmem>>, vector<1x128xf32>
    %410 = arith.index_cast %381 : i32 to index
    %c7_165 = arith.constant 7 : index
    %411 = memref.load %arg1[%410, %c7_165] : memref<8x16xi32, #tpu.memory_space<smem>>
    %412 = arith.index_cast %411 : i32 to index
    %c0_166 = arith.constant 0 : index
    %413 = vector.load %arg4[%412, %c0_166] : memref<128x128xf32, #tpu.memory_space<vmem>>, vector<1x128xf32>
    %414 = arith.index_cast %381 : i32 to index
    %c8_167 = arith.constant 8 : index
    %415 = memref.load %arg1[%414, %c8_167] : memref<8x16xi32, #tpu.memory_space<smem>>
    %416 = arith.index_cast %415 : i32 to index
    %c0_168 = arith.constant 0 : index
    %417 = vector.load %arg4[%416, %c0_168] : memref<128x128xf32, #tpu.memory_space<vmem>>, vector<1x128xf32>
    %418 = arith.index_cast %381 : i32 to index
    %c9_169 = arith.constant 9 : index
    %419 = memref.load %arg1[%418, %c9_169] : memref<8x16xi32, #tpu.memory_space<smem>>
    %420 = arith.index_cast %419 : i32 to index
    %c0_170 = arith.constant 0 : index
    %421 = vector.load %arg4[%420, %c0_170] : memref<128x128xf32, #tpu.memory_space<vmem>>, vector<1x128xf32>
    %422 = arith.index_cast %381 : i32 to index
    %c10_171 = arith.constant 10 : index
    %423 = memref.load %arg1[%422, %c10_171] : memref<8x16xi32, #tpu.memory_space<smem>>
    %424 = arith.index_cast %423 : i32 to index
    %c0_172 = arith.constant 0 : index
    %425 = vector.load %arg4[%424, %c0_172] : memref<128x128xf32, #tpu.memory_space<vmem>>, vector<1x128xf32>
    %426 = arith.index_cast %381 : i32 to index
    %c11_173 = arith.constant 11 : index
    %427 = memref.load %arg1[%426, %c11_173] : memref<8x16xi32, #tpu.memory_space<smem>>
    %428 = arith.index_cast %427 : i32 to index
    %c0_174 = arith.constant 0 : index
    %429 = vector.load %arg4[%428, %c0_174] : memref<128x128xf32, #tpu.memory_space<vmem>>, vector<1x128xf32>
    %430 = arith.index_cast %381 : i32 to index
    %c12_175 = arith.constant 12 : index
    %431 = memref.load %arg1[%430, %c12_175] : memref<8x16xi32, #tpu.memory_space<smem>>
    %432 = arith.index_cast %431 : i32 to index
    %c0_176 = arith.constant 0 : index
    %433 = vector.load %arg4[%432, %c0_176] : memref<128x128xf32, #tpu.memory_space<vmem>>, vector<1x128xf32>
    %434 = arith.index_cast %381 : i32 to index
    %c13_177 = arith.constant 13 : index
    %435 = memref.load %arg1[%434, %c13_177] : memref<8x16xi32, #tpu.memory_space<smem>>
    %436 = arith.index_cast %435 : i32 to index
    %c0_178 = arith.constant 0 : index
    %437 = vector.load %arg4[%436, %c0_178] : memref<128x128xf32, #tpu.memory_space<vmem>>, vector<1x128xf32>
    %438 = arith.index_cast %381 : i32 to index
    %c14_179 = arith.constant 14 : index
    %439 = memref.load %arg1[%438, %c14_179] : memref<8x16xi32, #tpu.memory_space<smem>>
    %440 = arith.index_cast %439 : i32 to index
    %c0_180 = arith.constant 0 : index
    %441 = vector.load %arg4[%440, %c0_180] : memref<128x128xf32, #tpu.memory_space<vmem>>, vector<1x128xf32>
    %442 = arith.index_cast %381 : i32 to index
    %c15_181 = arith.constant 15 : index
    %443 = memref.load %arg1[%442, %c15_181] : memref<8x16xi32, #tpu.memory_space<smem>>
    %444 = arith.index_cast %443 : i32 to index
    %c0_182 = arith.constant 0 : index
    %445 = vector.load %arg4[%444, %c0_182] : memref<128x128xf32, #tpu.memory_space<vmem>>, vector<1x128xf32>
    %446 = tpu.concatenate %385, %389, %393, %397, %401, %405, %409, %413, %417, %421, %425, %429, %433, %437, %441, %445 in 0 : vector<1x128xf32>, vector<1x128xf32>, vector<1x128xf32>, vector<1x128xf32>, vector<1x128xf32>, vector<1x128xf32>, vector<1x128xf32>, vector<1x128xf32>, vector<1x128xf32>, vector<1x128xf32>, vector<1x128xf32>, vector<1x128xf32>, vector<1x128xf32>, vector<1x128xf32>, vector<1x128xf32>, vector<1x128xf32> -> vector<16x128xf32>
    %cst_183 = arith.constant 0.000000e+00 : f32
    %447 = vector.broadcast %cst_183 : f32 to vector<16x128xf32>
    %448 = arith.maximumf %446, %447 : vector<16x128xf32>
    %449 = arith.truncf %448 : vector<16x128xf32> to vector<16x128xbf16>
    %c0_184 = arith.constant 0 : index
    %c0_185 = arith.constant 0 : index
    %450 = vector.load %arg5[%c0_184, %c0_185] : memref<128x512xbf16, #tpu.memory_space<vmem>>, vector<128x512xbf16>
    %cst_186 = arith.constant dense<0.000000e+00> : vector<16x512xf32>
    %451 = tpu.matmul %449, %450, %cst_186 {dimension_numbers = #tpu.dot_dimension_numbers<[1], [0], [0], [1], [0, 0, 1, 1], [], []>} : vector<16x128xbf16>, vector<128x512xbf16>, vector<16x512xf32> -> vector<16x512xf32>
    %452 = arith.truncf %358 : vector<16x128xf32> to vector<16x128xbf16>
    %c0_187 = arith.constant 0 : index
    %c0_188 = arith.constant 0 : index
    %453 = vector.load %arg6[%c0_187, %c0_188] : memref<128x512xbf16, #tpu.memory_space<vmem>>, vector<128x512xbf16>
    %cst_189 = arith.constant dense<0.000000e+00> : vector<16x512xf32>
    %454 = tpu.matmul %452, %453, %cst_189 {dimension_numbers = #tpu.dot_dimension_numbers<[1], [0], [0], [1], [0, 0, 1, 1], [], []>} : vector<16x128xbf16>, vector<128x512xbf16>, vector<16x512xf32> -> vector<16x512xf32>
    %455 = arith.addf %451, %454 : vector<16x512xf32>
    %c0_190 = arith.constant 0 : index
    %c0_191 = arith.constant 0 : index
    %456 = vector.load %arg7[%c0_190, %c0_191] : memref<1x512xf32, #tpu.memory_space<vmem>>, vector<1x512xf32>
    %457 = vector.broadcast %456 : vector<1x512xf32> to vector<16x512xf32>
    %458 = arith.addf %455, %457 : vector<16x512xf32>
    %459 = vector.extract_strided_slice %458 {offsets = [0, 0], sizes = [16, 128], strides = [1, 1]} : vector<16x512xf32> to vector<16x128xf32>
    %460 = arith.negf %459 : vector<16x128xf32>
    %461 = math.exp %460 : vector<16x128xf32>
    %cst_192 = arith.constant 1.000000e+00 : f32
    %462 = vector.broadcast %cst_192 : f32 to vector<16x128xf32>
    %463 = arith.addf %462, %461 : vector<16x128xf32>
    %464 = arith.divf %462, %463 : vector<16x128xf32>
    %465 = vector.extract_strided_slice %458 {offsets = [0, 128], sizes = [16, 128], strides = [1, 1]} : vector<16x512xf32> to vector<16x128xf32>
    %466 = arith.negf %465 : vector<16x128xf32>
    %467 = math.exp %466 : vector<16x128xf32>
    %cst_193 = arith.constant 1.000000e+00 : f32
    %468 = vector.broadcast %cst_193 : f32 to vector<16x128xf32>
    %469 = arith.addf %468, %467 : vector<16x128xf32>
    %470 = arith.divf %468, %469 : vector<16x128xf32>
    %471 = vector.extract_strided_slice %458 {offsets = [0, 256], sizes = [16, 128], strides = [1, 1]} : vector<16x512xf32> to vector<16x128xf32>
    %472 = math.tanh %471 : vector<16x128xf32>
    %473 = vector.extract_strided_slice %458 {offsets = [0, 384], sizes = [16, 128], strides = [1, 1]} : vector<16x512xf32> to vector<16x128xf32>
    %474 = arith.negf %473 : vector<16x128xf32>
    %475 = math.exp %474 : vector<16x128xf32>
    %cst_194 = arith.constant 1.000000e+00 : f32
    %476 = vector.broadcast %cst_194 : f32 to vector<16x128xf32>
    %477 = arith.addf %476, %475 : vector<16x128xf32>
    %478 = arith.divf %476, %477 : vector<16x128xf32>
    %479 = arith.mulf %470, %356 : vector<16x128xf32>
    %480 = arith.mulf %464, %472 : vector<16x128xf32>
    %481 = arith.addf %479, %480 : vector<16x128xf32>
    %482 = math.tanh %481 : vector<16x128xf32>
    %483 = arith.mulf %478, %482 : vector<16x128xf32>
    %484 = arith.truncf %483 : vector<16x128xf32> to vector<16x128xbf16>
    %c0_195 = arith.constant 0 : index
    %c0_196 = arith.constant 0 : index
    %485 = vector.load %arg8[%c0_195, %c0_196] : memref<128x128xbf16, #tpu.memory_space<vmem>>, vector<128x128xbf16>
    %cst_197 = arith.constant dense<0.000000e+00> : vector<16x128xf32>
    %486 = tpu.matmul %484, %485, %cst_197 {dimension_numbers = #tpu.dot_dimension_numbers<[1], [0], [0], [1], [0, 0, 1, 1], [], []>} : vector<16x128xbf16>, vector<128x128xbf16>, vector<16x128xf32> -> vector<16x128xf32>
    %c0_198 = arith.constant 0 : index
    %c0_199 = arith.constant 0 : index
    %487 = vector.load %arg9[%c0_198, %c0_199] : memref<1x128xf32, #tpu.memory_space<vmem>>, vector<1x128xf32>
    %488 = vector.broadcast %487 : vector<1x128xf32> to vector<16x128xf32>
    %489 = arith.addf %486, %488 : vector<16x128xf32>
    %cst_200 = arith.constant dense<0xFF800000> : vector<16xf32>
    %490 = vector.multi_reduction <maximumf>, %489, %cst_200 [1] : vector<16x128xf32> to vector<16xf32>
    %491 = vector.shape_cast %490 : vector<16xf32> to vector<16x1xf32>
    %492 = vector.broadcast %491 : vector<16x1xf32> to vector<16x128xf32>
    %493 = arith.subf %489, %492 : vector<16x128xf32>
    %494 = math.exp %493 : vector<16x128xf32>
    %cst_201 = arith.constant dense<0.000000e+00> : vector<16xf32>
    %495 = vector.multi_reduction <add>, %494, %cst_201 [1] : vector<16x128xf32> to vector<16xf32>
    %496 = vector.shape_cast %495 : vector<16xf32> to vector<16x1xf32>
    %497 = math.log %496 : vector<16x1xf32>
    %498 = arith.addf %497, %491 : vector<16x1xf32>
    %499 = vector.broadcast %498 : vector<16x1xf32> to vector<16x128xf32>
    %500 = arith.subf %489, %499 : vector<16x128xf32>
    %501 = arith.index_cast %c3_i32 : i32 to index
    %c0_202 = arith.constant 0 : index
    %c0_203 = arith.constant 0 : index
    %502 = vector.load %arg10[%501, %c0_202, %c0_203] : memref<4x16x128xf32, #tpu.memory_space<vmem>>, vector<1x16x128xf32>
    %503 = vector.shape_cast %502 : vector<1x16x128xf32> to vector<16x128xf32>
    %504 = vector.shape_cast %500 : vector<16x128xf32> to vector<1x16x128xf32>
    tpu.vector_store %arg10[%501, %c0_202, %c0_203], %504 {strides = array<i32>} : memref<4x16x128xf32, #tpu.memory_space<vmem>>, vector<1x16x128xf32>,
    %c4_i32_204 = arith.constant 4 : i32
    %c0_205 = arith.constant 0 : index
    %c0_206 = arith.constant 0 : index
    %505 = vector.load %arg11[%c0_205, %c0_206] : memref<16x128xf32, #tpu.memory_space<vmem>>, vector<16x128xf32>
    tpu.vector_store %arg11[%c0_205, %c0_206], %483 {strides = array<i32>} : memref<16x128xf32, #tpu.memory_space<vmem>>, vector<16x128xf32>,
    %c0_207 = arith.constant 0 : index
    %c0_208 = arith.constant 0 : index
    %506 = vector.load %arg12[%c0_207, %c0_208] : memref<16x128xf32, #tpu.memory_space<vmem>>, vector<16x128xf32>
    tpu.vector_store %arg12[%c0_207, %c0_208], %481 {strides = array<i32>} : memref<16x128xf32, #tpu.memory_space<vmem>>, vector<16x128xf32>,
    return
  }
  func.func @transform_0(%arg0: i32, %arg1: memref<8x16xi32, #tpu.memory_space<smem>>) -> (i32, i32) {
    %c0_i32 = arith.constant 0 : i32
    %c0_i32_0 = arith.constant 0 : i32
    %c0_i32_1 = arith.constant 0 : i32
    return %c0_i32, %c0_i32_0 : i32, i32
  }
  func.func @transform_1(%arg0: i32, %arg1: memref<8x16xi32, #tpu.memory_space<smem>>) -> (i32, i32) {
    %c0_i32 = arith.constant 0 : i32
    %c0_i32_0 = arith.constant 0 : i32
    %c0_i32_1 = arith.constant 0 : i32
    return %c0_i32, %c0_i32_0 : i32, i32
  }
  func.func @transform_2(%arg0: i32, %arg1: memref<8x16xi32, #tpu.memory_space<smem>>) -> (i32, i32) {
    %c0_i32 = arith.constant 0 : i32
    %c0_i32_0 = arith.constant 0 : i32
    %c0_i32_1 = arith.constant 0 : i32
    return %c0_i32, %c0_i32_0 : i32, i32
  }
  func.func @transform_3(%arg0: i32, %arg1: memref<8x16xi32, #tpu.memory_space<smem>>) -> (i32, i32) {
    %c0_i32 = arith.constant 0 : i32
    %c0_i32_0 = arith.constant 0 : i32
    %c0_i32_1 = arith.constant 0 : i32
    return %c0_i32, %c0_i32_0 : i32, i32
  }
  func.func @transform_4(%arg0: i32, %arg1: memref<8x16xi32, #tpu.memory_space<smem>>) -> (i32, i32) {
    %c0_i32 = arith.constant 0 : i32
    %c0_i32_0 = arith.constant 0 : i32
    %c0_i32_1 = arith.constant 0 : i32
    return %c0_i32, %c0_i32_0 : i32, i32
  }
  func.func @transform_5(%arg0: i32, %arg1: memref<8x16xi32, #tpu.memory_space<smem>>) -> (i32, i32) {
    %c0_i32 = arith.constant 0 : i32
    %c0_i32_0 = arith.constant 0 : i32
    %c0_i32_1 = arith.constant 0 : i32
    return %c0_i32, %c0_i32_0 : i32, i32
  }
  func.func @transform_6(%arg0: i32, %arg1: memref<8x16xi32, #tpu.memory_space<smem>>) -> (i32, i32) {
    %c0_i32 = arith.constant 0 : i32
    %c0_i32_0 = arith.constant 0 : i32
    %c0_i32_1 = arith.constant 0 : i32
    return %c0_i32, %c0_i32_0 : i32, i32
  }
  func.func @transform_7(%arg0: i32, %arg1: memref<8x16xi32, #tpu.memory_space<smem>>) -> (i32, i32) {
    %c0_i32 = arith.constant 0 : i32
    %c0_i32_0 = arith.constant 0 : i32
    %c0_i32_1 = arith.constant 0 : i32
    return %c0_i32, %c0_i32_0 : i32, i32
  }
  func.func @transform_8(%arg0: i32, %arg1: memref<8x16xi32, #tpu.memory_space<smem>>) -> (i32, i32, i32) {
    %c0_i32 = arith.constant 0 : i32
    %c0_i32_0 = arith.constant 0 : i32
    %c0_i32_1 = arith.constant 0 : i32
    return %arg0, %c0_i32, %c0_i32_0 : i32, i32, i32
  }
  func.func @transform_9(%arg0: i32, %arg1: memref<8x16xi32, #tpu.memory_space<smem>>) -> (i32, i32) {
    %c0_i32 = arith.constant 0 : i32
    %c0_i32_0 = arith.constant 0 : i32
    %c0_i32_1 = arith.constant 0 : i32
    return %c0_i32, %c0_i32_0 : i32, i32
  }
  func.func @transform_10(%arg0: i32, %arg1: memref<8x16xi32, #tpu.memory_space<smem>>) -> (i32, i32) {
    %c0_i32 = arith.constant 0 : i32
    %c0_i32_0 = arith.constant 0 : i32
    %c0_i32_1 = arith.constant 0 : i32
    return %c0_i32, %c0_i32_0 : i32, i32
  }
}

</mosaic_0001>

<bundles_post_ra>
// kernel: tpu_custom_call.1
= control target key start
LH: loop header
LB: loop body
LE: loop exit
PB: predicated region body
PF: predicated region fallthrough
CT: control target
= control target key end

     0   :  { %s5603_s17 = smov [#allocation3]   ;;  %s6860_s0 = inlined_call_operand.hbm [shape: s32[8,16], index: 0, kind: input, shape index: {}]   ;;  %s6861_s1 = inlined_call_operand.hbm [shape: f32[16,128], index: 1, kind: input, shape index: {}]   ;;  %s6862_s2 = inlined_call_operand.hbm [shape: f32[16,128], index: 2, kind: input, shape index: {}]   ;;  %s6863_s3 = inlined_call_operand.hbm [shape: f32[128,128], index: 3, kind: input, shape index: {}]   ;;  %s6864_s4 = inlined_call_operand.hbm [shape: bf16[128,512], index: 4, kind: input, shape index: {}]   ;;  %s6865_s5 = inlined_call_operand.hbm [shape: bf16[128,512], index: 5, kind: input, shape index: {}]   ;;  %s6866_s6 = inlined_call_operand.vmem [shape: f32[1,512], index: 6, kind: input, shape index: {}]   ;;  %s6867_s7 = inlined_call_operand.hbm [shape: bf16[128,128], index: 7, kind: input, shape index: {}]   ;;  %s6868_s8 = inlined_call_operand.vmem [shape: f32[1,128], index: 8, kind: input, shape index: {}]   ;;  %s6869_s9 = inlined_call_operand.hbm [shape: f32[8,16,128], index: 9, kind: output, shape index: {0}]   ;;  %s6870_s10 = inlined_call_operand.hbm [shape: f32[16,128], index: 10, kind: output, shape index: {1}]   ;;  %s6871_s11 = inlined_call_operand.hbm [shape: f32[16,128], index: 11, kind: output, shape index: {2}]  }
   0x1   :  { %6915 = sst [smem:[#allocation51_spill]] %s6861_s1 }
   0x2   :  { %6916 = sst [smem:[#allocation52_spill]] %s6862_s2 }
   0x3   :  { %6917 = sst [smem:[#allocation53_spill]] %s6863_s3 }
   0x4   :  { %6918 = sst [smem:[#allocation54_spill]] %s6864_s4 }
   0x5   :  { %6919 = sst [smem:[#allocation55_spill]] %s6865_s5 }
   0x6   :  { %6920 = sst [smem:[#allocation56_spill]] %s6867_s7 }
   0x7   :  { %6921 = sst [smem:[#allocation57_spill]] %s6869_s9 }
   0x8   :  { %18 = dma.hbm_to_smem %s6860_s0, 128, %s5603_s17, [#allocation2] }
   0x9   :  { %5561 = dma.done.wait [#allocation2], 128 }
   0xa   :  { %5562 = vsyncadd [#allocation2], 4294967168 }
   0xb   :  { %20 = sfence }
   0xc   :  { %21 = vsyncpa [#allocation5], 0 }
   0xd   :  { %22 = vsyncpa [#allocation8], 0 }
   0xe   :  { %23 = vsyncpa [#allocation11], 0 }
   0xf   :  { %24 = vsyncpa [#allocation14], 0 }
  0x10   :  { %25 = vsyncpa [#allocation6], 0 }
  0x11   :  { %27 = vsyncpa [#allocation6 + $0x1], 0 }
  0x12   :  { %28 = vsyncpa [#allocation17], 0  ;;  %s5687_s20 = smov 0   ;;  %s5689_s21 = smov 0  }
  0x13   :  { %s5691_s22 = smov 0   ;;  %s5693_s23 = smov 0  }
  0x14 LB: > { %6922 = sst [smem:[#allocation26_spill]] %s5589_s20  ;;  %s5708_s0 = sadd.s32 4294967295, %s5601_s23   ;;  %s5601_s23 = sphi %s5693_s23, %s7004_s23   ;;  %s5597_s22 = sphi %s5691_s22, %s7009_s22   ;;  %s5593_s21 = sphi %s5689_s21, %s7008_s21   ;;  %s5589_s20 = sphi %s5687_s20, %s7007_s20  }
  0x15   : > { %6923 = sst [smem:[#allocation27_spill]] %s5597_s22  ;;  %s4276_s24 = sadd.s32 4294967294, %s5601_s23  }
  0x16   : > { %6924 = sst [smem:[#allocation28_spill]] %s5601_s23  ;;  %s5712_s25 = sadd.s32 1, %s5601_s23  }
  0x17   : > { %6925 = sst [smem:[#allocation29_spill]] %s5712_s25  ;;  %s209_s26 = sadd.s32 1, %s5597_s22 }
  0x18   : > { %s206_s27 = ssub.s32 %s5601_s23, %s5712_s25  ;;  %p219_p0 = scmp.ne.s32.totalorder %s5597_s22, %s5593_s21 }
  0x19   : > { %p207_p1 = scmp.eq.s32.totalorder %s206_s27, 0  ;;  %p6872_p2 = scmp.eq.s32.totalorder %s5708_s0, 1 }
  0x1a   : > { %p225_p3 = scmp.ne.s32.totalorder %s5593_s21, %s5589_s20  ;;  %p226_p4 = scmp.eq.s32.totalorder %s4276_s24, 1 }
  0x1b   : > { %s5723_s28 = scalar_select %p207_p1, %s5597_s22, %s209_s26  }
  0x1c   : > { %p5727_p5 = por %p6872_p2, %p219_p0  ;;  %p5731_p6 = por %p226_p4, %p225_p3 }
  0x1d   : > { %6926 = sst [smem:[#allocation30_spill]] %s5723_s28  ;;  %p4277_p7 = scmp.ge.s32.totalorder %s5601_s23, 1 }
  0x1e   : > { %s6928_s30 = scalar_select %p5731_p6, 1, 0 }
  0x1f   : > { %p275_p8 = scmp.lt.s32.totalorder %s5601_s23, 3  ;;  %p6877_p10 = scmp.eq.s32.totalorder %s5708_s0, 0 }
  0x20   : > { %6929 = sst [smem:[#allocation31_spill]] %s6928_s30  ;;  %s5604_s13 = smov [#allocation7]  }
  0x21   : > { %p5739_p11 = pnand %p4277_p7, %p275_p8  ;;  %s300_s14 = sshll.u32 %s5604_s13, 4  ;;  %s301_s14 = int_to_ptr.vmem [resolvable:$true] %s300_s14 }
  0x22   : > { %s5605_s16 = smov [#allocation10]   ;;  %s5326_s19 = scalar_lea.vmem %s301_s14, 256 }
  0x23   : > { %p4792_p12 = pneg %p5739_p11  ;;  %s326_s17 = sshll.u32 %s5605_s16, 4  ;;  %s327_s17 = int_to_ptr.vmem [resolvable:$true] %s326_s17 }
  0x24   : > { %p5327_p1 = scmp.ne.s32.totalorder %s301_s14, %s5326_s19  ;;  %p5334_p7 = scmp.lt.s32.totalorder %s301_s14, %s301_s14 }
  0x25   : > { %p5747_p13 = pnand %p6877_p10, %p4792_p12  ;;  %p5335_p8 = scmp.lt.s32.totalorder %s5326_s19, %s5326_s19 }
  0x27   : > { %p5753_p0 = pneg %p5747_p13  ;;  %p5336_p12 = por %p5335_p8, %p5334_p7 }
  0x29   : > { %p5329_p3 = pnand %p5327_p1, %p5753_p0 }
  0x2b   : > { %p5330_p4 = pneg %p5329_p3 }
  0x2d   : > { %p5337_p2 = pnand %p5336_p12, %p5330_p4 }
  0x2f   : > { %5340 = shalt.err (!%p5337_p2)
}
  0x30   : > { %s6873_s24 = smov 128   ;;  %s6875_s26 = smov 8  }
  0x31   : > { %s6933_s2 = sld [smem:[#allocation52_spill]]  ;;  %s5352_s16 = scalar_lea.vmem %s327_s17, 4096 }
  0x32   : > { %p5353_p1 = scmp.ne.s32.totalorder %s327_s17, %s5352_s16  ;;  %p5360_p7 = scmp.lt.s32.totalorder %s327_s17, %s327_s17 }
  0x33   : > { %p5361_p4 = scmp.lt.s32.totalorder %s5352_s16, %s5352_s16 }
  0x34   : > { %p5355_p3 = pnand %p5353_p1, %p5753_p0 }
  0x35   : > { %p5362_p2 = por %p5361_p4, %p5360_p7 }
  0x36   : > { %p5356_p9 = pneg %p5355_p3 }
  0x37   : > { %4798 = dma.hbm_to_vmem [thread:$0]  (!%p5747_p13), %s6933_s2, 256, %s301_s14, [#allocation8], %s6873_s24, %s6873_s24, %s6875_s26  }
  0x38   : > { %p5363_p8 = pnand %p5362_p2, %p5356_p9 }
  0x3a   : > { %5366 = shalt.err (!%p5363_p8)
}
  0x3b   : > { %s6878_s19 = smov 256   ;;  %s6879_s28 = smov 16  }
  0x3c   : > { %s6934_s4 = sld [smem:[#allocation54_spill]]  ;;  %s5610_s13 = smov [#allocation4]  }
  0x3d   : > { %s287_s24 = sshll.u32 %s5610_s13, 4  ;;  %s5611_s26 = smov [#allocation9]   ;;  %s288_s24 = int_to_ptr.vmem [resolvable:$true] %s287_s24 }
  0x3e   : > { %s313_s2 = sshll.u32 %s5611_s26, 4  ;;  %s5378_s16 = scalar_lea.vmem %s288_s24, 256  ;;  %s314_s2 = int_to_ptr.vmem [resolvable:$true] %s313_s2 }
  0x3f   : > { %p5379_p9 = scmp.ne.s32.totalorder %s288_s24, %s5378_s16  ;;  %p5386_p3 = scmp.lt.s32.totalorder %s288_s24, %s288_s24 }
  0x40   : > { %p5387_p7 = scmp.lt.s32.totalorder %s5378_s16, %s5378_s16 }
  0x41   : > { %p5381_p12 = pnand %p5379_p9, %p5753_p0 }
  0x42   : > { %4804 = dma.hbm_to_vmem [thread:$0]  (!%p5747_p13), %s6934_s4, 4096, %s327_s17, [#allocation11], %s6878_s19, %s6878_s19, %s6879_s28  }
  0x43   : > { %p5382_p1 = pneg %p5381_p12  ;;  %p5388_p4 = por %p5387_p7, %p5386_p3 }
  0x45   : > { %p5389_p2 = pnand %p5388_p4, %p5382_p1 }
  0x47   : > { %5392 = shalt.err (!%p5389_p2)
}
  0x48   : > { %s6935_s27 = smov 8   ;;  %s6936_s17 = smov 128  }
  0x49   : > { %s6937_s1 = sld [smem:[#allocation51_spill]]  ;;  %s5404_s26 = scalar_lea.vmem %s314_s2, 2048 }
  0x4a   : > { %p5405_p8 = scmp.ne.s32.totalorder %s314_s2, %s5404_s26  ;;  %p5412_p10 = scmp.lt.s32.totalorder %s314_s2, %s314_s2 }
  0x4b   : > { %p5413_p6 = scmp.lt.s32.totalorder %s5404_s26, %s5404_s26 }
  0x4c   : > { %p5407_p9 = pnand %p5405_p8, %p5753_p0 }
  0x4d   : > { %p5414_p3 = por %p5413_p6, %p5412_p10 }
  0x4e   : > { %p5408_p12 = pneg %p5407_p9 }
  0x4f   : > { %4795 = dma.hbm_to_vmem [thread:$0]  (!%p5747_p13), %s6937_s1, 256, %s288_s24, [#allocation5], %s6936_s17, %s6936_s17, %s6935_s27  }
  0x50   : > { %p5415_p1 = pnand %p5414_p3, %p5408_p12 }
  0x52   : > { %5418 = shalt.err (!%p5415_p1)
}
  0x53   : > { %s6938_s3 = sld [smem:[#allocation53_spill]]  ;;  %s5612_s24 = smov [#allocation12]  }
  0x54   : > { %s339_s14 = sshll.u32 %s5612_s24, 4  ;;  %s5613_s13 = smov [#allocation13]   ;;  %s340_s14 = int_to_ptr.vmem [resolvable:$true] %s339_s14 }
  0x55   : > { %s355_s28 = sshll.u32 %s5613_s13, 4  ;;  %s5430_s26 = scalar_lea.vmem %s340_s14, 4096  ;;  %s356_s28 = int_to_ptr.vmem [resolvable:$true] %s355_s28 }
  0x56   : > { %p5431_p6 = scmp.ne.s32.totalorder %s340_s14, %s5430_s26  ;;  %p5438_p4 = scmp.lt.s32.totalorder %s340_s14, %s340_s14 }
  0x57   : > { %p5439_p2 = scmp.lt.s32.totalorder %s5430_s26, %s5430_s26 }
  0x58   : > { %p5433_p10 = pnand %p5431_p6, %p5753_p0 }
  0x59   : > { %4801 = dma.hbm_to_vmem [thread:$0]  (!%p5747_p13), %s6938_s3, 2048, %s314_s2, [#allocation8], %s6936_s17, %s6936_s17, %s6935_s27  }
  0x5a   : > { %p5434_p7 = pneg %p5433_p10  ;;  %p5440_p8 = por %p5439_p2, %p5438_p4 }
  0x5c   : > { %p5441_p9 = pnand %p5440_p8, %p5434_p7 }
  0x5e   : > { %5444 = shalt.err (!%p5441_p9)
}
  0x5f   : > { %s6939_s19 = smov 16   ;;  %s6940_s2 = smov 256  }
  0x60   : > { %s6941_s5 = sld [smem:[#allocation55_spill]]  ;;  %s5456_s16 = scalar_lea.vmem %s356_s28, 1024 }
  0x61   : > { %p5457_p12 = scmp.ne.s32.totalorder %s356_s28, %s5456_s16  ;;  %p5464_p6 = scmp.lt.s32.totalorder %s356_s28, %s356_s28 }
  0x62   : > { %p5465_p10 = scmp.lt.s32.totalorder %s5456_s16, %s5456_s16 }
  0x63   : > { %p5459_p3 = pnand %p5457_p12, %p5753_p0 }
  0x64   : > { %p5466_p4 = por %p5465_p10, %p5464_p6 }
  0x65   : > { %p5460_p1 = pneg %p5459_p3 }
  0x66   : > { %4807 = dma.hbm_to_vmem [thread:$0]  (!%p5747_p13), %s6941_s5, 4096, %s340_s14, [#allocation11], %s6940_s2, %s6940_s2, %s6939_s19  }
  0x67   : > { %p5467_p7 = pnand %p5466_p4, %p5460_p1 }
  0x69   : > { %5470 = shalt.err (!%p5467_p7)
}
  0x6a   : > { %s5614_s24 = smov 64   ;;  %s5615_s13 = smov 4  }
  0x6b   : > { %s6942_s7 = sld [smem:[#allocation56_spill]] }
  0x6d   : > { %374 = sbr.rel (%p5739_p11) target bundleno = 1900 (0x76c), region = 52 }
  0x71   : > { %4810 = dma.hbm_to_vmem [thread:$0]  (!%p5747_p13), %s6942_s7, 1024, %s356_s28, [#allocation14], %s5614_s24, %s5614_s24, %s5615_s13  }
  0x72   : > { %p6943_p2 = scmp.eq.s32.totalorder %s5708_s0, 0 }
  0x74   : > { %5564 = dma.done.wait (%p6943_p2), [#allocation5], 256   ;;  %p6944_p0 = pmov %p6943_p2 }
  0x76   : > { %5566 = vsyncadd (%p6944_p0), [#allocation5], 4294967040  ;;  %p6945_p8 = pmov %p6944_p0 }
  0x77   : > { %p6946_p9 = pmov %p6944_p0 }
  0x78   : > { %5568 = dma.done.wait (%p6945_p8), [#allocation8], 2304  }
  0x79   : > { %5570 = vsyncadd (%p6946_p9), [#allocation8], 4294964992  ;;  %p6947_p12 = pmov %p6944_p0 }
  0x7a   : > { %p6948_p13 = pmov %p6944_p0 }
  0x7b   : > { %5572 = dma.done.wait (%p6947_p12), [#allocation11], 8192  }
  0x7c   : > { %5574 = vsyncadd (%p6948_p13), [#allocation11], 4294959104  ;;  %p6949_p11 = pmov %p6944_p0 }
  0x7d   : > { %p6950_p3 = pmov %p6944_p0 }
  0x7e   : > { %5576 = dma.done.wait (%p6949_p11), [#allocation14], 1024  }
  0x7f   : > { %5578 = vsyncadd (%p6950_p3), [#allocation14], 4294966272  ;;  %s6880_s1 = sand.u32 1, %s5593_s21   ;;  %p6951_p1 = scmp.ne.s32.totalorder %s5708_s0, 0 }
  0x80   : > { %s4291_s28 = sshll.u32 %s6880_s1, 6 }
  0x81   : > { %s5835_s12 = scalar_lea.vmem [#allocation15], %s4291_s28  ;;  %432 = sbr.rel (%p6951_p1) target bundleno = 137 (0x89), region = 80 }
  0x86   : > { %v433_v0 = vld [vmem:[#allocation4] sm:$0xff]  ;;  %v434_v1 = vld [vmem:[#allocation4 + $0x8] sm:$0xff]  ;;  %v437_v2 = vld [vmem:[#allocation7] sm:$0xff] }
  0x87   : > { %435 = vst [vmem:[#allocation16] sm:$0xff] %v433_v0  ;;  %436 = vst [vmem:[#allocation16 + $0x8] sm:$0xff] %v434_v1  ;;  %v438_v3 = vld [vmem:[#allocation7 + $0x8] sm:$0xff] }
  0x88   : > { %439 = vst [vmem:[#allocation18] sm:$0xff] %v437_v2  ;;  %440 = vst [vmem:[#allocation18 + $0x8] sm:$0xff] %v438_v3 }
  0x89 PF: > { %v5839_v4 = vld [vmem:[#allocation12 + $0xe4] ss:$16 sps:$4 sm:$0xff]   ;;  %v5841_v5 = vld [vmem:[#allocation12 + $0xec] ss:$16 sps:$4 sm:$0xff]   ;;  %v6890_v6 = vmov 0   ;;  %s5858_s15 = sshll.u32 %s5708_s0, 9 }
  0x8a   : > { %833 = vmatprep.mubr.bf16.mxu0 %v6890_v6  ;;  %876 = vmatprep.mubr.bf16.mxu1 %v6890_v6  ;;  %v5846_v7 = vld [vmem:[#allocation12 + $0xe0] ss:$16 sps:$4 sm:$0xff]   ;;  %v4889_v8 = vld [vmem:[#allocation12 + $0xe8] ss:$16 sps:$4 sm:$0xff]   ;;  %v5849_v9 = vld [vmem:[#allocation12 + $0xc4] ss:$16 sps:$4 sm:$0xff]  }
  0x8b   : > { %801 = vmatprep.subr.bf16.mxu0 %v5839_v4  ;;  %844 = vmatprep.subr.bf16.mxu1 %v5841_v5  ;;  %v4892_v10 = vld [vmem:[#allocation12 + $0xcc] ss:$16 sps:$4 sm:$0xff]   ;;  %v5852_v11 = vld [vmem:[#allocation12 + $0xc0] ss:$16 sps:$4 sm:$0xff]   ;;  %v4895_v12 = vld [vmem:[#allocation12 + $0xc8] ss:$16 sps:$4 sm:$0xff]  }
  0x8c   : > { %802 = vmatpush1.bf16.msra.mxu0 %v5846_v7  ;;  %845 = vmatpush1.bf16.msra.mxu1 %v4889_v8  ;;  %v5855_v13 = vld [vmem:[#allocation12 + $0xa4] ss:$16 sps:$4 sm:$0xff]   ;;  %v4898_v14 = vld [vmem:[#allocation12 + $0xac] ss:$16 sps:$4 sm:$0xff]   ;;  %v5860_v15 = vld [vmem:[#allocation12 + $0xa0] ss:$16 sps:$4 sm:$0xff]  }
  0x8d   : > { %803 = vmatprep.subr.bf16.mxu0 %v5849_v9  ;;  %846 = vmatprep.subr.bf16.mxu1 %v4892_v10  ;;  %v4901_v16 = vld [vmem:[#allocation12 + $0xa8] ss:$16 sps:$4 sm:$0xff]   ;;  %v5863_v17 = vld [vmem:[#allocation12 + $0x84] ss:$16 sps:$4 sm:$0xff]   ;;  %v4904_v18 = vld [vmem:[#allocation12 + $0x8c] ss:$16 sps:$4 sm:$0xff]  }
  0x8e   : > { %s450_s18 = sadd.s32 1, %s5858_s15  ;;  %s454_s14 = sadd.s32 2, %s5858_s15  ;;  %v5868_v19 = vld [vmem:[#allocation12 + $0x80] ss:$16 sps:$4 sm:$0xff]   ;;  %v4907_v20 = vld [vmem:[#allocation12 + $0x88] ss:$16 sps:$4 sm:$0xff]  }
  0x8f   : > { %s5871_s19 = sld [smem:[#allocation3 + %s5858_s15]]  ;;  %s458_s2 = sadd.s32 3, %s5858_s15  ;;  %v5875_v21 = vld [vmem:[#allocation12 + $0x64] ss:$16 sps:$4 sm:$0xff]   ;;  %v4910_v22 = vld [vmem:[#allocation12 + $0x6c] ss:$16 sps:$4 sm:$0xff]  }
  0x90   : > { %804 = vmatpush1.bf16.msra.mxu0 %v5852_v11  ;;  %847 = vmatpush1.bf16.msra.mxu1 %v4895_v12  ;;  %s5877_s27 = sld [smem:[#allocation3 + %s450_s18]]  ;;  %v5884_v23 = vld [vmem:[#allocation12 + $0x60] ss:$16 sps:$4 sm:$0xff]   ;;  %v4913_v24 = vld [vmem:[#allocation12 + $0x68] ss:$16 sps:$4 sm:$0xff]   ;;  %s462_s24 = sadd.s32 4, %s5858_s15 }
  0x91   : > { %805 = vmatprep.subr.bf16.mxu0 %v5855_v13  ;;  %848 = vmatprep.subr.bf16.mxu1 %v4898_v14  ;;  %s5880_s17 = sld [smem:[#allocation3 + %s454_s14]]  ;;  %v5888_v25 = vld [vmem:[#allocation12 + $0x44] ss:$16 sps:$4 sm:$0xff]   ;;  %v4916_v26 = vld [vmem:[#allocation12 + $0x4c] ss:$16 sps:$4 sm:$0xff]   ;;  %s466_s26 = sadd.s32 5, %s5858_s15 }
  0x92   : > { %s5882_s16 = sld [smem:[#allocation3 + %s458_s2]]  ;;  %v5895_v27 = vld [vmem:[#allocation12 + $0x40] ss:$16 sps:$4 sm:$0xff]   ;;  %v4919_v28 = vld [vmem:[#allocation12 + $0x48] ss:$16 sps:$4 sm:$0xff]   ;;  %s470_s28 = sadd.s32 6, %s5858_s15 }
  0x93   : > { %s5891_s13 = sld [smem:[#allocation3 + %s462_s24]]  ;;  %v5899_v29 = vld [vmem:[#allocation12 + $0x24] ss:$16 sps:$4 sm:$0xff]   ;;  %v4922_v30 = vld [vmem:[#allocation12 + $0x2c] ss:$16 sps:$4 sm:$0xff]   ;;  %s474_s2 = sadd.s32 7, %s5858_s15 }
  0x94   : > { %806 = vmatpush1.bf16.msra.mxu0 %v5860_v15  ;;  %849 = vmatpush1.bf16.msra.mxu1 %v4901_v16  ;;  %s5901_s18 = sld [smem:[#allocation3 + %s466_s26]]  ;;  %v5907_v31 = vld [vmem:[#allocation12 + $0x20] ss:$16 sps:$4 sm:$0xff]   ;;  %v4925_v32 = vld [vmem:[#allocation12 + $0x28] ss:$16 sps:$4 sm:$0xff]   ;;  %s478_s24 = sadd.s32 8, %s5858_s15 }
  0x95   : > { %807 = vmatprep.subr.bf16.mxu0 %v5863_v17  ;;  %850 = vmatprep.subr.bf16.mxu1 %v4904_v18  ;;  %s5903_s14 = sld [smem:[#allocation3 + %s470_s28]]  ;;  %v5911_v33 = vld [vmem:[#allocation12 + $0x4] ss:$16 sps:$4 sm:$0xff]   ;;  %v4928_v34 = vld [vmem:[#allocation12 + $0xc] ss:$16 sps:$4 sm:$0xff]   ;;  %s482_s26 = sadd.s32 9, %s5858_s15 }
  0x96   : > { %v5914_v35 = vld [vmem:[#allocation12] ss:$16 sps:$4 sm:$0xff]   ;;  %s5916_s28 = sld [smem:[#allocation3 + %s474_s2]]  ;;  %v4931_v36 = vld [vmem:[#allocation12 + $0x8] ss:$16 sps:$4 sm:$0xff]   ;;  %s486_s3 = sadd.s32 10, %s5858_s15 }
  0x97   : > { %s5918_s1 = sld [smem:[#allocation3 + %s478_s24]]  ;;  %v441_v37 = vld [vmem:[#allocation16] sm:$0xff]  ;;  %v442_v38 = vld [vmem:[#allocation16 + $0x8] sm:$0xff]  ;;  %s490_s5 = sadd.s32 11, %s5858_s15  ;;  %vm552_vm0 = vcmask 1040384   ;;  %vm554_vm1 = vcmask 1041408  }
  0x98   : > { %808 = vmatpush1.bf16.msra.mxu0 %v5868_v19  ;;  %851 = vmatpush1.bf16.msra.mxu1 %v4907_v20  ;;  %s5922_s4 = sld [smem:[#allocation3 + %s482_s26]]  ;;  %v5926_v39 = vld [vmem:[#allocation10 + $0xe4] ss:$16 sps:$4 sm:$0xff]   ;;  %v4937_v40 = vld [vmem:[#allocation10 + $0xec] ss:$16 sps:$4 sm:$0xff]   ;;  %s494_s2 = sadd.s32 12, %s5858_s15  ;;  %v608_v41 = vpack.c.bf16 %v442_v38, %v441_v37 }
  0x99   : > { %809 = vmatprep.subr.bf16.mxu0 %v5875_v21  ;;  %852 = vmatprep.subr.bf16.mxu1 %v4910_v22  ;;  %s5929_s24 = sld [smem:[#allocation3 + %s486_s3]]  ;;  %s498_s7 = sadd.s32 13, %s5858_s15  ;;  %v5932_v42 = vld [vmem:[#allocation10 + $0xe0] ss:$16 sps:$4 sm:$0xff]   ;;  %v4935_v43 = vld [vmem:[#allocation10 + $0xe8] ss:$16 sps:$4 sm:$0xff]  }
  0x9a   : > { %s5934_s22 = sld [smem:[#allocation3 + %s490_s5]]  ;;  %s502_s25 = sadd.s32 14, %s5858_s15  ;;  %v5942_v44 = vld [vmem:[#allocation10 + $0xc4] ss:$16 sps:$4 sm:$0xff]   ;;  %v4943_v45 = vld [vmem:[#allocation10 + $0xcc] ss:$16 sps:$4 sm:$0xff]  }
  0x9b   : > { %s5938_s26 = sld [smem:[#allocation3 + %s494_s2]]  ;;  %s506_s30 = sadd.s32 15, %s5858_s15  ;;  %v5951_v46 = vld [vmem:[#allocation10 + $0xc0] ss:$16 sps:$4 sm:$0xff]   ;;  %v4941_v47 = vld [vmem:[#allocation10 + $0xc8] ss:$16 sps:$4 sm:$0xff]  }
  0x9c   : > { %810 = vmatpush1.bf16.msra.mxu0 %v5884_v23  ;;  %853 = vmatpush1.bf16.msra.mxu1 %v4913_v24  ;;  %s5944_s3 = sld [smem:[#allocation3 + %s498_s7]]  ;;  %v5954_v48 = vld [vmem:[#allocation10 + $0xa4] ss:$16 sps:$4 sm:$0xff]   ;;  %v4949_v49 = vld [vmem:[#allocation10 + $0xac] ss:$16 sps:$4 sm:$0xff]   ;;  %vm556_vm2 = vcmask 1042432  }
  0x9d   : > { %811 = vmatprep.subr.bf16.mxu0 %v5888_v25  ;;  %854 = vmatprep.subr.bf16.mxu1 %v4916_v26  ;;  %s5946_s20 = sld [smem:[#allocation3 + %s502_s25]]  ;;  %v5959_v50 = vld [vmem:[#allocation10 + $0xa0] ss:$16 sps:$4 sm:$0xff]   ;;  %v4947_v51 = vld [vmem:[#allocation10 + $0xa8] ss:$16 sps:$4 sm:$0xff]   ;;  %s452_s7 = scalar_lea.vmem [#allocation9], %s5877_s27 }
  0x9e   : > { %s5948_s5 = sld [smem:[#allocation3 + %s506_s30]]  ;;  %v5962_v52 = vld [vmem:[#allocation10 + $0x84] ss:$16 sps:$4 sm:$0xff]   ;;  %v4955_v53 = vld [vmem:[#allocation10 + $0x8c] ss:$16 sps:$4 sm:$0xff]   ;;  %s456_s25 = scalar_lea.vmem [#allocation9], %s5880_s17 }
  0x9f   : > { %v5964_v54 = vld [vmem:[#allocation10 + $0x80] ss:$16 sps:$4 sm:$0xff]   ;;  %v4953_v55 = vld [vmem:[#allocation10 + $0x88] ss:$16 sps:$4 sm:$0xff]   ;;  %v5966_v56 = vld [vmem:[#allocation10 + $0x64] ss:$16 sps:$4 sm:$0xff]  }
  0xa0   : > { %812 = vmatpush1.bf16.msra.mxu0 %v5895_v27  ;;  %855 = vmatpush1.bf16.msra.mxu1 %v4919_v28  ;;  %v4961_v57 = vld [vmem:[#allocation10 + $0x6c] ss:$16 sps:$4 sm:$0xff]   ;;  %v5970_v58 = vld [vmem:[%s452_s7] sm:$0x1]  ;;  %s460_s30 = scalar_lea.vmem [#allocation9], %s5882_s16  ;;  %vm558_vm3 = vcmask 1043456  }
  0xa1   : > { %813 = vmatprep.subr.bf16.mxu0 %v5899_v29  ;;  %856 = vmatprep.subr.bf16.mxu1 %v4922_v30  ;;  %v5973_v59 = vld [vmem:[%s456_s25] sm:$0x1]  ;;  %s464_s2 = scalar_lea.vmem [#allocation9], %s5891_s13  ;;  %s468_s23 = scalar_lea.vmem [#allocation9], %s5901_s18  ;;  %vm560_vm4 = vcmask 1044480   ;;  %vm562_vm5 = vcmask 1045504  }
  0xa2   : > { %v5976_v60 = vld [vmem:[%s460_s30] sm:$0x1]  ;;  %s472_s27 = scalar_lea.vmem [#allocation9], %s5903_s14  ;;  %v4959_v1 = vld [vmem:[#allocation10 + $0x68] ss:$16 sps:$4 sm:$0xff]   ;;  %s476_s17 = scalar_lea.vmem [#allocation9], %s5916_s28 }
  0xa3   : > { %v5980_v61 = vld [vmem:[%s464_s2] sm:$0x1]  ;;  %s484_s16 = scalar_lea.vmem [#allocation9], %s5922_s4  ;;  %s488_s13 = scalar_lea.vmem [#allocation9], %s5929_s24  ;;  %v5995_v10 = vld [vmem:[#allocation10 + $0x44] ss:$16 sps:$4 sm:$0xff]  }
  0xa4   : > { %814 = vmatpush1.bf16.msra.mxu0 %v5907_v31  ;;  %857 = vmatpush1.bf16.msra.mxu1 %v4925_v32  ;;  %v5983_v62 = vld [vmem:[%s468_s23] sm:$0x1]  ;;  %v4967_v12 = vld [vmem:[#allocation10 + $0x4c] ss:$16 sps:$4 sm:$0xff]   ;;  %s448_s23 = scalar_lea.vmem [#allocation9], %s5871_s19  ;;  %s480_s18 = scalar_lea.vmem [#allocation9], %s5918_s1 }
  0xa5   : > { %815 = vmatprep.subr.bf16.mxu0 %v5911_v33  ;;  %858 = vmatprep.subr.bf16.mxu1 %v4928_v34  ;;  %v5986_v63 = vld [vmem:[%s472_s27] sm:$0x1]  ;;  %s492_s14 = scalar_lea.vmem [#allocation9], %s5934_s22  ;;  %s496_s28 = scalar_lea.vmem [#allocation9], %s5938_s26  ;;  %vm564_vm6 = vcmask 1046528   ;;  %v511_v28 = vrot.slane %v5970_v58, 7 }
  0xa6   : > { %v5988_v0 = vld [vmem:[#allocation10 + $0x60] ss:$16 sps:$4 sm:$0xff]   ;;  %s500_s7 = scalar_lea.vmem [#allocation9], %s5944_s3  ;;  %s504_s4 = scalar_lea.vmem [#allocation9], %s5946_s20  ;;  %v514_v30 = vrot.slane %v5973_v59, 6  ;;  %v517_v32 = vrot.slane %v5976_v60, 5 }
  0xa7   : > { %v5991_v2 = vld [vmem:[%s476_s17] sm:$0x1]  ;;  %s508_s24 = scalar_lea.vmem [#allocation9], %s5948_s5  ;;  %v520_v34 = vrot.slane %v5980_v61, 4  ;;  %v526_v37 = vrot.slane %v5986_v63, 2  ;;  %vm5618_vm7 = vmmov 0  }
  0xa8   : > { %816 = vmatpush1.bf16.msra.mxu0 %v5914_v35  ;;  %859 = vmatpush1.bf16.msra.mxu1 %v4931_v36  ;;  %v485_v3 = vld [vmem:[%s484_s16] sm:$0x1]  ;;  %v523_v36 = vrot.slane %v5983_v62, 3  ;;  %s6091_s1 = sadd.s32 128, %s5858_s15  ;;  %p6992_p10 = scmp.eq.s32.totalorder %s5708_s0, 1 }
  0xa9   : > { %1047 = vmatprep.subr.bf16.mxu0 %v5926_v39  ;;  %1090 = vmatprep.subr.bf16.mxu1 %v4937_v40  ;;  %v489_v8 = vld [vmem:[%s488_s13] sm:$0x1]  ;;  %v4965_v40 = vld [vmem:[#allocation10 + $0x48] ss:$16 sps:$4 sm:$0xff]   ;;  %s1353_s19 = sadd.s32 1, %s6091_s1  ;;  %s1357_s26 = sadd.s32 2, %s6091_s1 }
  0xaa   : > { %v449_v14 = vld [vmem:[%s448_s23] sm:$0x1]  ;;  %s1385_s3 = sadd.s32 9, %s6091_s1  ;;  %s1354_s5 = sld [smem:[#allocation3 + %s1353_s19]] }
  0xab   : > { %834 = vmatmul.mubr.bf16.vlgmr.msra.gmra.mxu0 %v608_v41  ;;  %877 = vmatmul.mubr.bf16.vlgmr.msra.gmra.mxu1 %v608_v41  ;;  %v481_v16 = vld [vmem:[%s480_s18] sm:$0x1]  ;;  %v529_v41 = vrot.slane %v5991_v2, 1  ;;  %v553_v59 = vsel %vm552_vm0, %v449_v14, %v511_v28  ;;  %v4971_v2 = vld [vmem:[#allocation10 + $0x28] ss:$16 sps:$4 sm:$0xff]   ;;  %s6100_s25 = sld [smem:[#allocation3 + %s1357_s26]] }
  0xac   : > { %1048 = vmatpush1.bf16.msra.mxu0 %v5932_v42  ;;  %1091 = vmatpush1.bf16.msra.mxu1 %v4935_v43  ;;  %v493_v18 = vld [vmem:[%s492_s14] sm:$0x1]  ;;  %v532_v43 = vrot.slane %v485_v3, 7  ;;  %v555_v61 = vsel %vm554_vm1, %v553_v59, %v514_v30  ;;  %v4977_v28 = vld [vmem:[#allocation10 + $0x8] ss:$16 sps:$4 sm:$0xff]   ;;  %s1381_s30 = sadd.s32 8, %s6091_s1 }
  0xad   : > { %1049 = vmatprep.subr.bf16.mxu0 %v5942_v44  ;;  %1092 = vmatprep.subr.bf16.mxu1 %v4943_v45  ;;  %v497_v20 = vld [vmem:[%s496_s28] sm:$0x1]  ;;  %v535_v45 = vrot.slane %v489_v8, 6  ;;  %v557_v3 = vsel %vm556_vm2, %v555_v61, %v517_v32  ;;  %s1386_s2 = sld [smem:[#allocation3 + %s1385_s3]]  ;;  %s1389_s27 = sadd.s32 10, %s6091_s1 }
  0xae   : > { %1079 = vmatprep.mubr.bf16.mxu0 %v6890_v6  ;;  %1122 = vmatprep.mubr.bf16.mxu1 %v6890_v6  ;;  %v501_v22 = vld [vmem:[%s500_s7] sm:$0x1]  ;;  %v566_v60 = vsel %vm552_vm0, %v481_v16, %v532_v43  ;;  %v559_v14 = vsel %vm558_vm3, %v557_v3, %v520_v34  ;;  %s6105_s17 = sld [smem:[#allocation3 + %s6091_s1]]  ;;  %s1361_s16 = sadd.s32 3, %s6091_s1 }
  0xaf   : > { %v505_v24 = vld [vmem:[%s504_s4] sm:$0x1]  ;;  %v567_v62 = vsel %vm554_vm1, %v566_v60, %v535_v45  ;;  %s1365_s13 = sadd.s32 4, %s6091_s1  ;;  %s6109_s23 = sld [smem:[#allocation3 + %s1381_s30]] }
  0xb0   : > { %1050 = vmatpush1.bf16.msra.mxu0 %v5951_v46  ;;  %1093 = vmatpush1.bf16.msra.mxu1 %v4941_v47  ;;  %v509_v26 = vld [vmem:[%s508_s24] sm:$0x1]  ;;  %v538_v47 = vrot.slane %v493_v18, 5  ;;  %v6027_v18 = vld [vmem:[#allocation10 + $0x4] ss:$16 sps:$4 sm:$0xff]   ;;  %s6111_s18 = sld [smem:[#allocation3 + %s1389_s27]] }
  0xb1   : > { %1051 = vmatprep.subr.bf16.mxu0 %v5954_v48  ;;  %1094 = vmatprep.subr.bf16.mxu1 %v4949_v49  ;;  %v6012_v38 = vld [vmem:[#allocation10 + $0x40] ss:$16 sps:$4 sm:$0xff]   ;;  %v6015_v49 = vld [vmem:[#allocation10 + $0x24] ss:$16 sps:$4 sm:$0xff]   ;;  %v550_v58 = vrot.slane %v509_v26, 1  ;;  %s1393_s14 = sadd.s32 11, %s6091_s1 }
  0xb2   : > { %v6023_v63 = vld [vmem:[#allocation10 + $0x20] ss:$16 sps:$4 sm:$0xff]   ;;  %v568_v8 = vsel %vm556_vm2, %v567_v62, %v538_v47  ;;  %s6114_s28 = sld [smem:[#allocation3 + %s1361_s16]]  ;;  %s1369_s7 = sadd.s32 5, %s6091_s1 }
  0xb3   : > { %v6037_v26 = vld [vmem:[#allocation10] ss:$16 sps:$4 sm:$0xff]   ;;  %s6117_s4 = sld [smem:[#allocation3 + %s1365_s13]]  ;;  %s1397_s20 = sadd.s32 12, %s6091_s1 }
  0xb4   : > { %1052 = vmatpush1.bf16.msra.mxu0 %v5959_v50  ;;  %1095 = vmatpush1.bf16.msra.mxu1 %v4947_v51  ;;  %v4973_v51 = vld [vmem:[#allocation10 + $0x2c] ss:$16 sps:$4 sm:$0xff]   ;;  %s6119_s24 = sld [smem:[#allocation3 + %s1393_s14]]  ;;  %s1373_s19 = sadd.s32 6, %s6091_s1 }
  0xb5   : > { %1053 = vmatprep.subr.bf16.mxu0 %v5962_v52  ;;  %1096 = vmatprep.subr.bf16.mxu1 %v4955_v53  ;;  %v541_v53 = vrot.slane %v497_v20, 4  ;;  %s6122_s22 = sld [smem:[#allocation3 + %s1369_s7]]  ;;  %s1401_s3 = sadd.s32 13, %s6091_s1 }
  0xb6   : > { %s6125_s26 = sld [smem:[#allocation3 + %s1397_s20]]  ;;  %s1355_s30 = scalar_lea.vmem [#allocation9], %s1354_s5 }
  0xb7   : > { %v569_v16 = vsel %vm558_vm3, %v568_v8, %v541_v53  ;;  %s1387_s27 = scalar_lea.vmem [#allocation9], %s1386_s2  ;;  %s6128_s16 = sld [smem:[#allocation3 + %s1401_s3]] }
  0xb8   : > { %1054 = vmatpush1.bf16.msra.mxu0 %v5964_v54  ;;  %1097 = vmatpush1.bf16.msra.mxu1 %v4953_v55  ;;  %v544_v55 = vrot.slane %v501_v22, 3  ;;  %s1405_s13 = sadd.s32 14, %s6091_s1  ;;  %s1359_s14 = scalar_lea.vmem [#allocation9], %s6100_s25 }
  0xb9   : > { %1055 = vmatprep.subr.bf16.mxu0 %v5966_v56  ;;  %1098 = vmatprep.subr.bf16.mxu1 %v4961_v57  ;;  %v547_v57 = vrot.slane %v505_v24, 2  ;;  %s6134_s7 = sld [smem:[#allocation3 + %s1373_s19]]  ;;  %s1377_s20 = sadd.s32 7, %s6091_s1 }
  0xba   : > { %v570_v20 = vsel %vm560_vm4, %v569_v16, %v544_v55  ;;  %s1391_s9 = scalar_lea.vmem [#allocation9], %s6111_s18  ;;  %s1351_s5 = scalar_lea.vmem [#allocation9], %s6105_s17 }
  0xbb   : > { %v571_v24 = vsel %vm562_vm5, %v570_v20, %v547_v57  ;;  %s1383_s2 = scalar_lea.vmem [#allocation9], %s6109_s23  ;;  %s6142_s3 = sld [smem:[#allocation3 + %s1405_s13]] }
  0xbc   : > { %1056 = vmatpush1.bf16.msra.mxu0 %v5988_v0  ;;  %1099 = vmatpush1.bf16.msra.mxu1 %v4959_v1  ;;  %v4979_v1 = vld [vmem:[#allocation10 + $0xc] ss:$16 sps:$4 sm:$0xff]   ;;  %v572_v32 = vsel %vm564_vm6, %v571_v24, %v550_v58  ;;  %s1409_s25 = sadd.s32 15, %s6091_s1  ;;  %s1363_s17 = scalar_lea.vmem [#allocation9], %s6114_s28 }
  0xbd   : > { %1057 = vmatprep.subr.bf16.mxu0 %v5995_v10  ;;  %1100 = vmatprep.subr.bf16.mxu1 %v4967_v12  ;;  %v561_v12 = vsel %vm560_vm4, %v559_v14, %v523_v36  ;;  %s1395_s23 = scalar_lea.vmem [#allocation9], %s6119_s24  ;;  %s6153_s1 = sld [smem:[#allocation3 + %s1409_s25]] }
  0xbe   : > { %v563_v22 = vsel %vm562_vm5, %v561_v12, %v526_v37  ;;  %s1367_s18 = scalar_lea.vmem [#allocation9], %s6117_s4  ;;  %s1399_s28 = scalar_lea.vmem [#allocation9], %s6125_s26 }
  0xbf   : > { %v565_v30 = vsel %vm564_vm6, %v563_v22, %v529_v41  ;;  %v1133_v41 = vld [vmem:[%s6866_s6] sm:$0xf]  ;;  %s1371_s4 = scalar_lea.vmem [#allocation9], %s6122_s22  ;;  %s1403_s24 = scalar_lea.vmem [#allocation9], %s6128_s16 }
  0xc0   : > { %1058 = vmatpush1.bf16.msra.mxu0 %v6012_v38  ;;  %1101 = vmatpush1.bf16.msra.mxu1 %v4965_v40  ;;  %v573_v34 = vmax.f32 %v565_v30, 0.0  ;;  %v574_v40 = vmax.f32 %v572_v32, 0.0  ;;  %s1375_s22 = scalar_lea.vmem [#allocation9], %s6134_s7  ;;  %s6330_s7 = sadd.s32 256, %s5858_s15 }
  0xc1   : > { %1059 = vmatprep.subr.bf16.mxu0 %v6015_v49  ;;  %1102 = vmatprep.subr.bf16.mxu1 %v4973_v51  ;;  %s1407_s19 = scalar_lea.vmem [#allocation9], %s6142_s3  ;;  %s2293_s13 = sadd.s32 12, %s6330_s7 }
  0xc2   : > { %v575_v36 = vpack.c.bf16 %v574_v40, %v573_v34 }
  0xc4   : > { %1060 = vmatpush1.bf16.msra.mxu0 %v6023_v63  ;;  %1103 = vmatpush1.bf16.msra.mxu1 %v4971_v2 }
  0xc5   : > { %1061 = vmatprep.subr.bf16.mxu0 %v6027_v18  ;;  %1104 = vmatprep.subr.bf16.mxu1 %v4979_v1 }
  0xc8   : > { %1062 = vmatpush1.bf16.msra.mxu0 %v6037_v26  ;;  %1105 = vmatpush1.bf16.msra.mxu1 %v4977_v28 }
  0xc9   : > { %1696 = vmatprep.subr.bf16.mxu1 %v5839_v4  ;;  %v4980_v4 = vld [vmem:[#allocation13 + $0x38] sm:$0xff]  }
  0xcb   : > { %1080 = vmatmul.mubr.bf16.vlgmr.msra.gmra.mxu0 %v575_v36  ;;  %1123 = vmatmul.mubr.bf16.vlgmr.msra.gmra.mxu1 %v575_v36 }
  0xcc   : > { %1697 = vmatpush1.bf16.msra.mxu1 %v5846_v7  ;;  %1728 = vmatprep.mubr.bf16.mxu1 %v6890_v6  ;;  %v6888_v7 = vmov 0.0  }
  0xcd   : > { %1698 = vmatprep.subr.bf16.mxu1 %v5849_v9  ;;  %4678 = vmatprep.subr.bf16.mxu0 %v6888_v7  ;;  %v4981_v9 = vld [vmem:[#allocation13 + $0x30] sm:$0xff]  }
  0xce   : > { %4679 = vmatpush3.bf16.msra.mxu0 %v4980_v4  ;;  %4694 = vmatprep.mubr.msk.bf16.mxu0 %vm5618_vm7, %v6888_v7 }
  0xcf   : > { %4680 = vmatprep.subr.bf16.mxu0 %v6888_v7 }
  0xd0   : > { %1699 = vmatpush1.bf16.msra.mxu1 %v5852_v11  ;;  %v4982_v11 = vld [vmem:[#allocation13 + $0x28] sm:$0xff]  }
  0xd1   : > { %1700 = vmatprep.subr.bf16.mxu1 %v5855_v13  ;;  %v4983_v13 = vld [vmem:[#allocation13 + $0x20] sm:$0xff]  }
  0xd2   : > { %4681 = vmatpush3.bf16.msra.mxu0 %v4981_v9 }
  0xd3   : > { %4682 = vmatprep.subr.bf16.mxu0 %v6888_v7 }
  0xd4   : > { %1701 = vmatpush1.bf16.msra.mxu1 %v5860_v15  ;;  %v4984_v15 = vld [vmem:[#allocation13 + $0x18] sm:$0xff]  }
  0xd5   : > { %1702 = vmatprep.subr.bf16.mxu1 %v5863_v17  ;;  %v4985_v17 = vld [vmem:[#allocation13 + $0x10] sm:$0xff]  }
  0xd6   : > { %4683 = vmatpush3.bf16.msra.mxu0 %v4982_v11 }
  0xd7   : > { %4684 = vmatprep.subr.bf16.mxu0 %v6888_v7 }
  0xd8   : > { %1703 = vmatpush1.bf16.msra.mxu1 %v5868_v19  ;;  %v4986_v19 = vld [vmem:[#allocation13 + $0x8] sm:$0xff]  }
  0xd9   : > { %1704 = vmatprep.subr.bf16.mxu1 %v5875_v21  ;;  %v4987_v21 = vld [vmem:[#allocation13] sm:$0xff]  }
  0xda   : > { %4685 = vmatpush3.bf16.msra.mxu0 %v4983_v13 }
  0xdb   : > { %4686 = vmatprep.subr.bf16.mxu0 %v6888_v7 }
  0xdc   : > { %1705 = vmatpush1.bf16.msra.mxu1 %v5884_v23 }
  0xdd   : > { %1706 = vmatprep.subr.bf16.mxu1 %v5888_v25 }
  0xde   : > { %4687 = vmatpush3.bf16.msra.mxu0 %v4984_v15 }
  0xdf   : > { %4688 = vmatprep.subr.bf16.mxu0 %v6888_v7 }
  0xe0   : > { %1707 = vmatpush1.bf16.msra.mxu1 %v5895_v27  ;;  %v1135_v27 = vlaneseq }
  0xe1   : > { %1708 = vmatprep.subr.bf16.mxu1 %v5899_v29 }
  0xe2   : > { %4689 = vmatpush3.bf16.msra.mxu0 %v4985_v17 }
  0xe3   : > { %4690 = vmatprep.subr.bf16.mxu0 %v6888_v7 }
  0xe4   : > { %1709 = vmatpush1.bf16.msra.mxu1 %v5907_v31 }
  0xe5   : > { %1710 = vmatprep.subr.bf16.mxu1 %v5911_v33  ;;  %v1136_v33 = vshrl.u32 %v1135_v27, 7 }
  0xe6   : > { %4691 = vmatpush3.bf16.msra.mxu0 %v4986_v19 }
  0xe7   : > { %4692 = vmatprep.subr.bf16.mxu0 %v6888_v7  ;;  %v6073_v37 = vsub.s32 0, %v1136_v33  ;;  %v6078_v43 = vsub.s32 1, %v1136_v33  ;;  %v6082_v20 = vsub.s32 3, %v1136_v33  ;;  %v6084_v28 = vsub.s32 2, %v1136_v33 }
  0xe8   : > { %1711 = vmatpush1.bf16.msra.mxu1 %v5914_v35 }
  0xe9   : > { %1942 = vmatprep.subr.bf16.mxu1 %v5926_v39  ;;  %6952 = vst [vmem:[#allocation32_spill] sm:$0xff] %v6073_v37  ;;  %6953 = vst [vmem:[#allocation33_spill] sm:$0xff] %v6078_v43  ;;  %v1142_v57 = vrot.slane %v1133_v41, %v6078_v43  ;;  %v1150_v36 = vrot.slane %v1133_v41, %v6082_v20  ;;  %v1146_v9 = vrot.slane %v1133_v41, %v6084_v28 }
  0xea   : > { %4693 = vmatpush3.bf16.msra.mxu0 %v4987_v21 }
  0xeb   : > { %1739 = vmatprep.subr.bf16.mxu0 %v5841_v5  ;;  %v1138_v5 = vrot.slane %v1133_v41, %v6073_v37 }
 0x16b   : > { %v835_v23 = vpop.f32.mrf.mxu0  ;;  %v878_v25 = vpop.f32.mrf.mxu1 }
 0x16d   : > { %v837_v29 = vpop.f32.mrf.mxu0  ;;  %v880_v31 = vpop.f32.mrf.mxu1 }
 0x16f   : > { %v839_v35 = vpop.f32.mrf.mxu0  ;;  %v882_v39 = vpop.f32.mrf.mxu1 }
 0x171   : > { %v841_v45 = vpop.f32.mrf.mxu0  ;;  %v884_v47 = vpop.f32.mrf.mxu1 }
 0x18b   : > { %v1081_v51 = vpop.f32.mrf.mxu0  ;;  %v1124_v53 = vpop.f32.mrf.mxu1 }
 0x18c   : > { %v1082_v55 = vadd.f32 %v1081_v51, %v835_v23  ;;  %v1125_v4 = vadd.f32 %v1124_v53, %v878_v25  ;;  %v443_v51 = vld [vmem:[#allocation18] sm:$0xff] }
 0x18d   : > { %v1083_v58 = vpop.f32.mrf.mxu0  ;;  %v1126_v61 = vpop.f32.mrf.mxu1 }
 0x18e   : > { %v1155_v59 = vadd.f32 %v1138_v5, %v1082_v55  ;;  %v1084_v60 = vadd.f32 %v1083_v58, %v837_v29  ;;  %v1127_v40 = vadd.f32 %v1126_v61, %v880_v31  ;;  %v1157_v15 = vadd.f32 %v1146_v9, %v1125_v4  ;;  %v1388_v4 = vld [vmem:[%s1387_s27] sm:$0x1]  ;;  %s2269_s27 = sadd.s32 6, %s6330_s7 }
 0x18f   : > { %v1085_v62 = vpop.f32.mrf.mxu0  ;;  %v1128_v16 = vpop.f32.mrf.mxu1 }
 0x190   : > { %v4359_v2 = vmul.f32 -1.442695, %v1155_v59  ;;  %v1156_v3 = vadd.f32 %v1142_v57, %v1084_v60  ;;  %v1086_v8 = vadd.f32 %v1085_v62, %v839_v35  ;;  %v1158_v13 = vadd.f32 %v1150_v36, %v1127_v40  ;;  %v444_v62 = vld [vmem:[#allocation18 + $0x8] sm:$0xff] }
 0x191   : > { %v1087_v1 = vpop.f32.mrf.mxu0  ;;  %v1130_v34 = vpop.f32.mrf.mxu1  ;;  %v1129_v19 = vadd.f32 %v1128_v16, %v882_v39 }
 0x192   : > { %5132 = vpow2.f32 %v4359_v2  ;;  %v4361_v14 = vmul.f32 -1.442695, %v1156_v3  ;;  %v1088_v12 = vadd.f32 %v1087_v1, %v841_v45  ;;  %v1159_v22 = vadd.f32 %v1138_v5, %v1086_v8 }
 0x193   : > { %v1131_v11 = vadd.f32 %v1130_v34, %v884_v47  ;;  %v4363_v23 = vmul.f32 -1.442695, %v1158_v13  ;;  %v1161_v35 = vadd.f32 %v1146_v9, %v1129_v19  ;;  %v1392_v13 = vld [vmem:[%s1391_s9] sm:$0x1]  ;;  %s6146_s9 = sld [smem:[#allocation3 + %s1377_s20]]  ;;  %s2249_s20 = sadd.s32 1, %s6330_s7 }
 0x194   : > { %5134 = vpow2.f32 %v4361_v14  ;;  %v1160_v24 = vadd.f32 %v1142_v57, %v1088_v12  ;;  %v4360_v30 = vmul.f32 -1.442695, %v1159_v22  ;;  %v1352_v19 = vld [vmem:[%s1351_s5] sm:$0x1]  ;;  %s2253_s5 = sadd.s32 2, %s6330_s7  ;;  %s2250_s3 = sld [smem:[#allocation3 + %s2249_s20]] }
 0x195   : > { %v1162_v17 = vadd.f32 %v1150_v36, %v1131_v11  ;;  %v1356_v36 = vld [vmem:[%s1355_s30] sm:$0x1]  ;;  %s1411_s30 = scalar_lea.vmem [#allocation9], %s6153_s1  ;;  %s6339_s25 = sld [smem:[#allocation3 + %s2253_s5]] }
 0x196   : > { %v4362_v32 = vmul.f32 -1.442695, %v1160_v24  ;;  %5136 = vpow2.f32 %v4360_v30  ;;  %v1360_v11 = vld [vmem:[%s1359_s14] sm:$0x1]  ;;  %s6344_s1 = sld [smem:[#allocation3 + %s6330_s7]]  ;;  %s2297_s20 = sadd.s32 13, %s6330_s7 }
 0x197   : > { %v4364_v33 = vmul.f32 -1.442695, %v1162_v17  ;;  %v1435_v17 = vrot.slane %v1388_v4, 7  ;;  %s2273_s5 = sadd.s32 7, %s6330_s7 }
 0x198   : > { %5138 = vpow2.f32 %v4362_v32 }
 0x199   : > { %5140 = vtanh.f32 %v1157_v15  ;;  %v1414_v15 = vrot.slane %v1356_v36, 7  ;;  %s1379_s26 = scalar_lea.vmem [#allocation9], %s6146_s9  ;;  %v5300_v36 = vld [vmem:[#allocation12 + $0x68] ss:$16 sps:$4 sm:$0xff]   ;;  %s2257_s9 = sadd.s32 3, %s6330_s7 }
 0x19f   : > { %v5133_v21 = vpop.eup %5132 }
 0x1a0   : > { %v1169_v27 = vadd.f32 1.0, %v5133_v21  ;;  %v1384_v21 = vld [vmem:[%s1383_s2] sm:$0x1]  ;;  %s2281_s2 = sadd.s32 9, %s6330_s7 }
 0x1a1   : > { %v5135_v29 = vpop.eup %5134 }
 0x1a2   : > { %5142 = vrcp.f32 %v1169_v27  ;;  %v1181_v31 = vadd.f32 1.0, %v5135_v29  ;;  %v1417_v27 = vrot.slane %v1360_v11, 6  ;;  %v5293_v29 = vld [vmem:[#allocation12 + $0xcc] ss:$16 sps:$4 sm:$0xff]  }
 0x1a3   : > { %5144 = vpow2.f32 %v4363_v23  ;;  %v5137_v45 = vpop.eup %5136  ;;  %v5292_v23 = vld [vmem:[#allocation12 + $0xe8] ss:$16 sps:$4 sm:$0xff]   ;;  %v5301_v11 = vld [vmem:[#allocation12 + $0x4c] ss:$16 sps:$4 sm:$0xff]  }
 0x1a4   : > { %5146 = vrcp.f32 %v1181_v31  ;;  %v1170_v5 = vadd.f32 1.0, %v5137_v45  ;;  %v1396_v31 = vld [vmem:[%s1395_s23] sm:$0x1]  ;;  %v1462_v45 = vsel %vm552_vm0, %v1384_v21, %v1435_v17  ;;  %v5303_v21 = vld [vmem:[#allocation12 + $0x2c] ss:$16 sps:$4 sm:$0xff]   ;;  %s2285_s23 = sadd.s32 10, %s6330_s7 }
 0x1a5   : > { %v5139_v25 = vpop.eup %5138  ;;  %5148 = vpow2.f32 %v4364_v33  ;;  %v1364_v33 = vld [vmem:[%s1363_s17] sm:$0x1]  ;;  %s2282_s17 = sld [smem:[#allocation3 + %s2281_s2]] }
 0x1a6   : > { %5150 = vtanh.f32 %v1161_v35  ;;  %v1182_v41 = vadd.f32 1.0, %v5139_v25  ;;  %v5141_v39 = vpop.eup %5140  ;;  %v1438_v35 = vrot.slane %v1392_v13, 6  ;;  %v5294_v25 = vld [vmem:[#allocation12 + $0xc8] ss:$16 sps:$4 sm:$0xff]   ;;  %s6366_s2 = sld [smem:[#allocation3 + %s2293_s13]] }
 0x1a7   : > { %5152 = vrcp.f32 %v1170_v5  ;;  %v1400_v5 = vld [vmem:[%s1399_s28] sm:$0x1]  ;;  %s6347_s28 = sld [smem:[#allocation3 + %s2257_s9]]  ;;  %s2251_s9 = scalar_lea.vmem [#allocation9], %s2250_s3 }
 0x1a8   : > { %5154 = vrcp.f32 %v1182_v41  ;;  %v1420_v41 = vrot.slane %v1364_v33, 5  ;;  %v5306_v33 = vld [vmem:[#allocation12 + $0x8] ss:$16 sps:$4 sm:$0xff]   ;;  %s6381_s3 = sld [smem:[#allocation3 + %s2269_s27]] }
 0x1af   : > { %v5143_v47 = vpop.eup %5142 }
 0x1b0   : > { %v5145_v53 = vpop.eup %5144  ;;  %v1203_v58 = vmul.f32 %v5143_v47, %v5141_v39  ;;  %v1441_v39 = vrot.slane %v1396_v31, 5  ;;  %v5295_v47 = vld [vmem:[#allocation12 + $0xac] ss:$16 sps:$4 sm:$0xff]   ;;  %v6192_v31 = vld [vmem:[#allocation10 + $0xe8] ss:$16 sps:$4 sm:$0xff]  }
 0x1b1   : > { %v5147_v55 = vpop.eup %5146  ;;  %v1195_v61 = vadd.f32 1.0, %v5145_v53  ;;  %v1463_v53 = vsel %vm554_vm1, %v1462_v45, %v1438_v35  ;;  %v6215_v35 = vld [vmem:[#allocation10 + $0x88] ss:$16 sps:$4 sm:$0xff]  }
 0x1b2   : > { %v5149_v57 = vpop.eup %5148  ;;  %v1201_v59 = vmul.f32 %v5147_v55, %v443_v51  ;;  %v1372_v55 = vld [vmem:[%s1371_s4] sm:$0x1]  ;;  %v6221_v45 = vld [vmem:[#allocation10 + $0x68] ss:$16 sps:$4 sm:$0xff]   ;;  %s2261_s4 = sadd.s32 4, %s6330_s7 }
 0x1b3   : > { %v5151_v60 = vpop.eup %5150  ;;  %v1196_v1 = vadd.f32 1.0, %v5149_v57  ;;  %5156 = vrcp.f32 %v1195_v61  ;;  %v1404_v57 = vld [vmem:[%s1403_s24] sm:$0x1]  ;;  %v5297_v61 = vld [vmem:[#allocation12 + $0x8c] ss:$16 sps:$4 sm:$0xff]   ;;  %s6350_s24 = sld [smem:[#allocation3 + %s2285_s23]] }
 0x1b4   : > { %v5153_v2 = vpop.eup %5152  ;;  %v6088_v3 = vadd.f32 %v1203_v58, %v1201_v59  ;;  %v5296_v59 = vld [vmem:[#allocation12 + $0xa8] ss:$16 sps:$4 sm:$0xff]   ;;  %s2283_s23 = scalar_lea.vmem [#allocation9], %s2282_s17  ;;  %s2255_s17 = scalar_lea.vmem [#allocation9], %s6339_s25 }
 0x1b5   : > { %v5155_v8 = vpop.eup %5154  ;;  %v1204_v14 = vmul.f32 %v5153_v2, %v5151_v60  ;;  %v1408_v2 = vld [vmem:[%s1407_s19] sm:$0x1]  ;;  %s2265_s19 = sadd.s32 5, %s6330_s7  ;;  %s2305_s25 = sadd.s32 15, %s6330_s7 }
 0x1b6   : > { %v1202_v16 = vmul.f32 %v5155_v8, %v444_v62  ;;  %5158 = vtanh.f32 %v6088_v3  ;;  %v1376_v62 = vld [vmem:[%s1375_s22] sm:$0x1]  ;;  %v1426_v8 = vrot.slane %v1372_v55, 3  ;;  %v5015_v55 = vld [vmem:[#allocation13 + $0x38] sm:$0xff]   ;;  %s2289_s22 = sadd.s32 11, %s6330_s7  ;;  %s6362_s14 = sld [smem:[#allocation3 + %s2265_s19]] }
 0x1b7   : > { %5160 = vrcp.f32 %v1196_v1  ;;  %v1447_v1 = vrot.slane %v1404_v57, 3  ;;  %v6251_v57 = vld [vmem:[#allocation12 + $0xc4] ss:$16 sps:$4 sm:$0xff]   ;;  %s6359_s16 = sld [smem:[#allocation3 + %s2289_s22]]  ;;  %s2247_s19 = scalar_lea.vmem [#allocation9], %s6344_s1 }
 0x1b8   : > { %v6093_v12 = vadd.f32 %v1204_v14, %v1202_v16  ;;  %v5298_v16 = vld [vmem:[#allocation12 + $0x88] ss:$16 sps:$4 sm:$0xff]   ;;  %s6407_s1 = sld [smem:[#allocation3 + %s2273_s5]] }
 0x1b9   : > { %s2287_s22 = scalar_lea.vmem [#allocation9], %s6350_s24  ;;  %s2259_s24 = scalar_lea.vmem [#allocation9], %s6347_s28 }
 0x1ba   : > { %5162 = vtanh.f32 %v6093_v12  ;;  %s6414_s28 = sld [smem:[#allocation3 + %s2305_s25]] }
 0x1c0   : > { %v5157_v22 = vpop.eup %5156 }
 0x1c3   : > { %v5159_v24 = vpop.eup %5158 }
 0x1c4   : > { %v5161_v30 = vpop.eup %5160  ;;  %v1209_v34 = vmul.f32 %v5159_v24, %v5157_v22  ;;  %v5299_v22 = vld [vmem:[#allocation12 + $0x6c] ss:$16 sps:$4 sm:$0xff]   ;;  %v1412_v24 = vld [vmem:[%s1411_s30] sm:$0x1]  ;;  %s6356_s30 = sld [smem:[#allocation3 + %s2261_s4]]  ;;  %s2301_s4 = sadd.s32 14, %s6330_s7 }
 0x1c5   : > { %s6395_s13 = sld [smem:[#allocation3 + %s2301_s4]]  ;;  %s6573_s4 = sadd.s32 384, %s5858_s15 }
 0x1c6   : > { %s3149_s15 = sadd.s32 2, %s6573_s4  ;;  %s3181_s25 = sadd.s32 10, %s6573_s4 }
 0x1c7   : > { %v5163_v32 = vpop.eup %5162 }
 0x1c8   : > { %v1210_v40 = vmul.f32 %v5163_v32, %v5161_v30  ;;  %v1429_v30 = vrot.slane %v1376_v62, 2  ;;  %v1450_v32 = vrot.slane %v1408_v2, 2  ;;  %v6267_v62 = vld [vmem:[#allocation12 + $0x80] ss:$16 sps:$4 sm:$0xff]  }
 0x1c9   : > { %v5027_v2 = vld [vmem:[#allocation13 + $0x20] sm:$0xff]  }
 0x1ca   : > { %v6131_v9 = vpack.c.bf16 %v1210_v40, %v1209_v34 }
 0x1cb   : > { %s2303_s5 = scalar_lea.vmem [#allocation9], %s6395_s13 }
 0x1cc   : > { %4695 = vmatmul.mubr.bf16.vlgmr.msra.gmra.mxu0 %v6131_v9  ;;  %1729 = vmatmul.mubr.bf16.vlgmr.msra.gmra.mxu1 %v6131_v9 }
 0x1cd   : > { %1740 = vmatpush1.bf16.msra.mxu0 %v5292_v23  ;;  %1943 = vmatpush1.bf16.msra.mxu1 %v5932_v42  ;;  %v1455_v42 = vsel %vm552_vm0, %v1352_v19, %v1414_v15  ;;  %v5302_v15 = vld [vmem:[#allocation12 + $0x48] ss:$16 sps:$4 sm:$0xff]  }
 0x1ce   : > { %1741 = vmatprep.subr.bf16.mxu0 %v5293_v29  ;;  %1944 = vmatprep.subr.bf16.mxu1 %v5942_v44  ;;  %v1368_v44 = vld [vmem:[%s1367_s18] sm:$0x1]  ;;  %v1456_v51 = vsel %vm554_vm1, %v1455_v42, %v1417_v27  ;;  %v5304_v27 = vld [vmem:[#allocation12 + $0x28] ss:$16 sps:$4 sm:$0xff]   ;;  %v6189_v29 = vld [vmem:[#allocation10 + $0xec] ss:$16 sps:$4 sm:$0xff]  }
 0x1cf   : > { %1771 = vmatprep.mubr.bf16.mxu0 %v6890_v6  ;;  %1974 = vmatprep.mubr.bf16.mxu1 %v6890_v6  ;;  %v1423_v58 = vrot.slane %v1368_v44, 4  ;;  %v1457_v60 = vsel %vm556_vm2, %v1456_v51, %v1420_v41  ;;  %v6218_v42 = vld [vmem:[#allocation10 + $0x6c] ss:$16 sps:$4 sm:$0xff]   ;;  %v6233_v41 = vld [vmem:[#allocation10 + $0x28] ss:$16 sps:$4 sm:$0xff]   ;;  %s2277_s18 = sadd.s32 8, %s6330_s7 }
 0x1d0   : > { %v6224_v44 = vld [vmem:[#allocation10 + $0x4c] ss:$16 sps:$4 sm:$0xff]   ;;  %v6244_v51 = vld [vmem:[#allocation12 + $0xe4] ss:$16 sps:$4 sm:$0xff]   ;;  %s2263_s7 = scalar_lea.vmem [#allocation9], %s6356_s30  ;;  %s2267_s30 = scalar_lea.vmem [#allocation9], %s6362_s14 }
 0x1d1   : > { %1742 = vmatpush1.bf16.msra.mxu0 %v5294_v25  ;;  %1945 = vmatpush1.bf16.msra.mxu1 %v5951_v46  ;;  %v1444_v46 = vrot.slane %v1400_v5, 4  ;;  %v1458_v14 = vsel %vm558_vm3, %v1457_v60, %v1423_v58  ;;  %v6227_v25 = vld [vmem:[#allocation10 + $0x48] ss:$16 sps:$4 sm:$0xff]   ;;  %v6230_v5 = vld [vmem:[#allocation10 + $0x2c] ss:$16 sps:$4 sm:$0xff]   ;;  %s2271_s14 = scalar_lea.vmem [#allocation9], %s6381_s3 }
 0x1d2   : > { %1743 = vmatprep.subr.bf16.mxu0 %v5295_v47  ;;  %1946 = vmatprep.subr.bf16.mxu1 %v5954_v48  ;;  %v1464_v48 = vsel %vm556_vm2, %v1463_v53, %v1441_v39  ;;  %v1459_v34 = vsel %vm560_vm4, %v1458_v14, %v1426_v8  ;;  %v6236_v39 = vld [vmem:[#allocation10 + $0xc] ss:$16 sps:$4 sm:$0xff]   ;;  %v6239_v47 = vld [vmem:[#allocation10 + $0x8] ss:$16 sps:$4 sm:$0xff]   ;;  %v6246_v53 = vld [vmem:[#allocation12 + $0xe0] ss:$16 sps:$4 sm:$0xff]  }
 0x1d3   : > { %v6253_v58 = vld [vmem:[#allocation12 + $0xc0] ss:$16 sps:$4 sm:$0xff]   ;;  %v5031_v14 = vld [vmem:[#allocation13 + $0x18] sm:$0xff]   ;;  %s3145_s3 = sadd.s32 1, %s6573_s4 }
 0x1d4   : > { %v6260_v60 = vld [vmem:[#allocation12 + $0xa0] ss:$16 sps:$4 sm:$0xff]  }
 0x1d5   : > { %1744 = vmatpush1.bf16.msra.mxu0 %v5296_v59  ;;  %1947 = vmatpush1.bf16.msra.mxu1 %v5959_v50  ;;  %v1465_v50 = vsel %vm558_vm3, %v1464_v48, %v1444_v46  ;;  %v5019_v46 = vld [vmem:[#allocation13 + $0x30] sm:$0xff]   ;;  %v5023_v48 = vld [vmem:[#allocation13 + $0x28] sm:$0xff]  }
 0x1d6   : > { %1745 = vmatprep.subr.bf16.mxu0 %v5297_v61  ;;  %1948 = vmatprep.subr.bf16.mxu1 %v5962_v52  ;;  %v1380_v52 = vld [vmem:[%s1379_s26] sm:$0x1]  ;;  %v1466_v40 = vsel %vm560_vm4, %v1465_v50, %v1447_v1  ;;  %v6258_v59 = vld [vmem:[#allocation12 + $0xa4] ss:$16 sps:$4 sm:$0xff]   ;;  %s6354_s26 = sld [smem:[#allocation3 + %s2277_s18]] }
 0x1d7   : > { %v1432_v4 = vrot.slane %v1380_v52, 1  ;;  %v1467_v13 = vsel %vm562_vm5, %v1466_v40, %v1450_v32  ;;  %v6265_v61 = vld [vmem:[#allocation12 + $0x84] ss:$16 sps:$4 sm:$0xff]   ;;  %v6272_v8 = vld [vmem:[#allocation12 + $0x60] ss:$16 sps:$4 sm:$0xff]   ;;  %s6370_s18 = sld [smem:[#allocation3 + %s2297_s20]] }
 0x1d8   : > { %v6274_v1 = vld [vmem:[#allocation12 + $0x64] ss:$16 sps:$4 sm:$0xff]  }
 0x1d9   : > { %1746 = vmatpush1.bf16.msra.mxu0 %v5298_v16  ;;  %1949 = vmatpush1.bf16.msra.mxu1 %v5964_v54  ;;  %v1453_v54 = vrot.slane %v1412_v24, 1  ;;  %v6276_v50 = vld [vmem:[#allocation12 + $0x44] ss:$16 sps:$4 sm:$0xff]   ;;  %v6280_v16 = vld [vmem:[#allocation12 + $0x40] ss:$16 sps:$4 sm:$0xff]  }
 0x1da   : > { %1747 = vmatprep.subr.bf16.mxu0 %v5299_v22  ;;  %1950 = vmatprep.subr.bf16.mxu1 %v5966_v56  ;;  %v1460_v56 = vsel %vm562_vm5, %v1459_v34, %v1429_v30  ;;  %v5035_v22 = vld [vmem:[#allocation13 + $0x10] sm:$0xff]   ;;  %v5039_v30 = vld [vmem:[#allocation13 + $0x8] sm:$0xff]   ;;  %v5043_v40 = vld [vmem:[#allocation13] sm:$0xff]  }
 0x1db   : > { %v1461_v17 = vsel %vm564_vm6, %v1460_v56, %v1432_v4  ;;  %v1468_v19 = vsel %vm564_vm6, %v1467_v13, %v1453_v54  ;;  %v6284_v52 = vld [vmem:[#allocation12 + $0x24] ss:$16 sps:$4 sm:$0xff]   ;;  %v6287_v24 = vld [vmem:[#allocation12 + $0x20] ss:$16 sps:$4 sm:$0xff]  }
 0x1dc   : > { %v1470_v23 = vmax.f32 %v1468_v19, 0.0  ;;  %v6291_v32 = vld [vmem:[#allocation12 + $0x4] ss:$16 sps:$4 sm:$0xff]   ;;  %v6294_v34 = vld [vmem:[#allocation12] ss:$16 sps:$4 sm:$0xff]   ;;  %s2279_s27 = scalar_lea.vmem [#allocation9], %s6354_s26 }
 0x1dd   : > { %1748 = vmatpush1.bf16.msra.mxu0 %v5300_v36  ;;  %1951 = vmatpush1.bf16.msra.mxu1 %v5988_v0  ;;  %v1469_v0 = vmax.f32 %v1461_v17, 0.0  ;;  %v6298_v36 = vld [vmem:[#allocation12 + $0xec] ss:$16 sps:$4 sm:$0xff]   ;;  %v6300_v4 = vld [vmem:[#allocation10 + $0xe4] ss:$16 sps:$4 sm:$0xff]   ;;  %s2291_s26 = scalar_lea.vmem [#allocation9], %s6359_s16 }
 0x1de   : > { %1749 = vmatprep.subr.bf16.mxu0 %v5301_v11  ;;  %1952 = vmatprep.subr.bf16.mxu1 %v5995_v10  ;;  %v5305_v10 = vld [vmem:[#allocation12 + $0xc] ss:$16 sps:$4 sm:$0xff]   ;;  %v6308_v54 = vld [vmem:[%s6868_s8] ss:$0 sm:$0xff]  ;;  %s2295_s16 = scalar_lea.vmem [#allocation9], %s6366_s2  ;;  %s2299_s20 = scalar_lea.vmem [#allocation9], %s6370_s18 }
 0x1df   : > { %s2275_s2 = scalar_lea.vmem [#allocation9], %s6407_s1  ;;  %s3153_s1 = sadd.s32 3, %s6573_s4 }
 0x1e1   : > { %1750 = vmatpush1.bf16.msra.mxu0 %v5302_v15  ;;  %1953 = vmatpush1.bf16.msra.mxu1 %v6012_v38  ;;  %v1471_v38 = vpack.c.bf16 %v1470_v23, %v1469_v0 }
 0x1e2   : > { %1751 = vmatprep.subr.bf16.mxu0 %v5303_v21  ;;  %1954 = vmatprep.subr.bf16.mxu1 %v6015_v49  ;;  %v6195_v49 = vld [vmem:[#allocation10 + $0xcc] ss:$16 sps:$4 sm:$0xff]  }
 0x1e5   : > { %1752 = vmatpush1.bf16.msra.mxu0 %v5304_v27  ;;  %1955 = vmatpush1.bf16.msra.mxu1 %v6023_v63  ;;  %v6200_v63 = vld [vmem:[#allocation10 + $0xc8] ss:$16 sps:$4 sm:$0xff]  }
 0x1e6   : > { %1753 = vmatprep.subr.bf16.mxu0 %v5305_v10  ;;  %1956 = vmatprep.subr.bf16.mxu1 %v6027_v18  ;;  %v6204_v18 = vld [vmem:[#allocation10 + $0xac] ss:$16 sps:$4 sm:$0xff]  }
 0x1e9   : > { %1754 = vmatpush1.bf16.msra.mxu0 %v5306_v33  ;;  %1957 = vmatpush1.bf16.msra.mxu1 %v6037_v26  ;;  %v6209_v26 = vld [vmem:[#allocation10 + $0xa8] ss:$16 sps:$4 sm:$0xff]  }
 0x1ea   : > { %1985 = vmatprep.subr.bf16.mxu0 %v6189_v29  ;;  %4698 = vmatprep.subr.bf16.mxu1 %v6888_v7 }
 0x1ec   : > { %1772 = vmatmul.mubr.bf16.vlgmr.msra.gmra.mxu0 %v6131_v9  ;;  %1975 = vmatmul.mubr.bf16.vlgmr.msra.gmra.mxu1 %v1471_v38  ;;  %v6212_v9 = vld [vmem:[#allocation10 + $0x8c] ss:$16 sps:$4 sm:$0xff]  }
 0x1ed   : > { %1986 = vmatpush1.bf16.msra.mxu0 %v6192_v31  ;;  %2017 = vmatprep.mubr.bf16.mxu0 %v6890_v6 }
 0x1ee   : > { %1987 = vmatprep.subr.bf16.mxu0 %v6195_v49  ;;  %4714 = vmatprep.mubr.msk.bf16.mxu1 %vm5618_vm7, %v6888_v7 }
 0x1ef   : > { %4699 = vmatpush3.bf16.msra.mxu1 %v5015_v55 }
 0x1f0   : > { %4700 = vmatprep.subr.bf16.mxu1 %v6888_v7 }
 0x1f1   : > { %1988 = vmatpush1.bf16.msra.mxu0 %v6200_v63 }
 0x1f2   : > { %1989 = vmatprep.subr.bf16.mxu0 %v6204_v18 }
 0x1f3   : > { %4701 = vmatpush3.bf16.msra.mxu1 %v5019_v46 }
 0x1f4   : > { %4702 = vmatprep.subr.bf16.mxu1 %v6888_v7 }
 0x1f5   : > { %1990 = vmatpush1.bf16.msra.mxu0 %v6209_v26 }
 0x1f6   : > { %1991 = vmatprep.subr.bf16.mxu0 %v6212_v9 }
 0x1f7   : > { %4703 = vmatpush3.bf16.msra.mxu1 %v5023_v48 }
 0x1f8   : > { %4704 = vmatprep.subr.bf16.mxu1 %v6888_v7 }
 0x1f9   : > { %1992 = vmatpush1.bf16.msra.mxu0 %v6215_v35 }
 0x1fa   : > { %1993 = vmatprep.subr.bf16.mxu0 %v6218_v42 }
 0x1fb   : > { %4705 = vmatpush3.bf16.msra.mxu1 %v5027_v2 }
 0x1fc   : > { %4706 = vmatprep.subr.bf16.mxu1 %v6888_v7 }
 0x1fd   : > { %1994 = vmatpush1.bf16.msra.mxu0 %v6221_v45 }
 0x1fe   : > { %1995 = vmatprep.subr.bf16.mxu0 %v6224_v44 }
 0x1ff   : > { %4707 = vmatpush3.bf16.msra.mxu1 %v5031_v14 }
 0x200   : > { %4708 = vmatprep.subr.bf16.mxu1 %v6888_v7 }
 0x201   : > { %1996 = vmatpush1.bf16.msra.mxu0 %v6227_v25 }
 0x202   : > { %1997 = vmatprep.subr.bf16.mxu0 %v6230_v5 }
 0x203   : > { %4709 = vmatpush3.bf16.msra.mxu1 %v5035_v22 }
 0x204   : > { %4710 = vmatprep.subr.bf16.mxu1 %v6888_v7 }
 0x205   : > { %1998 = vmatpush1.bf16.msra.mxu0 %v6233_v41 }
 0x206   : > { %1999 = vmatprep.subr.bf16.mxu0 %v6236_v39 }
 0x207   : > { %4711 = vmatpush3.bf16.msra.mxu1 %v5039_v30 }
 0x208   : > { %4712 = vmatprep.subr.bf16.mxu1 %v6888_v7 }
 0x209   : > { %2000 = vmatpush1.bf16.msra.mxu0 %v6239_v47 }
 0x20a   : > { %2592 = vmatprep.subr.bf16.mxu0 %v6244_v51 }
 0x20b   : > { %4713 = vmatpush3.bf16.msra.mxu1 %v5043_v40 }
 0x20c   : > { %2018 = vmatmul.mubr.bf16.vlgmr.msra.gmra.mxu0 %v1471_v38  ;;  %2635 = vmatprep.subr.bf16.mxu1 %v6298_v36  ;;  %v2028_v38 = vld [vmem:[%s6866_s6] sm:$0xf] }
 0x20d   : > { %2624 = vmatprep.mubr.bf16.mxu0 %v6890_v6  ;;  %2593 = vmatpush1.bf16.msra.mxu0 %v6246_v53  ;;  %v2033_v46 = vrot.slane %v2028_v38, %v6073_v37  ;;  %v2037_v2 = vrot.slane %v2028_v38, %v6078_v43 }
 0x20e   : > { %2594 = vmatprep.subr.bf16.mxu0 %v6251_v57 }
 0x211   : > { %2595 = vmatpush1.bf16.msra.mxu0 %v6253_v58 }
 0x212   : > { %2596 = vmatprep.subr.bf16.mxu0 %v6258_v59 }
 0x215   : > { %2597 = vmatpush1.bf16.msra.mxu0 %v6260_v60 }
 0x216   : > { %2598 = vmatprep.subr.bf16.mxu0 %v6265_v61 }
 0x219   : > { %2599 = vmatpush1.bf16.msra.mxu0 %v6267_v62 }
 0x21a   : > { %2600 = vmatprep.subr.bf16.mxu0 %v6274_v1 }
 0x21d   : > { %2601 = vmatpush1.bf16.msra.mxu0 %v6272_v8 }
 0x21e   : > { %2602 = vmatprep.subr.bf16.mxu0 %v6276_v50 }
 0x221   : > { %2603 = vmatpush1.bf16.msra.mxu0 %v6280_v16 }
 0x222   : > { %2604 = vmatprep.subr.bf16.mxu0 %v6284_v52 }
 0x225   : > { %2605 = vmatpush1.bf16.msra.mxu0 %v6287_v24 }
 0x226   : > { %2606 = vmatprep.subr.bf16.mxu0 %v6291_v32 }
 0x229   : > { %2607 = vmatpush1.bf16.msra.mxu0 %v6294_v34 }
 0x22a   : > { %2838 = vmatprep.subr.bf16.mxu0 %v6300_v4 }
 0x28c   : > { %v1317_v11 = vpop.f32.mrf.mxu0  ;;  %v1730_v21 = vpop.f32.mrf.mxu1 }
 0x28d   : > { %v6311_v56 = vadd.f32 %v6308_v54, %v1317_v11 }
 0x28e   : > { %v4696_v13 = vpop.f32.mrf.mxu0  ;;  %v1732_v0 = vpop.f32.mrf.mxu1 }
 0x28f   : > { %6954 = vst [vmem:[#allocation34_spill] sm:$0xff] %v6311_v56  ;;  %1324 = vmax.xlane.f32.xlu0 %v6311_v56 }
 0x290   : > { %v1320_v15 = vpop.f32.mrf.mxu0  ;;  %v1734_v23 = vpop.f32.mrf.mxu1 }
 0x291   : > { %v6315_v17 = vadd.f32 %v6308_v54, %v1320_v15 }
 0x292   : > { %v4697_v19 = vpop.f32.mrf.mxu0  ;;  %v1736_v27 = vpop.f32.mrf.mxu1 }
 0x293   : > { %6955 = vst [vmem:[#allocation35_spill] sm:$0xff] %v6315_v17  ;;  %1326 = vmax.xlane.f32.xlu0 %v6315_v17 }
 0x2ac   : > { %v1976_v10 = vpop.f32.mrf.mxu1 }
 0x2ad   : > { %v1977_v55 = vadd.f32 %v1976_v10, %v1730_v21  ;;  %v1773_v21 = vpop.f32.mrf.mxu0 }
 0x2ae   : > { %v1978_v33 = vpop.f32.mrf.mxu1 }
 0x2af   : > { %v1979_v48 = vadd.f32 %v1978_v33, %v1732_v0  ;;  %v2050_v30 = vadd.f32 %v2033_v46, %v1977_v55  ;;  %v1775_v0 = vpop.f32.mrf.mxu0 }
 0x2b0   : > { %v1980_v14 = vpop.f32.mrf.mxu1 }
 0x2b1   : > { %v1981_v40 = vadd.f32 %v1980_v14, %v1734_v23  ;;  %v2051_v11 = vadd.f32 %v2037_v2, %v1979_v48  ;;  %v4439_v15 = vmul.f32 -1.442695, %v2050_v30  ;;  %v1777_v10 = vpop.f32.mrf.mxu0  ;;  %v2041_v23 = vrot.slane %v2028_v38, %v6084_v28 }
 0x2b2   : > { %v1982_v22 = vpop.f32.mrf.mxu1 }
 0x2b3   : > { %v1983_v13 = vadd.f32 %v1982_v22, %v1736_v27  ;;  %v2054_v19 = vadd.f32 %v2033_v46, %v1981_v40  ;;  %v4441_v7 = vmul.f32 -1.442695, %v2051_v11  ;;  %5164 = vpow2.f32 %v4439_v15  ;;  %v1779_v37 = vpop.f32.mrf.mxu0 }
 0x2b4   : > { %v2045_v22 = vrot.slane %v2028_v38, %v6082_v20 }
 0x2b5   : > { %v2055_v6 = vadd.f32 %v2037_v2, %v1983_v13  ;;  %v4440_v17 = vmul.f32 -1.442695, %v2054_v19  ;;  %5166 = vpow2.f32 %v4441_v7 }
 0x2b7   : > { %v4442_v56 = vmul.f32 -1.442695, %v2055_v6  ;;  %5168 = vpow2.f32 %v4440_v17 }
 0x2b9   : > { %5170 = vpow2.f32 %v4442_v56 }
 0x2c0   : > { %v5165_v33 = vpop.eup %5164 }
 0x2c1   : > { %v2064_v55 = vadd.f32 1.0, %v5165_v33 }
 0x2c2   : > { %v5167_v43 = vpop.eup %5166 }
 0x2c3   : > { %v2076_v48 = vadd.f32 1.0, %v5167_v43  ;;  %5172 = vrcp.f32 %v2064_v55 }
 0x2c4   : > { %v5169_v27 = vpop.eup %5168 }
 0x2c5   : > { %v2065_v6 = vadd.f32 1.0, %v5169_v27  ;;  %5174 = vrcp.f32 %v2076_v48 }
 0x2c6   : > { %v5171_v14 = vpop.eup %5170 }
 0x2c7   : > { %v2077_v30 = vadd.f32 1.0, %v5171_v14 }
 0x2cc   : > { %v2019_v46 = vpop.f32.mrf.mxu0 }
 0x2cd   : > { %v2020_v2 = vadd.f32 %v2019_v46, %v1773_v21 }
 0x2ce   : > { %v2021_v7 = vpop.f32.mrf.mxu0 }
 0x2cf   : > { %v2052_v17 = vadd.f32 %v2041_v23, %v2020_v2  ;;  %v2022_v56 = vadd.f32 %v2021_v7, %v1775_v0 }
 0x2d0   : > { %v2023_v40 = vpop.f32.mrf.mxu0  ;;  %v5173_v55 = vpop.eup %5172 }
 0x2d1   : > { %5176 = vtanh.f32 %v2052_v17  ;;  %v2053_v11 = vadd.f32 %v2045_v22, %v2022_v56  ;;  %v2024_v13 = vadd.f32 %v2023_v40, %v1777_v10 }
 0x2d2   : > { %v2025_v15 = vpop.f32.mrf.mxu0  ;;  %5178 = vrcp.f32 %v2065_v6  ;;  %v5175_v0 = vpop.eup %5174 }
 0x2d3   : > { %v4443_v19 = vmul.f32 -1.442695, %v2053_v11  ;;  %v2056_v43 = vadd.f32 %v2041_v23, %v2024_v13  ;;  %v2026_v33 = vadd.f32 %v2025_v15, %v1779_v37  ;;  %5180 = vrcp.f32 %v2077_v30  ;;  %v2252_v13 = vld [vmem:[%s2251_s9] sm:$0x1]  ;;  %v6368_v15 = vld [vmem:[#allocation12 + $0xe8] ss:$16 sps:$4 sm:$0xff]  }
 0x2d4   : > { %v2096_v14 = vmul.f32 %v5175_v0, %v6088_v3  ;;  %v6379_v0 = vld [vmem:[#allocation10 + $0xc4] ss:$16 sps:$4 sm:$0xff]   ;;  %s2307_s9 = scalar_lea.vmem [#allocation9], %s6414_s28 }
 0x2d5   : > { %5182 = vpow2.f32 %v4443_v19  ;;  %v2057_v21 = vadd.f32 %v2045_v22, %v2026_v33  ;;  %v2284_v33 = vld [vmem:[%s2283_s23] sm:$0x1]  ;;  %6957 = vst [vmem:[#allocation37_spill] sm:$0xff] %v6379_v0  ;;  %s3165_s23 = sadd.s32 6, %s6573_s4 }
 0x2d6   : > { %5184 = vtanh.f32 %v2056_v43 }
 0x2d7   : > { %v4444_v38 = vmul.f32 -1.442695, %v2057_v21  ;;  %v6372_v21 = vld [vmem:[#allocation10 + $0xe0] ss:$16 sps:$4 sm:$0xff]  }
 0x2d9   : > { %5186 = vpow2.f32 %v4444_v38  ;;  %v6374_v38 = vld [vmem:[#allocation12 + $0xcc] ss:$16 sps:$4 sm:$0xff]  }
 0x2da   : > { %6956 = vst [vmem:[#allocation36_spill] sm:$0xff] %v6374_v38 }
 0x2de   : > { %v5177_v27 = vpop.eup %5176 }
 0x2df   : > { %v2098_v48 = vmul.f32 %v5177_v27, %v5173_v55  ;;  %v5179_v46 = vpop.eup %5178  ;;  %v2310_v27 = vrot.slane %v2252_v13, 7 }
 0x2e0   : > { %v5181_v10 = vpop.eup %5180 }
 0x2e1   : > { %v6326_v7 = vadd.f32 %v2098_v48, %v2096_v14  ;;  %v2097_v6 = vmul.f32 %v5181_v10, %v6093_v12  ;;  %v6383_v48 = vld [vmem:[#allocation12 + $0xc8] ss:$16 sps:$4 sm:$0xff]   ;;  %v2256_v14 = vld [vmem:[%s2255_s17] sm:$0x1]  ;;  %s3177_s17 = sadd.s32 9, %s6573_s4 }
 0x2e2   : > { %v5183_v2 = vpop.eup %5182  ;;  %6958 = vst [vmem:[#allocation38_spill] sm:$0xff] %v6383_v48  ;;  %v2288_v10 = vld [vmem:[%s2287_s22] sm:$0x1]  ;;  %s3146_s22 = sld [smem:[#allocation3 + %s3145_s3]]  ;;  %s3193_s3 = sadd.s32 13, %s6573_s4 }
 0x2e3   : > { %v5185_v23 = vpop.eup %5184  ;;  %v2090_v37 = vadd.f32 1.0, %v5183_v2  ;;  %5188 = vtanh.f32 %v6326_v7  ;;  %v2331_v2 = vrot.slane %v2284_v33, 7  ;;  %v2264_v33 = vld [vmem:[%s2263_s7] sm:$0x1]  ;;  %s3178_s13 = sld [smem:[#allocation3 + %s3177_s17]] }
 0x2e4   : > { %v2099_v22 = vmul.f32 %v5185_v23, %v5179_v46  ;;  %v6385_v46 = vld [vmem:[#allocation10 + $0xc0] ss:$16 sps:$4 sm:$0xff]   ;;  %v6391_v23 = vld [vmem:[#allocation12 + $0xac] ss:$16 sps:$4 sm:$0xff]   ;;  %s6593_s7 = sld [smem:[#allocation3 + %s3181_s25]]  ;;  %s3197_s25 = sadd.s32 14, %s6573_s4 }
 0x2e5   : > { %5190 = vrcp.f32 %v2090_v37  ;;  %6959 = vst [vmem:[#allocation39_spill] sm:$0xff] %v6385_v46  ;;  %6960 = vst [vmem:[#allocation40_spill] sm:$0xff] %v6391_v23  ;;  %v2248_v37 = vld [vmem:[%s2247_s19] sm:$0x1]  ;;  %s6582_s19 = sld [smem:[#allocation3 + %s3149_s15]] }
 0x2e6   : > { %v5187_v17 = vpop.eup %5186  ;;  %v6333_v3 = vadd.f32 %v2099_v22, %v2097_v6  ;;  %v2280_v6 = vld [vmem:[%s2279_s27] sm:$0x1]  ;;  %v6400_v22 = vld [vmem:[#allocation10 + $0xa4] ss:$16 sps:$4 sm:$0xff]   ;;  %v2351_v13 = vsel %vm552_vm0, %v2248_v37, %v2310_v27  ;;  %v6426_v27 = vld [vmem:[#allocation12 + $0x8c] ss:$16 sps:$4 sm:$0xff]  }
 0x2e7   : > { %v2091_v56 = vadd.f32 1.0, %v5187_v17  ;;  %6961 = vst [vmem:[#allocation41_spill] sm:$0xff] %v6400_v22  ;;  %v2260_v17 = vld [vmem:[%s2259_s24] sm:$0x1]  ;;  %s3173_s27 = sadd.s32 8, %s6573_s4  ;;  %s6587_s24 = sld [smem:[#allocation3 + %s6573_s4]] }
 0x2e8   : > { %5192 = vtanh.f32 %v6333_v3  ;;  %s6591_s28 = sld [smem:[#allocation3 + %s3173_s27]]  ;;  %s3147_s15 = scalar_lea.vmem [#allocation9], %s3146_s22 }
 0x2e9   : > { %5194 = vrcp.f32 %v2091_v56  ;;  %v2292_v56 = vld [vmem:[%s2291_s26] sm:$0x1]  ;;  %s3157_s26 = sadd.s32 4, %s6573_s4  ;;  %s3179_s17 = scalar_lea.vmem [#allocation9], %s3178_s13 }
 0x2ea   : > { %s6610_s27 = sld [smem:[#allocation3 + %s3193_s3]] }
 0x2ed   : > { %s3143_s22 = scalar_lea.vmem [#allocation9], %s6587_s24 }
 0x2ee   : > { %s3175_s13 = scalar_lea.vmem [#allocation9], %s6591_s28 }
 0x2f0   : > { %v5189_v12 = vpop.eup %5188 }
 0x2f2   : > { %v5191_v30 = vpop.eup %5190 }
 0x2f3   : > { %v2104_v19 = vmul.f32 %v5191_v30, %v5189_v12  ;;  %v2313_v12 = vrot.slane %v2256_v14, 6  ;;  %v2334_v30 = vrot.slane %v2288_v10, 6  ;;  %v2296_v14 = vld [vmem:[%s2295_s16] sm:$0x1]  ;;  %v2316_v10 = vrot.slane %v2260_v17, 5  ;;  %s3185_s16 = sadd.s32 11, %s6573_s4 }
 0x2f4   : > { %v2319_v17 = vrot.slane %v2264_v33, 4  ;;  %v2272_v33 = vld [vmem:[%s2271_s14] sm:$0x1]  ;;  %s6599_s14 = sld [smem:[#allocation3 + %s3157_s26]] }
 0x2f5   : > { %v5193_v40 = vpop.eup %5192  ;;  %v2352_v37 = vsel %vm554_vm1, %v2351_v13, %v2313_v12  ;;  %v6444_v13 = vld [vmem:[#allocation12 + $0x6c] ss:$16 sps:$4 sm:$0xff]   ;;  %s6616_s26 = sld [smem:[#allocation3 + %s3165_s23]] }
 0x2f6   : > { %v5195_v11 = vpop.eup %5194  ;;  %v2353_v12 = vsel %vm556_vm2, %v2352_v37, %v2316_v10  ;;  %6968 = vst [vmem:[#allocation47_spill] sm:$0xff] %v6444_v13  ;;  %v6456_v37 = vld [vmem:[#allocation10 + $0x60] ss:$16 sps:$4 sm:$0xff]  }
 0x2f7   : > { %v2105_v43 = vmul.f32 %v5195_v11, %v5193_v40  ;;  %v6410_v40 = vld [vmem:[#allocation12 + $0xa8] ss:$16 sps:$4 sm:$0xff]   ;;  %v6963_v11 = vmov 0  }
 0x2f8   : > { %6962 = vst [vmem:[#allocation42_spill] sm:$0xff] %v6410_v40 }
 0x2f9   : > { %v6377_v55 = vpack.c.bf16 %v2105_v43, %v2104_v19  ;;  %v2358_v19 = vsel %vm552_vm0, %v2280_v6, %v2331_v2  ;;  %v6418_v43 = vld [vmem:[#allocation10 + $0xa0] ss:$16 sps:$4 sm:$0xff]   ;;  %v6428_v2 = vld [vmem:[#allocation10 + $0x84] ss:$16 sps:$4 sm:$0xff]  }
 0x2fa   : > { %6964 = vst [vmem:[#allocation43_spill] sm:$0xff] %v6418_v43  ;;  %6965 = vst [vmem:[#allocation44_spill] sm:$0xff] %v6428_v2  ;;  %v2359_v6 = vsel %vm554_vm1, %v2358_v19, %v2334_v30  ;;  %v6446_v19 = vld [vmem:[#allocation10 + $0x64] ss:$16 sps:$4 sm:$0xff]   ;;  %s3159_s23 = scalar_lea.vmem [#allocation9], %s6599_s14 }
 0x2fb   : > { %4715 = vmatmul.mubr.bf16.vlgmr.msra.gmra.mxu1 %v6377_v55  ;;  %2625 = vmatmul.mubr.bf16.vlgmr.msra.gmra.mxu0 %v6377_v55  ;;  %6969 = vst [vmem:[#allocation48_spill] sm:$0xff] %v6446_v19 }
 0x2fc   : > { %2636 = vmatpush1.bf16.msra.mxu1 %v6368_v15  ;;  %2839 = vmatpush1.bf16.msra.mxu0 %v6372_v21 }
 0x2fd   : > { %2637 = vmatprep.subr.bf16.mxu1 %v6374_v38  ;;  %2840 = vmatprep.subr.bf16.mxu0 %v6379_v0  ;;  %v2337_v0 = vrot.slane %v2292_v56, 5  ;;  %v2340_v56 = vrot.slane %v2296_v14, 4  ;;  %v2304_v14 = vld [vmem:[%s2303_s5] sm:$0x1]  ;;  %v6450_v38 = vld [vmem:[#allocation12 + $0x68] ss:$16 sps:$4 sm:$0xff]  }
 0x2fe   : > { %2667 = vmatprep.mubr.bf16.mxu1 %v6963_v11  ;;  %2870 = vmatprep.mubr.bf16.mxu0 %v6963_v11  ;;  %s6601_s5 = sld [smem:[#allocation3 + %s3185_s16]]  ;;  %s3169_s16 = sadd.s32 7, %s6573_s4 }
 0x2ff   : > { %v2360_v30 = vsel %vm556_vm2, %v2359_v6, %v2337_v0  ;;  %v2354_v0 = vsel %vm558_vm3, %v2353_v12, %v2319_v17  ;;  %v6458_v6 = vld [vmem:[#allocation12 + $0x4c] ss:$16 sps:$4 sm:$0xff]   ;;  %v2325_v17 = vrot.slane %v2272_v33, 2 }
 0x300   : > { %2638 = vmatpush1.bf16.msra.mxu1 %v6383_v48  ;;  %2841 = vmatpush1.bf16.msra.mxu0 %v6385_v46  ;;  %v2268_v48 = vld [vmem:[%s2267_s30] sm:$0x1]  ;;  %v2361_v10 = vsel %vm558_vm3, %v2360_v30, %v2340_v56  ;;  %v2346_v56 = vrot.slane %v2304_v14, 2  ;;  %v6476_v33 = vld [vmem:[#allocation12 + $0x2c] ss:$16 sps:$4 sm:$0xff]   ;;  %s6596_s30 = sld [smem:[#allocation3 + %s3153_s1]] }
 0x301   : > { %2639 = vmatprep.subr.bf16.mxu1 %v6391_v23  ;;  %2842 = vmatprep.subr.bf16.mxu0 %v6400_v22  ;;  %v2300_v46 = vld [vmem:[%s2299_s20] sm:$0x1]  ;;  %v6436_v22 = vld [vmem:[#allocation12 + $0x88] ss:$16 sps:$4 sm:$0xff]   ;;  %v6478_v14 = vld [vmem:[#allocation10 + $0x24] ss:$16 sps:$4 sm:$0xff]  }
 0x302   : > { %6966 = vst [vmem:[#allocation45_spill] sm:$0xff] %v6436_v22  ;;  %v6438_v23 = vld [vmem:[#allocation10 + $0x80] ss:$16 sps:$4 sm:$0xff]   ;;  %s3161_s20 = sadd.s32 5, %s6573_s4  ;;  %s3151_s1 = scalar_lea.vmem [#allocation9], %s6582_s19 }
 0x303   : > { %6967 = vst [vmem:[#allocation46_spill] sm:$0xff] %v6438_v23  ;;  %s3201_s19 = sadd.s32 15, %s6573_s4 }
 0x304   : > { %2640 = vmatpush1.bf16.msra.mxu1 %v6410_v40  ;;  %2843 = vmatpush1.bf16.msra.mxu0 %v6418_v43  ;;  %v2322_v43 = vrot.slane %v2268_v48, 3  ;;  %v2343_v40 = vrot.slane %v2300_v46, 3  ;;  %v2276_v48 = vld [vmem:[%s2275_s2] sm:$0x1]  ;;  %s3189_s2 = sadd.s32 12, %s6573_s4  ;;  %s3187_s28 = scalar_lea.vmem [#allocation9], %s6601_s5 }
 0x305   : > { %2641 = vmatprep.subr.bf16.mxu1 %v6426_v27  ;;  %2844 = vmatprep.subr.bf16.mxu0 %v6428_v2  ;;  %v6460_v2 = vld [vmem:[#allocation10 + $0x44] ss:$16 sps:$4 sm:$0xff]   ;;  %v2308_v46 = vld [vmem:[%s2307_s9] sm:$0x1]  ;;  %s6604_s9 = sld [smem:[#allocation3 + %s3161_s20]]  ;;  %s3183_s20 = scalar_lea.vmem [#allocation9], %s6593_s7 }
 0x306   : > { %6970 = vst [vmem:[#allocation49_spill] sm:$0xff] %v6460_v2  ;;  %v2355_v12 = vsel %vm560_vm4, %v2354_v0, %v2322_v43  ;;  %v2362_v30 = vsel %vm560_vm4, %v2361_v10, %v2343_v40  ;;  %v6484_v0 = vld [vmem:[#allocation12 + $0x28] ss:$16 sps:$4 sm:$0xff]   ;;  %v6486_v10 = vld [vmem:[#allocation10 + $0x20] ss:$16 sps:$4 sm:$0xff]   ;;  %s6607_s18 = sld [smem:[#allocation3 + %s3189_s2]] }
 0x307   : > { %v2356_v40 = vsel %vm562_vm5, %v2355_v12, %v2325_v17  ;;  %v2363_v43 = vsel %vm562_vm5, %v2362_v30, %v2346_v56  ;;  %v6494_v17 = vld [vmem:[#allocation10 + $0x4] ss:$16 sps:$4 sm:$0xff]   ;;  %v6498_v30 = vld [vmem:[#allocation12 + $0x8] ss:$16 sps:$4 sm:$0xff]   ;;  %s6624_s2 = sld [smem:[#allocation3 + %s3197_s25]]  ;;  %s3155_s24 = scalar_lea.vmem [#allocation9], %s6596_s30 }
 0x308   : > { %2642 = vmatpush1.bf16.msra.mxu1 %v6436_v22  ;;  %2845 = vmatpush1.bf16.msra.mxu0 %v6438_v23  ;;  %v6470_v23 = vld [vmem:[#allocation12 + $0x48] ss:$16 sps:$4 sm:$0xff]   ;;  %v6472_v22 = vld [vmem:[#allocation10 + $0x40] ss:$16 sps:$4 sm:$0xff]   ;;  %s6629_s7 = sld [smem:[#allocation3 + %s3169_s16]]  ;;  %s3195_s5 = scalar_lea.vmem [#allocation9], %s6610_s27 }
 0x309   : > { %2643 = vmatprep.subr.bf16.mxu1 %v6444_v13  ;;  %2846 = vmatprep.subr.bf16.mxu0 %v6446_v19  ;;  %6971 = vst [vmem:[#allocation50_spill] sm:$0xff] %v6472_v22  ;;  %v2328_v13 = vrot.slane %v2276_v48, 1  ;;  %v2349_v19 = vrot.slane %v2308_v46, 1  ;;  %s6637_s4 = sld [smem:[#allocation3 + %s3201_s19]] }
 0x30b   : > { %v2357_v48 = vsel %vm564_vm6, %v2356_v40, %v2328_v13  ;;  %v2364_v46 = vsel %vm564_vm6, %v2363_v43, %v2349_v19  ;;  %v6972_v19 = vmov 0.0   ;;  %s3163_s14 = scalar_lea.vmem [#allocation9], %s6604_s9  ;;  %s3167_s9 = scalar_lea.vmem [#allocation9], %s6616_s26 }
 0x30c   : > { %2644 = vmatpush1.bf16.msra.mxu1 %v6450_v38  ;;  %2847 = vmatpush1.bf16.msra.mxu0 %v6456_v37  ;;  %v2365_v56 = vmax.f32 %v2357_v48, 0.0  ;;  %v2366_v12 = vmax.f32 %v2364_v46, 0.0  ;;  %s3191_s30 = scalar_lea.vmem [#allocation9], %s6607_s18  ;;  %s5619_s26 = smov [#allocation16]  }
 0x30d   : > { %2645 = vmatprep.subr.bf16.mxu1 %v6458_v6  ;;  %2848 = vmatprep.subr.bf16.mxu0 %v6460_v2  ;;  %v6492_v2 = vld [vmem:[#allocation12 + $0xc] ss:$16 sps:$4 sm:$0xff]   ;;  %s3199_s18 = scalar_lea.vmem [#allocation9], %s6624_s2  ;;  %s4068_s16 = sshll.u32 %s5619_s26, 4  ;;  %s4069_s16 = int_to_ptr.vmem [resolvable:$true] %s4068_s16 }
 0x30e   : > { %v2367_v13 = vpack.c.bf16 %v2366_v12, %v2365_v56  ;;  %s3171_s3 = scalar_lea.vmem [#allocation9], %s6629_s7  ;;  %p5478_p2 = scmp.lt.s32.totalorder %s4069_s16, %s4069_s16 }
 0x310   : > { %2646 = vmatpush1.bf16.msra.mxu1 %v6470_v23  ;;  %2849 = vmatpush1.bf16.msra.mxu0 %v6472_v22  ;;  %v6500_v22 = vld [vmem:[#allocation10] ss:$16 sps:$4 sm:$0xff]  }
 0x311   : > { %2647 = vmatprep.subr.bf16.mxu1 %v6476_v33  ;;  %2850 = vmatprep.subr.bf16.mxu0 %v6478_v14 }
 0x314   : > { %2648 = vmatpush1.bf16.msra.mxu1 %v6484_v0  ;;  %2851 = vmatpush1.bf16.msra.mxu0 %v6486_v10 }
 0x315   : > { %2649 = vmatprep.subr.bf16.mxu1 %v6492_v2  ;;  %2852 = vmatprep.subr.bf16.mxu0 %v6494_v17 }
 0x318   : > { %2650 = vmatpush1.bf16.msra.mxu1 %v6498_v30  ;;  %2853 = vmatpush1.bf16.msra.mxu0 %v6500_v22 }
 0x319   : > { %2881 = vmatprep.subr.bf16.mxu1 %v6189_v29  ;;  %4718 = vmatprep.subr.bf16.mxu0 %v6972_v19  ;;  %v5092_v29 = vld [vmem:[#allocation13 + $0x38] sm:$0xff]  }
 0x31b   : > { %2668 = vmatmul.mubr.bf16.vlgmr.msra.gmra.mxu1 %v6377_v55  ;;  %2871 = vmatmul.mubr.bf16.vlgmr.msra.gmra.mxu0 %v2367_v13 }
 0x31c   : > { %2882 = vmatpush1.bf16.msra.mxu1 %v6192_v31  ;;  %2913 = vmatprep.mubr.bf16.mxu1 %v6963_v11  ;;  %v5093_v31 = vld [vmem:[#allocation13 + $0x30] sm:$0xff]  }
 0x31d   : > { %2883 = vmatprep.subr.bf16.mxu1 %v6195_v49  ;;  %4734 = vmatprep.mubr.msk.bf16.mxu0 %vm5618_vm7, %v6972_v19  ;;  %v5094_v49 = vld [vmem:[#allocation13 + $0x28] sm:$0xff]  }
 0x31e   : > { %4719 = vmatpush3.bf16.msra.mxu0 %v5092_v29 }
 0x31f   : > { %4720 = vmatprep.subr.bf16.mxu0 %v6972_v19 }
 0x320   : > { %2884 = vmatpush1.bf16.msra.mxu1 %v6200_v63  ;;  %v5095_v63 = vld [vmem:[#allocation13 + $0x20] sm:$0xff]  }
 0x321   : > { %2885 = vmatprep.subr.bf16.mxu1 %v6204_v18  ;;  %v5096_v18 = vld [vmem:[#allocation13 + $0x18] sm:$0xff]  }
 0x322   : > { %4721 = vmatpush3.bf16.msra.mxu0 %v5093_v31 }
 0x323   : > { %4722 = vmatprep.subr.bf16.mxu0 %v6972_v19 }
 0x324   : > { %2886 = vmatpush1.bf16.msra.mxu1 %v6209_v26  ;;  %v5097_v26 = vld [vmem:[#allocation13 + $0x10] sm:$0xff]  }
 0x325   : > { %2887 = vmatprep.subr.bf16.mxu1 %v6212_v9  ;;  %v5098_v9 = vld [vmem:[#allocation13 + $0x8] sm:$0xff]  }
 0x326   : > { %4723 = vmatpush3.bf16.msra.mxu0 %v5094_v49 }
 0x327   : > { %4724 = vmatprep.subr.bf16.mxu0 %v6972_v19 }
 0x328   : > { %2888 = vmatpush1.bf16.msra.mxu1 %v6215_v35  ;;  %v5099_v35 = vld [vmem:[#allocation13] sm:$0xff]  }
 0x329   : > { %2889 = vmatprep.subr.bf16.mxu1 %v6218_v42 }
 0x32a   : > { %4725 = vmatpush3.bf16.msra.mxu0 %v5095_v63 }
 0x32b   : > { %4726 = vmatprep.subr.bf16.mxu0 %v6972_v19 }
 0x32c   : > { %2890 = vmatpush1.bf16.msra.mxu1 %v6221_v45 }
 0x32d   : > { %2891 = vmatprep.subr.bf16.mxu1 %v6224_v44 }
 0x32e   : > { %4727 = vmatpush3.bf16.msra.mxu0 %v5096_v18 }
 0x32f   : > { %4728 = vmatprep.subr.bf16.mxu0 %v6972_v19 }
 0x330   : > { %2892 = vmatpush1.bf16.msra.mxu1 %v6227_v25 }
 0x331   : > { %2893 = vmatprep.subr.bf16.mxu1 %v6230_v5 }
 0x332   : > { %4729 = vmatpush3.bf16.msra.mxu0 %v5097_v26 }
 0x333   : > { %4730 = vmatprep.subr.bf16.mxu0 %v6972_v19 }
 0x334   : > { %2894 = vmatpush1.bf16.msra.mxu1 %v6233_v41 }
 0x335   : > { %2895 = vmatprep.subr.bf16.mxu1 %v6236_v39 }
 0x336   : > { %4731 = vmatpush3.bf16.msra.mxu0 %v5098_v9 }
 0x337   : > { %4732 = vmatprep.subr.bf16.mxu0 %v6972_v19 }
 0x338   : > { %2896 = vmatpush1.bf16.msra.mxu1 %v6239_v47 }
 0x339   : > { %3488 = vmatprep.subr.bf16.mxu1 %v6244_v51 }
 0x33a   : > { %4733 = vmatpush3.bf16.msra.mxu0 %v5099_v35 }
 0x33b   : > { %2914 = vmatmul.mubr.bf16.vlgmr.msra.gmra.mxu1 %v2367_v13  ;;  %3531 = vmatprep.subr.bf16.mxu0 %v6298_v36 }
 0x33c   : > { %3489 = vmatpush1.bf16.msra.mxu1 %v6246_v53  ;;  %3520 = vmatprep.mubr.bf16.mxu1 %v6963_v11 }
 0x33d   : > { %3490 = vmatprep.subr.bf16.mxu1 %v6251_v57 }
 0x340   : > { %3491 = vmatpush1.bf16.msra.mxu1 %v6253_v58  ;;  %v2924_v58 = vld [vmem:[%s6866_s6] sm:$0xf] }
 0x341   : > { %3492 = vmatprep.subr.bf16.mxu1 %v6258_v59  ;;  %v2937_v63 = vrot.slane %v2924_v58, %v6084_v28 }
 0x344   : > { %3493 = vmatpush1.bf16.msra.mxu1 %v6260_v60 }
 0x345   : > { %3494 = vmatprep.subr.bf16.mxu1 %v6265_v61  ;;  %v6973_v61 = vld [vmem:[#allocation32_spill] sm:$0xff] }
 0x348   : > { %3495 = vmatpush1.bf16.msra.mxu1 %v6267_v62  ;;  %v2929_v62 = vrot.slane %v2924_v58, %v6973_v61 }
 0x349   : > { %3496 = vmatprep.subr.bf16.mxu1 %v6274_v1  ;;  %v6974_v1 = vld [vmem:[#allocation33_spill] sm:$0xff] }
 0x34c   : > { %3497 = vmatpush1.bf16.msra.mxu1 %v6272_v8 }
 0x34d   : > { %3498 = vmatprep.subr.bf16.mxu1 %v6276_v50  ;;  %v2933_v50 = vrot.slane %v2924_v58, %v6974_v1 }
 0x350   : > { %3499 = vmatpush1.bf16.msra.mxu1 %v6280_v16 }
 0x351   : > { %3500 = vmatprep.subr.bf16.mxu1 %v6284_v52 }
 0x354   : > { %3501 = vmatpush1.bf16.msra.mxu1 %v6287_v24 }
 0x355   : > { %3502 = vmatprep.subr.bf16.mxu1 %v6291_v32 }
 0x358   : > { %3503 = vmatpush1.bf16.msra.mxu1 %v6294_v34 }
 0x359   : > { %3734 = vmatprep.subr.bf16.mxu1 %v6300_v4 }
 0x3bb   : > { %v2212_v42 = vpop.f32.mrf.mxu1  ;;  %v2626_v39 = vpop.f32.mrf.mxu0 }
 0x3bc   : > { %v6554_v45 = vadd.f32 %v6308_v54, %v2212_v42 }
 0x3bd   : > { %v4716_v44 = vpop.f32.mrf.mxu1  ;;  %v2628_v47 = vpop.f32.mrf.mxu0 }
 0x3be   : > { %2219 = vmax.xlane.f32.xlu1 %v6554_v45  ;;  %v2941_v44 = vrot.slane %v2924_v58, %v6082_v20 }
 0x3bf   : > { %v2215_v25 = vpop.f32.mrf.mxu1  ;;  %v2630_v51 = vpop.f32.mrf.mxu0 }
 0x3c0   : > { %v6558_v5 = vadd.f32 %v6308_v54, %v2215_v25 }
 0x3c1   : > { %v4717_v41 = vpop.f32.mrf.mxu1  ;;  %v2632_v53 = vpop.f32.mrf.mxu0 }
 0x3c2   : > { %2221 = vmax.xlane.f32.xlu1 %v6558_v5 }
 0x3db   : > { %v2872_v57 = vpop.f32.mrf.mxu0  ;;  %v2669_v46 = vpop.f32.mrf.mxu1 }
 0x3dc   : > { %v2873_v60 = vadd.f32 %v2872_v57, %v2626_v39 }
 0x3dd   : > { %v2874_v59 = vpop.f32.mrf.mxu0  ;;  %v2671_v56 = vpop.f32.mrf.mxu1 }
 0x3de   : > { %v2875_v8 = vadd.f32 %v2874_v59, %v2628_v47  ;;  %v2946_v24 = vadd.f32 %v2929_v62, %v2873_v60 }
 0x3df   : > { %v2876_v16 = vpop.f32.mrf.mxu0  ;;  %v2673_v12 = vpop.f32.mrf.mxu1 }
 0x3e0   : > { %v2877_v32 = vadd.f32 %v2876_v16, %v2630_v51  ;;  %v2947_v34 = vadd.f32 %v2933_v50, %v2875_v8  ;;  %v4521_v4 = vmul.f32 -1.442695, %v2946_v24 }
 0x3e1   : > { %v2878_v52 = vpop.f32.mrf.mxu0  ;;  %v2675_v31 = vpop.f32.mrf.mxu1 }
 0x3e2   : > { %v2879_v36 = vadd.f32 %v2878_v52, %v2632_v53  ;;  %v2950_v54 = vadd.f32 %v2929_v62, %v2877_v32  ;;  %v4523_v55 = vmul.f32 -1.442695, %v2947_v34  ;;  %5196 = vpow2.f32 %v4521_v4 }
 0x3e4   : > { %v2951_v40 = vadd.f32 %v2933_v50, %v2879_v36  ;;  %v4522_v43 = vmul.f32 -1.442695, %v2950_v54  ;;  %5198 = vpow2.f32 %v4523_v55 }
 0x3e6   : > { %v4524_v48 = vmul.f32 -1.442695, %v2951_v40  ;;  %5200 = vpow2.f32 %v4522_v43 }
 0x3e8   : > { %5202 = vpow2.f32 %v4524_v48 }
 0x3ef   : > { %v5197_v13 = vpop.eup %5196 }
 0x3f0   : > { %v2960_v49 = vadd.f32 1.0, %v5197_v13 }
 0x3f1   : > { %v5199_v29 = vpop.eup %5198 }
 0x3f2   : > { %v2972_v26 = vadd.f32 1.0, %v5199_v29  ;;  %5204 = vrcp.f32 %v2960_v49 }
 0x3f3   : > { %v5201_v18 = vpop.eup %5200 }
 0x3f4   : > { %v2961_v41 = vadd.f32 1.0, %v5201_v18  ;;  %5206 = vrcp.f32 %v2972_v26  ;;  %v3148_v26 = vld [vmem:[%s3147_s15] sm:$0x1]  ;;  %s3203_s15 = scalar_lea.vmem [#allocation9], %s6637_s4 }
 0x3f5   : > { %v5203_v35 = vpop.eup %5202 }
 0x3f6   : > { %v2973_v51 = vadd.f32 1.0, %v5203_v35 }
 0x3fb   : > { %v2915_v9 = vpop.f32.mrf.mxu1 }
 0x3fc   : > { %v2916_v42 = vadd.f32 %v2915_v9, %v2669_v46  ;;  %v3180_v9 = vld [vmem:[%s3179_s17] sm:$0x1] }
 0x3fd   : > { %v2917_v25 = vpop.f32.mrf.mxu1 }
 0x3fe   : > { %v2948_v39 = vadd.f32 %v2937_v63, %v2916_v42  ;;  %v2918_v47 = vadd.f32 %v2917_v25, %v2671_v56  ;;  %v3152_v42 = vld [vmem:[%s3151_s1] sm:$0x1]  ;;  %v3206_v25 = vrot.slane %v3148_v26, 7 }
 0x3ff   : > { %v2919_v53 = vpop.f32.mrf.mxu1  ;;  %v5205_v52 = vpop.eup %5204 }
 0x400   : > { %5208 = vtanh.f32 %v2948_v39  ;;  %v2949_v57 = vadd.f32 %v2941_v44, %v2918_v47  ;;  %v2920_v59 = vadd.f32 %v2919_v53, %v2673_v12  ;;  %v3144_v39 = vld [vmem:[%s3143_s22] sm:$0x1] }
 0x401   : > { %v2921_v60 = vpop.f32.mrf.mxu1  ;;  %5210 = vrcp.f32 %v2961_v41  ;;  %v5207_v24 = vpop.eup %5206  ;;  %v3227_v41 = vrot.slane %v3180_v9, 7  ;;  %v3176_v47 = vld [vmem:[%s3175_s13] sm:$0x1]  ;;  %v6984_v9 = vld [vmem:[#allocation45_spill] sm:$0xff] }
 0x402   : > { %v4525_v62 = vmul.f32 -1.442695, %v2949_v57  ;;  %v2952_v8 = vadd.f32 %v2937_v63, %v2920_v59  ;;  %v2922_v50 = vadd.f32 %v2921_v60, %v2675_v31  ;;  %5212 = vrcp.f32 %v2973_v51  ;;  %v6975_v53 = vld [vmem:[#allocation36_spill] sm:$0xff]  ;;  %v6976_v57 = vld [vmem:[#allocation37_spill] sm:$0xff] }
 0x403   : > { %v2992_v4 = vmul.f32 %v5207_v24, %v6326_v7  ;;  %v3209_v51 = vrot.slane %v3152_v42, 6  ;;  %v3156_v59 = vld [vmem:[%s3155_s24] sm:$0x1]  ;;  %v6985_v42 = vld [vmem:[#allocation46_spill] sm:$0xff] }
 0x404   : > { %5214 = vpow2.f32 %v4525_v62  ;;  %v2953_v16 = vadd.f32 %v2941_v44, %v2922_v50  ;;  %v3184_v44 = vld [vmem:[%s3183_s20] sm:$0x1]  ;;  %v6977_v50 = vld [vmem:[#allocation38_spill] sm:$0xff]  ;;  %s5471_s20 = scalar_lea.vmem %s4069_s16, 256 }
 0x405   : > { %5216 = vtanh.f32 %v2952_v8  ;;  %v3188_v60 = vld [vmem:[%s3187_s28] sm:$0x1]  ;;  %v3230_v62 = vrot.slane %v3184_v44, 6  ;;  %v6986_v44 = vld [vmem:[#allocation47_spill] sm:$0xff]  ;;  %p5472_p6 = scmp.ne.s32.totalorder %s4069_s16, %s5471_s20  ;;  %p5479_p0 = scmp.lt.s32.totalorder %s5471_s20, %s5471_s20 }
 0x406   : > { %v4526_v58 = vmul.f32 -1.442695, %v2953_v16  ;;  %v3160_v8 = vld [vmem:[%s3159_s23] sm:$0x1]  ;;  %v6978_v16 = vld [vmem:[#allocation39_spill] sm:$0xff]  ;;  %v3233_v24 = vrot.slane %v3188_v60, 5 }
 0x407   : > { %v6988_v60 = vld [vmem:[#allocation49_spill] sm:$0xff]  ;;  %p5473_p4 = pnand %p5472_p6, %p6992_p10  ;;  %p5480_p8 = por %p5479_p0, %p5478_p2 }
 0x408   : > { %5218 = vpow2.f32 %v4526_v58  ;;  %v3192_v58 = vld [vmem:[%s3191_s30] sm:$0x1] }
 0x409   : > { %p5474_p7 = pneg %p5473_p4 }
 0x40b   : > { %p5481_p9 = pnand %p5480_p8, %p5474_p7 }
 0x40d   : > { %v5209_v32 = vpop.eup %5208 }
 0x40e   : > { %v2994_v34 = vmul.f32 %v5209_v32, %v5205_v52  ;;  %v5211_v36 = vpop.eup %5210  ;;  %v3212_v52 = vrot.slane %v3156_v59, 5  ;;  %v6979_v32 = vld [vmem:[#allocation40_spill] sm:$0xff] }
 0x40f   : > { %v5213_v54 = vpop.eup %5212 }
 0x410   : > { %v6569_v40 = vadd.f32 %v2994_v34, %v2992_v4  ;;  %v2993_v46 = vmul.f32 %v5213_v54, %v6333_v3  ;;  %v6980_v34 = vld [vmem:[#allocation41_spill] sm:$0xff]  ;;  %v3164_v54 = vld [vmem:[%s3163_s14] sm:$0x1] }
 0x411   : > { %v5215_v55 = vpop.eup %5214 }
 0x412   : > { %v5217_v43 = vpop.eup %5216  ;;  %v2986_v48 = vadd.f32 1.0, %v5215_v55  ;;  %5220 = vtanh.f32 %v6569_v40  ;;  %v3196_v55 = vld [vmem:[%s3195_s5] sm:$0x1] }
 0x413   : > { %v2995_v56 = vmul.f32 %v5217_v43, %v5211_v36  ;;  %v3215_v43 = vrot.slane %v3160_v8, 4 }
 0x414   : > { %5222 = vrcp.f32 %v2986_v48  ;;  %v3236_v48 = vrot.slane %v3192_v58, 4  ;;  %v5115_v58 = vld [vmem:[#allocation10 + $0x48] ss:$16 sps:$4 sm:$0xff]  }
 0x415   : > { %v5219_v12 = vpop.eup %5218  ;;  %v6576_v7 = vadd.f32 %v2995_v56, %v2993_v46  ;;  %v6981_v46 = vld [vmem:[#allocation42_spill] sm:$0xff]  ;;  %v6982_v56 = vld [vmem:[#allocation43_spill] sm:$0xff] }
 0x416   : > { %v2987_v13 = vadd.f32 1.0, %v5219_v12 }
 0x417   : > { %5224 = vtanh.f32 %v6576_v7 }
 0x418   : > { %5226 = vrcp.f32 %v2987_v13 }
 0x41f   : > { %v5221_v3 = vpop.eup %5220 }
 0x421   : > { %v5223_v29 = vpop.eup %5222 }
 0x422   : > { %v3000_v63 = vmul.f32 %v5223_v29, %v5221_v3  ;;  %v6983_v3 = vld [vmem:[#allocation44_spill] sm:$0xff] }
 0x423   : > { %v3168_v29 = vld [vmem:[%s3167_s9] sm:$0x1] }
 0x424   : > { %v5225_v31 = vpop.eup %5224 }
 0x425   : > { %v5227_v49 = vpop.eup %5226 }
 0x426   : > { %v3001_v18 = vmul.f32 %v5227_v49, %v5225_v31  ;;  %v3200_v31 = vld [vmem:[%s3199_s18] sm:$0x1]  ;;  %v3218_v49 = vrot.slane %v3164_v54, 3 }
 0x427   : > { %v5127_v54 = vld [vmem:[#allocation13 + $0x20] sm:$0xff]  }
 0x428   : > { %v6613_v35 = vpack.c.bf16 %v3001_v18, %v3000_v63  ;;  %v3239_v63 = vrot.slane %v3196_v55, 3  ;;  %v5128_v55 = vld [vmem:[#allocation13 + $0x18] sm:$0xff]  }
 0x42a   : > { %4735 = vmatmul.mubr.bf16.vlgmr.msra.gmra.mxu0 %v6613_v35  ;;  %3521 = vmatmul.mubr.bf16.vlgmr.msra.gmra.mxu1 %v6613_v35 }
 0x42b   : > { %3532 = vmatpush1.bf16.msra.mxu0 %v6368_v15  ;;  %3735 = vmatpush1.bf16.msra.mxu1 %v6372_v21  ;;  %v3247_v15 = vsel %vm552_vm0, %v3144_v39, %v3206_v25  ;;  %v3254_v21 = vsel %vm552_vm0, %v3176_v47, %v3227_v41  ;;  %v3172_v25 = vld [vmem:[%s3171_s3] sm:$0x1]  ;;  %v3221_v39 = vrot.slane %v3168_v29, 2  ;;  %v3242_v47 = vrot.slane %v3200_v31, 2 }
 0x42c   : > { %3533 = vmatprep.subr.bf16.mxu0 %v6975_v53  ;;  %3736 = vmatprep.subr.bf16.mxu1 %v6976_v57  ;;  %v3248_v36 = vsel %vm554_vm1, %v3247_v15, %v3209_v51  ;;  %v3255_v4 = vsel %vm554_vm1, %v3254_v21, %v3230_v62  ;;  %v3204_v41 = vld [vmem:[%s3203_s15] sm:$0x1]  ;;  %v3224_v57 = vrot.slane %v3172_v25, 1  ;;  %v6989_v21 = vld [vmem:[#allocation50_spill] sm:$0xff] }
 0x42d   : > { %3563 = vmatprep.mubr.bf16.mxu0 %v6963_v11  ;;  %3766 = vmatprep.mubr.bf16.mxu1 %v6963_v11  ;;  %v3249_v12 = vsel %vm556_vm2, %v3248_v36, %v3212_v52  ;;  %v3256_v13 = vsel %vm556_vm2, %v3255_v4, %v3233_v24  ;;  %v3245_v59 = vrot.slane %v3204_v41, 1  ;;  %v5118_v52 = vld [vmem:[#allocation10 + $0x28] ss:$16 sps:$4 sm:$0xff]   ;;  %v5123_v24 = vld [vmem:[#allocation10 + $0xc] ss:$16 sps:$4 sm:$0xff]   ;;  %v5125_v36 = vld [vmem:[#allocation13 + $0x30] sm:$0xff]  }
 0x42e   : > { %v3250_v18 = vsel %vm558_vm3, %v3249_v12, %v3215_v43  ;;  %v3257_v26 = vsel %vm558_vm3, %v3256_v13, %v3236_v48  ;;  %v5126_v4 = vld [vmem:[#allocation13 + $0x28] sm:$0xff]   ;;  %v5129_v43 = vld [vmem:[#allocation13 + $0x10] sm:$0xff]  }
 0x42f   : > { %3534 = vmatpush1.bf16.msra.mxu0 %v6977_v50  ;;  %3737 = vmatpush1.bf16.msra.mxu1 %v6978_v16  ;;  %v3251_v51 = vsel %vm560_vm4, %v3250_v18, %v3218_v49  ;;  %v3258_v53 = vsel %vm560_vm4, %v3257_v26, %v3239_v63  ;;  %v5100_v16 = vld [vmem:[#allocation10 + $0xe8] ss:$16 sps:$4 sm:$0xff]  }
 0x430   : > { %3535 = vmatprep.subr.bf16.mxu0 %v6979_v32  ;;  %3738 = vmatprep.subr.bf16.mxu1 %v6980_v34  ;;  %v3252_v62 = vsel %vm562_vm5, %v3251_v51, %v3221_v39  ;;  %v3259_v15 = vsel %vm562_vm5, %v3258_v53, %v3242_v47  ;;  %v5121_v32 = vld [vmem:[#allocation10 + $0x8] ss:$16 sps:$4 sm:$0xff]  }
 0x431   : > { %v3253_v8 = vsel %vm564_vm6, %v3252_v62, %v3224_v57  ;;  %v5124_v34 = vld [vmem:[#allocation13 + $0x38] sm:$0xff]   ;;  %v5130_v48 = vld [vmem:[#allocation13 + $0x8] sm:$0xff]  }
 0x433   : > { %3536 = vmatpush1.bf16.msra.mxu0 %v6981_v46  ;;  %3739 = vmatpush1.bf16.msra.mxu1 %v6982_v56  ;;  %v5131_v46 = vld [vmem:[#allocation13] sm:$0xff]  }
 0x434   : > { %3537 = vmatprep.subr.bf16.mxu0 %v6426_v27  ;;  %3740 = vmatprep.subr.bf16.mxu1 %v6983_v3  ;;  %v6987_v27 = vld [vmem:[#allocation48_spill] sm:$0xff] }
 0x435   : > { %v6702_v56 = vld [vmem:[%s6868_s8] ss:$0 sm:$0xff] }
 0x437   : > { %3538 = vmatpush1.bf16.msra.mxu0 %v6984_v9  ;;  %3741 = vmatpush1.bf16.msra.mxu1 %v6985_v42  ;;  %v3820_v42 = vld [vmem:[%s6866_s6] sm:$0xf] }
 0x438   : > { %3539 = vmatprep.subr.bf16.mxu0 %v6986_v44  ;;  %3742 = vmatprep.subr.bf16.mxu1 %v6987_v27  ;;  %v3829_v25 = vrot.slane %v3820_v42, %v6974_v1  ;;  %v3825_v39 = vrot.slane %v3820_v42, %v6973_v61 }
 0x43b   : > { %3540 = vmatpush1.bf16.msra.mxu0 %v6450_v38  ;;  %3743 = vmatpush1.bf16.msra.mxu1 %v6456_v37  ;;  %v3260_v38 = vsel %vm564_vm6, %v3259_v15, %v3245_v59  ;;  %v3261_v37 = vmax.f32 %v3253_v8, 0.0 }
 0x43c   : > { %3541 = vmatprep.subr.bf16.mxu0 %v6458_v6  ;;  %3744 = vmatprep.subr.bf16.mxu1 %v6988_v60  ;;  %v3262_v6 = vmax.f32 %v3260_v38, 0.0 }
 0x43e   : > { %v3263_v50 = vpack.c.bf16 %v3262_v6, %v3261_v37 }
 0x43f   : > { %3542 = vmatpush1.bf16.msra.mxu0 %v6470_v23  ;;  %3745 = vmatpush1.bf16.msra.mxu1 %v6989_v21  ;;  %v5102_v23 = vld [vmem:[#allocation10 + $0xec] ss:$16 sps:$4 sm:$0xff]  }
 0x440   : > { %3543 = vmatprep.subr.bf16.mxu0 %v6476_v33  ;;  %3746 = vmatprep.subr.bf16.mxu1 %v6478_v14  ;;  %v5105_v33 = vld [vmem:[#allocation10 + $0xcc] ss:$16 sps:$4 sm:$0xff]   ;;  %v5103_v14 = vld [vmem:[#allocation10 + $0xc8] ss:$16 sps:$4 sm:$0xff]  }
 0x443   : > { %3544 = vmatpush1.bf16.msra.mxu0 %v6484_v0  ;;  %3747 = vmatpush1.bf16.msra.mxu1 %v6486_v10  ;;  %v5106_v0 = vld [vmem:[#allocation10 + $0xa8] ss:$16 sps:$4 sm:$0xff]  }
 0x444   : > { %3545 = vmatprep.subr.bf16.mxu0 %v6492_v2  ;;  %3748 = vmatprep.subr.bf16.mxu1 %v6494_v17  ;;  %v5108_v2 = vld [vmem:[#allocation10 + $0xac] ss:$16 sps:$4 sm:$0xff]   ;;  %v5109_v10 = vld [vmem:[#allocation10 + $0x88] ss:$16 sps:$4 sm:$0xff]  }
 0x445   : > { %v5114_v17 = vld [vmem:[#allocation10 + $0x6c] ss:$16 sps:$4 sm:$0xff]  }
 0x447   : > { %3546 = vmatpush1.bf16.msra.mxu0 %v6498_v30  ;;  %3749 = vmatpush1.bf16.msra.mxu1 %v6500_v22  ;;  %v5111_v22 = vld [vmem:[#allocation10 + $0x8c] ss:$16 sps:$4 sm:$0xff]   ;;  %v5112_v30 = vld [vmem:[#allocation10 + $0x68] ss:$16 sps:$4 sm:$0xff]  }
 0x448   : > { %3777 = vmatprep.subr.bf16.mxu0 %v5102_v23  ;;  %4738 = vmatprep.subr.bf16.mxu1 %v6972_v19 }
 0x44a   : > { %3564 = vmatmul.mubr.bf16.vlgmr.msra.gmra.mxu0 %v6613_v35  ;;  %3767 = vmatmul.mubr.bf16.vlgmr.msra.gmra.mxu1 %v3263_v50  ;;  %v5117_v35 = vld [vmem:[#allocation10 + $0x4c] ss:$16 sps:$4 sm:$0xff]  }
 0x44b   : > { %3778 = vmatpush1.bf16.msra.mxu0 %v5100_v16  ;;  %3809 = vmatprep.mubr.bf16.mxu0 %v6963_v11  ;;  %v5120_v11 = vld [vmem:[#allocation10 + $0x2c] ss:$16 sps:$4 sm:$0xff]  }
 0x44c   : > { %3779 = vmatprep.subr.bf16.mxu0 %v5105_v33  ;;  %4754 = vmatprep.mubr.msk.bf16.mxu1 %vm5618_vm7, %v6972_v19 }
 0x44d   : > { %4739 = vmatpush3.bf16.msra.mxu1 %v5124_v34 }
 0x44e   : > { %4740 = vmatprep.subr.bf16.mxu1 %v6972_v19 }
 0x44f   : > { %3780 = vmatpush1.bf16.msra.mxu0 %v5103_v14  ;;  %v3833_v14 = vrot.slane %v3820_v42, %v6084_v28 }
 0x450   : > { %3781 = vmatprep.subr.bf16.mxu0 %v5108_v2 }
 0x451   : > { %4741 = vmatpush3.bf16.msra.mxu1 %v5125_v36 }
 0x452   : > { %4742 = vmatprep.subr.bf16.mxu1 %v6972_v19 }
 0x453   : > { %3782 = vmatpush1.bf16.msra.mxu0 %v5106_v0 }
 0x454   : > { %3783 = vmatprep.subr.bf16.mxu0 %v5111_v22 }
 0x455   : > { %4743 = vmatpush3.bf16.msra.mxu1 %v5126_v4 }
 0x456   : > { %4744 = vmatprep.subr.bf16.mxu1 %v6972_v19 }
 0x457   : > { %3784 = vmatpush1.bf16.msra.mxu0 %v5109_v10 }
 0x458   : > { %3785 = vmatprep.subr.bf16.mxu0 %v5114_v17 }
 0x459   : > { %4745 = vmatpush3.bf16.msra.mxu1 %v5127_v54 }
 0x45a   : > { %4746 = vmatprep.subr.bf16.mxu1 %v6972_v19 }
 0x45b   : > { %3786 = vmatpush1.bf16.msra.mxu0 %v5112_v30  ;;  %v3837_v30 = vrot.slane %v3820_v42, %v6082_v20 }
 0x45c   : > { %3787 = vmatprep.subr.bf16.mxu0 %v5117_v35 }
 0x45d   : > { %4747 = vmatpush3.bf16.msra.mxu1 %v5128_v55 }
 0x45e   : > { %4748 = vmatprep.subr.bf16.mxu1 %v6972_v19 }
 0x45f   : > { %3788 = vmatpush1.bf16.msra.mxu0 %v5115_v58 }
 0x460   : > { %3789 = vmatprep.subr.bf16.mxu0 %v5120_v11 }
 0x461   : > { %4749 = vmatpush3.bf16.msra.mxu1 %v5129_v43 }
 0x462   : > { %4750 = vmatprep.subr.bf16.mxu1 %v6972_v19 }
 0x463   : > { %3790 = vmatpush1.bf16.msra.mxu0 %v5118_v52 }
 0x464   : > { %3791 = vmatprep.subr.bf16.mxu0 %v5123_v24 }
 0x465   : > { %4751 = vmatpush3.bf16.msra.mxu1 %v5130_v48 }
 0x466   : > { %4752 = vmatprep.subr.bf16.mxu1 %v6972_v19 }
 0x467   : > { %3792 = vmatpush1.bf16.msra.mxu0 %v5121_v32 }
 0x469   : > { %4753 = vmatpush3.bf16.msra.mxu1 %v5131_v46 }
 0x46a   : > { %3810 = vmatmul.mubr.bf16.vlgmr.msra.gmra.mxu0 %v3263_v50 }
 0x4ea   : > { %v3108_v12 = vpop.f32.mrf.mxu0  ;;  %v3522_v19 = vpop.f32.mrf.mxu1 }
 0x4eb   : > { %v6705_v13 = vadd.f32 %v6702_v56, %v3108_v12 }
 0x4ec   : > { %v4736_v3 = vpop.f32.mrf.mxu0  ;;  %v3524_v63 = vpop.f32.mrf.mxu1 }
 0x4ed   : > { %3115 = vmax.xlane.f32.xlu0 %v6705_v13 }
 0x4ee   : > { %v3111_v29 = vpop.f32.mrf.mxu0  ;;  %v3526_v18 = vpop.f32.mrf.mxu1 }
 0x4ef   : > { %v6709_v31 = vadd.f32 %v6702_v56, %v3111_v29 }
 0x4f0   : > { %v4737_v49 = vpop.f32.mrf.mxu0  ;;  %v3528_v26 = vpop.f32.mrf.mxu1 }
 0x4f1   : > { %3117 = vmax.xlane.f32.xlu1 %v6709_v31 }
 0x50a   : > { %v3768_v9 = vpop.f32.mrf.mxu1  ;;  %v3565_v6 = vpop.f32.mrf.mxu0 }
 0x50b   : > { %v3769_v41 = vadd.f32 %v3768_v9, %v3522_v19 }
 0x50c   : > { %v3770_v44 = vpop.f32.mrf.mxu1  ;;  %v3567_v1 = vpop.f32.mrf.mxu0 }
 0x50d   : > { %v3771_v27 = vadd.f32 %v3770_v44, %v3524_v63  ;;  %v3842_v59 = vadd.f32 %v3825_v39, %v3769_v41 }
 0x50e   : > { %v3772_v47 = vpop.f32.mrf.mxu1  ;;  %v3569_v23 = vpop.f32.mrf.mxu0 }
 0x50f   : > { %v3843_v53 = vadd.f32 %v3829_v25, %v3771_v27  ;;  %v3773_v57 = vadd.f32 %v3772_v47, %v3526_v18  ;;  %v4603_v21 = vmul.f32 -1.442695, %v3842_v59 }
 0x510   : > { %v3774_v51 = vpop.f32.mrf.mxu1  ;;  %v3571_v16 = vpop.f32.mrf.mxu0 }
 0x511   : > { %v3775_v60 = vadd.f32 %v3774_v51, %v3528_v26  ;;  %v4605_v62 = vmul.f32 -1.442695, %v3843_v53  ;;  %v3846_v15 = vadd.f32 %v3825_v39, %v3773_v57 }
 0x513   : > { %v3847_v8 = vadd.f32 %v3829_v25, %v3775_v60  ;;  %5228 = vpow2.f32 %v4605_v62  ;;  %v4604_v38 = vmul.f32 -1.442695, %v3846_v15  ;;  %v6721_v60 = vpop.xlane.xlu0 %1324  ;;  %v6990_v62 = vld [vmem:[#allocation34_spill] sm:$0xff] }
 0x514   : > { %5230 = vpow2.f32 %v4603_v21  ;;  %v1328_v15 = vsub.f32 %v6990_v62, %v6721_v60 }
 0x515   : > { %v4606_v37 = vmul.f32 -1.442695, %v3847_v8  ;;  %5232 = vpow2.f32 %v4604_v38  ;;  %v6991_v8 = vld [vmem:[#allocation35_spill] sm:$0xff] }
 0x517   : > { %5234 = vpow2.f32 %v4606_v37  ;;  %v6727_v21 = vpop.xlane.xlu0 %1326  ;;  %v1330_v37 = vmul.f32 1.442695, %v1328_v15 }
 0x518   : > { %v1329_v38 = vsub.f32 %v6991_v8, %v6727_v21 }
 0x520   : > { %v5229_v61 = vpop.eup %5228 }
 0x521   : > { %v5231_v50 = vpop.eup %5230  ;;  %v3868_v33 = vadd.f32 1.0, %v5229_v61  ;;  %v1332_v61 = vmul.f32 1.442695, %v1329_v38 }
 0x522   : > { %v5233_v2 = vpop.eup %5232  ;;  %v3856_v0 = vadd.f32 1.0, %v5231_v50 }
 0x523   : > { %5236 = vrcp.f32 %v3868_v33  ;;  %v3857_v58 = vadd.f32 1.0, %v5233_v2 }
 0x524   : > { %v5235_v10 = vpop.eup %5234  ;;  %5238 = vrcp.f32 %v3856_v0 }
 0x525   : > { %v3869_v24 = vadd.f32 1.0, %v5235_v10 }
 0x52a   : > { %v3811_v22 = vpop.f32.mrf.mxu0 }
 0x52b   : > { %v3812_v17 = vadd.f32 %v3811_v22, %v3565_v6 }
 0x52c   : > { %v3813_v35 = vpop.f32.mrf.mxu0 }
 0x52d   : > { %v3844_v11 = vadd.f32 %v3833_v14, %v3812_v17  ;;  %v3814_v52 = vadd.f32 %v3813_v35, %v3567_v1 }
 0x52e   : > { %v3815_v32 = vpop.f32.mrf.mxu0 }
 0x52f   : > { %5240 = vtanh.f32 %v3844_v11  ;;  %v3845_v34 = vadd.f32 %v3837_v30, %v3814_v52  ;;  %v3816_v36 = vadd.f32 %v3815_v32, %v3569_v23 }
 0x530   : > { %v3817_v4 = vpop.f32.mrf.mxu0  ;;  %5242 = vrcp.f32 %v3857_v58  ;;  %v5237_v48 = vpop.eup %5236 }
 0x531   : > { %v4607_v28 = vmul.f32 -1.442695, %v3845_v34  ;;  %v3848_v54 = vadd.f32 %v3833_v14, %v3816_v36  ;;  %v3818_v55 = vadd.f32 %v3817_v4, %v3571_v16  ;;  %5244 = vrcp.f32 %v3869_v24  ;;  %v5239_v46 = vpop.eup %5238 }
 0x532   : > { %v3888_v3 = vmul.f32 %v5237_v48, %v6569_v40 }
 0x533   : > { %5246 = vpow2.f32 %v4607_v28  ;;  %v3849_v43 = vadd.f32 %v3837_v30, %v3818_v55 }
 0x534   : > { %5248 = vtanh.f32 %v3848_v54 }
 0x535   : > { %v4608_v20 = vmul.f32 -1.442695, %v3849_v43 }
 0x537   : > { %5250 = vpow2.f32 %v4608_v20 }
 0x53c   : > { %v5241_v12 = vpop.eup %5240 }
 0x53d   : > { %v3890_v29 = vmul.f32 %v5241_v12, %v5239_v46  ;;  %v5243_v49 = vpop.eup %5242 }
 0x53e   : > { %v5245_v19 = vpop.eup %5244 }
 0x53f   : > { %v3892_v63 = vadd.f32 %v3890_v29, %v3888_v3  ;;  %v3889_v42 = vmul.f32 %v5245_v19, %v6576_v7  ;;  %v6723_v7 = vpop.xlane.xlu1 %2219 }
 0x540   : > { %v5247_v18 = vpop.eup %5246  ;;  %v2223_v6 = vsub.f32 %v6554_v45, %v6723_v7 }
 0x541   : > { %v5249_v26 = vpop.eup %5248  ;;  %4038 = vst [vmem:[#allocation18] sm:$0xff] %v3892_v63  ;;  %v3882_v9 = vadd.f32 1.0, %v5247_v18  ;;  %5252 = vtanh.f32 %v3892_v63 }
 0x542   : > { %v3891_v44 = vmul.f32 %v5249_v26, %v5243_v49  ;;  %v2225_v16 = vmul.f32 1.442695, %v2223_v6 }
 0x543   : > { %5254 = vrcp.f32 %v3882_v9  ;;  %v6733_v1 = vpop.xlane.xlu1 %2221 }
 0x544   : > { %v5251_v27 = vpop.eup %5250  ;;  %v3893_v25 = vadd.f32 %v3891_v44, %v3889_v42  ;;  %v2224_v50 = vsub.f32 %v6558_v5, %v6733_v1 }
 0x545   : > { %v3883_v41 = vadd.f32 1.0, %v5251_v27 }
 0x546   : > { %5256 = vtanh.f32 %v3893_v25  ;;  %4039 = vst [vmem:[#allocation18 + $0x8] sm:$0xff] %v3893_v25  ;;  %v2227_v2 = vmul.f32 1.442695, %v2224_v50 }
 0x547   : > { %5258 = vrcp.f32 %v3883_v41 }
 0x548   : > { %5260 = vpow2.f32 %v1330_v37 }
 0x549   : > { %5262 = vpow2.f32 %v1332_v61 }
 0x54a   : > { %5264 = vpow2.f32 %v2225_v16 }
 0x54b   : > { %5266 = vpow2.f32 %v2227_v2 }
 0x54e   : > { %v5253_v40 = vpop.eup %5252 }
 0x550   : > { %v5255_v39 = vpop.eup %5254 }
 0x551   : > { %v3896_v47 = vmul.f32 %v5255_v39, %v5253_v40 }
 0x553   : > { %v5257_v51 = vpop.eup %5256  ;;  %4036 = vst [vmem:[#allocation16] sm:$0xff] %v3896_v47 }
 0x554   : > { %v5259_v53 = vpop.eup %5258 }
 0x555   : > { %v3897_v57 = vmul.f32 %v5259_v53, %v5257_v51  ;;  %v5261_v52 = vpop.eup %5260 }
 0x556   : > { %v5263_v32 = vpop.eup %5262 }
 0x557   : > { %v3898_v59 = vpack.c.bf16 %v3897_v57, %v3896_v47  ;;  %4037 = vst [vmem:[#allocation16 + $0x8] sm:$0xff] %v3897_v57  ;;  %v5265_v34 = vpop.eup %5264 }
 0x558   : > { %v5267_v36 = vpop.eup %5266 }
 0x559   : > { %4755 = vmatmul.mubr.bf16.vlgmr.msra.gmra.mxu1 %v3898_v59 }
 0x576   : > { %v6735_v23 = vpop.xlane.xlu0 %3115 }
 0x577   : > { %v3119_v33 = vsub.f32 %v6705_v13, %v6735_v23 }
 0x579   : > { %v3121_v0 = vmul.f32 1.442695, %v3119_v33 }
 0x57a   : > { %v6741_v14 = vpop.xlane.xlu1 %3117 }
 0x57b   : > { %v3120_v22 = vsub.f32 %v6709_v31, %v6741_v14  ;;  %5268 = vpow2.f32 %v3121_v0 }
 0x57d   : > { %v3123_v17 = vmul.f32 1.442695, %v3120_v22 }
 0x57f   : > { %5270 = vpow2.f32 %v3123_v17 }
 0x588   : > { %v5269_v4 = vpop.eup %5268 }
 0x58c   : > { %v5271_v28 = vpop.eup %5270 }
 0x619   : > { %v4004_v10 = vpop.f32.mrf.mxu1 }
 0x61a   : > { %v6746_v30 = vadd.f32 %v6702_v56, %v4004_v10 }
 0x61b   : > { %v4756_v35 = vpop.f32.mrf.mxu1 }
 0x61c   : > { %4011 = vmax.xlane.f32.xlu0 %v6746_v30 }
 0x61d   : > { %v4007_v58 = vpop.f32.mrf.mxu1 }
 0x61e   : > { %v6750_v11 = vadd.f32 %v6702_v56, %v4007_v58 }
 0x61f   : > { %v4757_v24 = vpop.f32.mrf.mxu1 }
 0x620   : > { %1334 = vadd.xlane.f32.xlu0 %v5261_v52  ;;  %4013 = vmax.xlane.f32.xlu1 %v6750_v11 }
 0x624   : > { %2229 = vadd.xlane.f32.xlu0 %v5265_v34  ;;  %1336 = vadd.xlane.f32.xlu1 %v5263_v32 }
 0x628   : > { %3125 = vadd.xlane.f32.xlu0 %v5269_v4  ;;  %2231 = vadd.xlane.f32.xlu1 %v5267_v36 }
 0x62c   : > { %3127 = vadd.xlane.f32.xlu1 %v5271_v28 }
 0x6a5   : > { %v6753_v54 = vpop.xlane.xlu0 %4011 }
 0x6a6   : > { %v4015_v56 = vsub.f32 %v6746_v30, %v6753_v54 }
 0x6a8   : > { %v4017_v55 = vmul.f32 1.442695, %v4015_v56 }
 0x6a9   : > { %v1335_v43 = vpop.xlane.xlu0 %1334  ;;  %v6757_v20 = vpop.xlane.xlu1 %4013 }
 0x6aa   : > { %5272 = vpow2.f32 %v4017_v55  ;;  %v4016_v48 = vsub.f32 %v6750_v11, %v6757_v20 }
 0x6ab   : > { %5274 = vlog2.f32 %v1335_v43 }
 0x6ac   : > { %v4019_v46 = vmul.f32 1.442695, %v4016_v48 }
 0x6ad   : > { %v2230_v12 = vpop.xlane.xlu0 %2229  ;;  %v1337_v3 = vpop.xlane.xlu1 %1336 }
 0x6ae   : > { %5276 = vpow2.f32 %v4019_v46 }
 0x6af   : > { %5278 = vlog2.f32 %v2230_v12 }
 0x6b0   : > { %5280 = vlog2.f32 %v1337_v3 }
 0x6b1   : > { %v3126_v29 = vpop.xlane.xlu0 %3125  ;;  %v2232_v49 = vpop.xlane.xlu1 %2231 }
 0x6b2   : > { %5282 = vlog2.f32 %v3126_v29 }
 0x6b3   : > { %5284 = vlog2.f32 %v2232_v49 }
 0x6b5   : > { %v3128_v19 = vpop.xlane.xlu1 %3127 }
 0x6b6   : > { %5286 = vlog2.f32 %v3128_v19 }
 0x6b7   : > { %v5273_v63 = vpop.eup %5272 }
 0x6b8   : > { %v5275_v18 = vpop.eup %5274  ;;  %4021 = vadd.xlane.f32.xlu0 %v5273_v63 }
 0x6b9   : > { %v1339_v26 = vmul.f32 0.6931472, %v5275_v18 }
 0x6bb   : > { %v5277_v9 = vpop.eup %5276  ;;  %v1342_v42 = vadd.f32 %v1339_v26, %v6721_v60 }
 0x6bc   : > { %v5279_v44 = vpop.eup %5278  ;;  %4023 = vadd.xlane.f32.xlu1 %v5277_v9 }
 0x6bd   : > { %v5281_v27 = vpop.eup %5280  ;;  %v1344_v25 = vsub.f32 %v6990_v62, %v1342_v42  ;;  %v2234_v41 = vmul.f32 0.6931472, %v5279_v44 }
 0x6be   : > { %v1341_v40 = vmul.f32 0.6931472, %v5281_v27 }
 0x6bf   : > { %v5283_v39 = vpop.eup %5282  ;;  %1346 = vst [vmem:[%s5835_s12] sm:$0xff] %v1344_v25  ;;  %v2237_v47 = vadd.f32 %v2234_v41, %v6723_v7 }
 0x6c0   : > { %v5285_v51 = vpop.eup %5284  ;;  %v1343_v53 = vadd.f32 %v1341_v40, %v6727_v21  ;;  %v3130_v57 = vmul.f32 0.6931472, %v5283_v39 }
 0x6c1   : > { %v2239_v59 = vsub.f32 %v6554_v45, %v2237_v47  ;;  %v2236_v60 = vmul.f32 0.6931472, %v5285_v51 }
 0x6c2   : > { %v1345_v15 = vsub.f32 %v6991_v8, %v1343_v53  ;;  %v3133_v62 = vadd.f32 %v3130_v57, %v6735_v23 }
 0x6c3   : > { %v5287_v38 = vpop.eup %5286  ;;  %4454 = vst [vmem:[%s5835_s12 + $0x10] sm:$0xff] %v2239_v59  ;;  %v2238_v37 = vadd.f32 %v2236_v60, %v6733_v1 }
 0x6c4   : > { %1347 = vst [vmem:[%s5835_s12 + $0x8] sm:$0xff] %v1345_v15  ;;  %v3135_v7 = vsub.f32 %v6705_v13, %v3133_v62  ;;  %v3132_v6 = vmul.f32 0.6931472, %v5287_v38 }
 0x6c5   : > { %v2240_v21 = vsub.f32 %v6558_v5, %v2238_v37 }
 0x6c6   : > { %4536 = vst [vmem:[%s5835_s12 + $0x20] sm:$0xff] %v3135_v7  ;;  %v3134_v61 = vadd.f32 %v3132_v6, %v6741_v14 }
 0x6c7   : > { %4455 = vst [vmem:[%s5835_s12 + $0x18] sm:$0xff] %v2240_v21 }
 0x6c8   : > { %v3136_v45 = vsub.f32 %v6709_v31, %v3134_v61 }
 0x6ca   : > { %4537 = vst [vmem:[%s5835_s12 + $0x28] sm:$0xff] %v3136_v45 }
 0x6cb   : > { %5484 = shalt.err (!%p5481_p9)
}
 0x6cc   : > { %s5620_s22 = smov 128   ;;  %s5621_s13 = smov 8  }
 0x6cd   : > { %p6993_p12 = pmov %p6992_p10  ;;  %s5622_s7 = smov [#allocation18]  }
 0x6ce   : > { %s4081_s24 = sshll.u32 %s5622_s7, 4  ;;  %p6994_p11 = pmov %p6992_p10  ;;  %s4082_s24 = int_to_ptr.vmem [resolvable:$true] %s4081_s24 }
 0x6cf   : > { %4784 = dma.vmem_to_hbm [thread:$0]  (%p6993_p12), %s4069_s16, 256, %s6870_s10, [#allocation17], %s5620_s22, %s5620_s22, %s5621_s13  }
 0x6d0   : > { %s5495_s28 = scalar_lea.vmem %s4082_s24, 256  ;;  %p5502_p6 = scmp.lt.s32.totalorder %s4082_s24, %s4082_s24 }
 0x6d1   : > { %p5496_p13 = scmp.ne.s32.totalorder %s4082_s24, %s5495_s28  ;;  %p5503_p10 = scmp.lt.s32.totalorder %s5495_s28, %s5495_s28 }
 0x6d3   : > { %p5497_p3 = pnand %p5496_p13, %p6994_p11  ;;  %p5504_p4 = por %p5503_p10, %p5502_p6 }
 0x6d5   : > { %p5498_p1 = pneg %p5497_p3 }
 0x6d7   : > { %p5505_p7 = pnand %p5504_p4, %p5498_p1 }
 0x6d9   : > { %5508 = shalt.err (!%p5505_p7)
}
 0x6da   : > { %p6995_p2 = pmov %p6994_p11  ;;  %s4638_s30 = sshll.u32 %s5708_s0, 10 }
 0x6db   : > { %s4055_s14 = sshll.u32 %s5835_s12, 4  ;;  %s6996_s18 = sld [smem:[#allocation57_spill]]  ;;  %s6811_s14 = int_to_ptr.vmem [resolvable:$true] %s4055_s14 }
 0x6dc   : > { %4786 = dma.vmem_to_hbm [thread:$0]  (%p6995_p2), %s4082_s24, 256, %s6871_s11, [#allocation17], %s5620_s22, %s5620_s22, %s5621_s13  }
 0x6dd   : > { %s6997_s15 = sand.u32 1, %s5593_s21   ;;  %s5519_s27 = scalar_lea.vmem %s6811_s14, 1024 }
 0x6de   : > { %s4041_s17 = scalar_lea.sflag [#allocation6], %s6997_s15  ;;  %p5520_p0 = scmp.ne.s32.totalorder %s6811_s14, %s5519_s27 }
 0x6df   : > { %s5623_s25 = smov [#allocation15]  }
 0x6e0   : > { %p5521_p8 = pnand %p5520_p0, %p5727_p5  ;;  %s5523_s1 = sshll.u32 %s5623_s25, 4  ;;  %s5524_s1 = int_to_ptr.vmem [resolvable:$false] %s5523_s1 }
 0x6e1   : > { %s6809_s3 = scalar_lea.hbm %s6996_s18, %s4638_s30  ;;  %s5525_s26 = scalar_lea.vmem %s5524_s1, 2048 }
 0x6e2   : > { %p5522_p9 = pneg %p5521_p8  ;;  %p5526_p12 = scmp.lt.s32.totalorder %s6811_s14, %s5524_s1 }
 0x6e3   : > { %p5527_p13 = scmp.lt.s32.totalorder %s5525_s26, %s5519_s27 }
 0x6e5   : > { %p5528_p11 = por %p5527_p13, %p5526_p12 }
 0x6e7   : > { %p5529_p3 = pnand %p5528_p11, %p5522_p9 }
 0x741   : > { %v4022_v5 = vpop.xlane.xlu0 %4021 }
 0x742   : > { %5288 = vlog2.f32 %v4022_v5 }
 0x745   : > { %v4024_v13 = vpop.xlane.xlu1 %4023 }
 0x746   : > { %5290 = vlog2.f32 %v4024_v13 }
 0x74f   : > { %v5289_v31 = vpop.eup %5288 }
 0x750   : > { %v4026_v8 = vmul.f32 0.6931472, %v5289_v31 }
 0x752   : > { %v4029_v1 = vadd.f32 %v4026_v8, %v6753_v54 }
 0x753   : > { %v5291_v23 = vpop.eup %5290 }
 0x754   : > { %v4031_v50 = vsub.f32 %v6746_v30, %v4029_v1  ;;  %v4028_v16 = vmul.f32 0.6931472, %v5291_v23 }
 0x756   : > { %4618 = vst [vmem:[%s5835_s12 + $0x30] sm:$0xff] %v4031_v50  ;;  %v4030_v33 = vadd.f32 %v4028_v16, %v6757_v20 }
 0x758   : > { %v4032_v14 = vsub.f32 %v6750_v11, %v4030_v33 }
 0x75a   : > { %4619 = vst [vmem:[%s5835_s12 + $0x38] sm:$0xff] %v4032_v14 }
 0x75b   : > { %5532 = shalt.err (!%p5529_p3)
}
 0x75c   : > { %s5533_s12 = scalar_lea.hbm %s6809_s3, 1024  ;;  %s5537_s2 = scalar_lea.hbm %s6996_s18, 2048 }
 0x75d   : > { %p5534_p1 = scmp.ne.s32.totalorder %s6809_s3, %s5533_s12  ;;  %p5538_p4 = scmp.lt.s32.totalorder %s6809_s3, %s6996_s18 }
 0x75e   : > { %p5539_p7 = scmp.lt.s32.totalorder %s5537_s2, %s5533_s12 }
 0x75f   : > { %p5535_p6 = pnand %p5534_p1, %p5727_p5 }
 0x760   : > { %p5540_p2 = por %p5539_p7, %p5538_p4 }
 0x761   : > { %p5536_p10 = pneg %p5535_p6 }
 0x763   : > { %p5541_p0 = pnand %p5540_p2, %p5536_p10 }
 0x765   : > { %5544 = shalt.err (!%p5541_p0)
}
 0x766   : > { %4782 = dma.vmem_to_hbm [thread:$0]  (%p5727_p5), %s6811_s14, 1024, %s6809_s3, %s4041_s17, %s5620_s22, %s5620_s22, %s5621_s13  }
 0x767   : > { %p6998_p8 = scmp.eq.s32.totalorder %s5708_s0, 1 }
 0x769   : > { %5580 = dma.done.wait (%p6998_p8), [#allocation17], 512   ;;  %p6999_p9 = pmov %p6998_p8 }
 0x76b   : > { %5582 = vsyncadd (%p6999_p9), [#allocation17], 4294966784 }
 0x76c PF: > { %s7000_s24 = sld [smem:[#allocation28_spill]] }
 0x76d   : > { %s7001_s28 = sld [smem:[#allocation26_spill]] }
 0x76e   : > { %s7002_s4 = sld [smem:[#allocation31_spill]] }
 0x772   : > { %p4831_p12 = scmp.ge.s32.totalorder %s7000_s24, 2 }
 0x773   : > { %s4104_s23 = sand.u32 1, %s7001_s28  }
 0x774   : > { %p7003_p13 = scmp.ne.s32.totalorder %s7002_s4, 0  ;;  %s4105_s29 = scalar_lea.sflag [#allocation6], %s4104_s23 }
 0x776   : > { %p4812_p11 = pnand %p4831_p12, %p7003_p13 }
 0x778   : > { %p4813_p3 = pneg %p4812_p11 }
 0x77a   : > { %5584 = dma.done.wait (%p4813_p3), %s4105_s29, 1024  }
 0x77b   : > { %5586 = vsyncadd (%p4813_p3), %s4105_s29, 4294966272  ;;  %s7004_s23 = sld [smem:[#allocation29_spill]]  ;;  %s7007_s20 = smov %s5593_s21 }
 0x77c   : > { %s7005_s22 = sld [smem:[#allocation27_spill]] }
 0x77d   : > { %s7006_s13 = sld [smem:[#allocation30_spill]] }
 0x781   : > { %p31_p5 = scmp.ge.s32.totalorder %s7004_s23, 4  }
 0x782   : > { %s7008_s21 = smov %s7005_s22 }
 0x783   : > { %s7009_s22 = smov %s7006_s13  ;;  %33 = sbr.rel (!%p31_p5) target bundleno = 20 (0x14), region = 196 }
 0x788   :  { %4110 = vsyncpa [#allocation5], 1 }
 0x789   :  { %4112 = vsyncpa [#allocation5 + $0x1], 1 }
 0x78a   :  { %4113 = vsyncpa [#allocation8], 1 }
 0x78b   :  { %4114 = vsyncpa [#allocation11], 1 }
 0x78c   :  { %4115 = vsyncpa [#allocation14], 1 }
 0x78d   :  { %4116 = vsyncpa [#allocation6], 1 }
 0x78e   :  { %4118 = vsyncpa [#allocation6 + $0x1], 1 }
 0x78f   :  { %4119 = vsyncpa [#allocation17], 1 }

</bundles_post_ra>
